<compile_context>
chip_gen: v7x
topology: tpu7x:2x2x1
jax: 0.10.0
libtpu: 0.0.40
codegen_flags: <defaults>
</compile_context>

<pallas_src>
import jax
import jax.numpy as jnp
from jax.experimental import pallas as pl
from jax.experimental.pallas import tpu as pltpu


def _round_up(x, m):
    return ((x + m - 1) // m) * m


def _sigmoid(x):  # used only by the plain-JAX reference
    return 1.0 / (1.0 + jnp.exp(-x))


# ---------------------------------------------------------------------------
# Wrapper-side parameter packing into one (rows, 256) f32 blob.
# ---------------------------------------------------------------------------
def _pack_params(params, T, E, H, TGT):
    LANES = 256
    f32 = jnp.float32
    TD = T + 1

    def place(w_t, n, d):
        # w_t: (K, 4n) with PyTorch gate blocks [i f g o]; scatter direction d
        # (0=fwd, 1=bwd) into the fused layout [i_f i_b f_f f_b g_f g_b o_f o_b].
        K = w_t.shape[0]
        out = jnp.zeros((K, 8 * n), f32)
        for k in range(4):
            lo = 2 * n * k + d * n
            out = out.at[:, lo:lo + n].set(w_t[:, k * n:(k + 1) * n])
        return out

    def dirp(p, sfx):
        wi = p["weight_ih_l0" + sfx].T.astype(f32)
        wh = p["weight_hh_l0" + sfx].T.astype(f32)
        b = (p["bias_ih_l0" + sfx] + p["bias_hh_l0" + sfx]).reshape(1, -1)
        return wi, wh, b.astype(f32)

    sections, offsets = [], {}
    row = 0

    def add(name, arr):
        nonlocal row
        arr = jnp.asarray(arr, f32)
        r, c = arr.shape
        rp = (-r) % 8                              # sublane-tile align each section
        blk = jnp.zeros((r + rp, LANES), f32).at[:r, :c].set(arr)
        offsets[name] = (row, r, c)
        sections.append(blk)
        row += r + rp

    # inp_emb fused for the paired scene rows [x_s | x_{T-1-s}] -> [emb_f | emb_b]
    iw = params["inp_emb"]["weight"].T.astype(f32)              # (2, E)
    ib = params["inp_emb"]["bias"].reshape(1, -1).astype(f32)
    w4 = jnp.zeros((4, 2 * E), f32).at[0:2, 0:E].set(iw).at[2:4, E:2 * E].set(iw)
    add("emb_w4", w4)
    add("emb_b4", jnp.concatenate([ib, ib], axis=-1))
    add("cur_w", params["current_inp_emb"]["weight"].T.astype(f32))
    add("cur_b", params["current_inp_emb"]["bias"].reshape(1, -1).astype(f32))

    nf = dirp(params["node_hist_encoder"], "")
    nb = dirp(params["node_hist_encoder"], "_reverse")
    add("nh_wih", jnp.concatenate([place(nf[0], H, 0), place(nb[0], H, 1)], axis=0))
    add("nh_b", place(nf[2], H, 0) + place(nb[2], H, 1))
    add("nh_whh", jnp.concatenate([place(nf[1], H, 0), place(nb[1], H, 1)], axis=0))

    ef = dirp(params["edge_encoder"], "")
    eb = dirp(params["edge_encoder"], "_reverse")
    add("ee_wih", place(ef[0], H, 0) + place(eb[0], H, 1))      # same input both dirs
    add("ee_b", place(ef[2], H, 0) + place(eb[2], H, 1))
    # edge_encoder W_hh dropped: sequence length 1 with h0 == 0 (exact).

    df = dirp(params["decoder"], "")
    db = dirp(params["decoder"], "_reverse")
    wdf, wdb = place(df[0], E, 0), place(db[0], E, 1)           # (2H, 8E)
    add("dec_wf_hf", wdf[0:H, :])                               # cat_f -> fwd gates
    add("dec_wf_hb", wdf[H:2 * H, :])                           # cat_b -> fwd gates
    add("dec_wb_hf", wdb[0:H, :])                               # cat_f -> bwd gates
    add("dec_wb_hb", wdb[H:2 * H, :])                           # cat_b -> bwd gates
    add("dec_b", place(df[2], E, 0) + place(db[2], E, 1))
    add("dec_whh", jnp.concatenate([place(df[1], E, 0), place(db[1], E, 1)], axis=0))

    # hidden2pose rows re-ordered so decoder loop index u ([fwd(u) | bwd(TD-1-u)])
    # multiplies one contiguous (1, 2E) weight row.
    hw = params["hidden2pose"]["weight"].astype(f32)            # (TGT, TD*2E)
    w2p = jnp.zeros((TGT * TD, 2 * E), f32)
    for u in range(TD):
        for j in range(TGT):
            w2p = w2p.at[TGT * u + j, 0:E].set(hw[j, 2 * E * u:2 * E * u + E])
            w2p = w2p.at[TGT * u + j, E:2 * E].set(
                hw[j, 2 * E * (TD - 1 - u) + E:2 * E * (TD - 1 - u) + 2 * E])
    add("pose_w", w2p)
    add("pose_b", params["hidden2pose"]["bias"].reshape(1, -1).astype(f32))

    return jnp.concatenate(sections, axis=0), offsets


# ---------------------------------------------------------------------------
# Kernel factory (static shapes / offsets captured by closure).
# ---------------------------------------------------------------------------
def _make_kernel(T, Bp, E, H, TGT, offsets):
    TD = T + 1
    f32 = jnp.float32

    def sig(x):  # exact sigmoid via one EUP tanh (no exp / divide)
        return 0.5 * jnp.tanh(0.5 * x) + 0.5

    def kernel(scene_ref, pack_ref, out_ref, catf_ref, catb_ref):
        def sect(name):
            off, r, c = offsets[name]
            return pack_ref[off:off + r, 0:c]

        sp = scene_ref[...]                                   # (T*Bp, 4) paired poses

        # 1) paired input embedding: relu([x_s | x_rev] @ W4 + b4)  (VPU MACs)
        w4, b4 = sect("emb_w4"), sect("emb_b4")
        emb = (b4 + sp[:, 0:1] * w4[0:1, :] + sp[:, 1:2] * w4[1:2, :]
                  + sp[:, 2:3] * w4[2:3, :] + sp[:, 3:4] * w4[3:4, :])
        emb = jnp.maximum(emb, 0.0)                           # (T*Bp, 2E)

        # 2) node-hist BiLSTM: batched input projection + fused-direction recurrence
        pre_nh = jnp.dot(emb, sect("nh_wih"),
                         preferred_element_type=f32) + sect("nh_b")   # (T*Bp, 8H)
        whh_nh = sect("nh_whh")                                        # (2H, 8H)
        h = c = None
        for s in range(T):
            g_in = pre_nh[s * Bp:(s + 1) * Bp, :]
            if h is not None:
                g_in = g_in + jnp.dot(h, whh_nh, preferred_element_type=f32)
            sg = sig(g_in)                                    # full-vreg nonlinearity
            gi, gf, go = sg[:, 0:2 * H], sg[:, 2 * H:4 * H], sg[:, 6 * H:8 * H]
            gg = jnp.tanh(g_in[:, 4 * H:6 * H])
            c = gi * gg if c is None else gf * c + gi * gg
            h = go * jnp.tanh(c)                              # (Bp, 2H) = [h_f | h_b]
            catf_ref[s * Bp:(s + 1) * Bp, :] = h[:, 0:H]              # fwd out @ t=s
            catb_ref[(T - 1 - s) * Bp:(T - s) * Bp, :] = h[:, H:2 * H]  # bwd @ t=T-1-s

        # 3) edge encoder on the current pose (seq len 1, h0 = c0 = 0)
        cur = sp[(T - 1) * Bp:T * Bp, 0:2]                    # scene[:, -1, :]
        cw, cub = sect("cur_w"), sect("cur_b")
        cur_emb = jnp.maximum(
            cur[:, 0:1] * cw[0:1, :] + cur[:, 1:2] * cw[1:2, :] + cub, 0.0)
        ge = jnp.dot(cur_emb, sect("ee_wih"),
                     preferred_element_type=f32) + sect("ee_b")
        se = sig(ge)
        ce = se[:, 0:2 * H] * jnp.tanh(ge[:, 4 * H:6 * H])    # c = i*g
        he = se[:, 6 * H:8 * H] * jnp.tanh(ce)                # (Bp, 2H)
        catf_ref[T * Bp:TD * Bp, :] = he[:, 0:H]
        catb_ref[T * Bp:TD * Bp, :] = he[:, H:2 * H]

        # 4) decoder BiLSTM: batched input projections over all TD steps
        cf, cbk = catf_ref[...], catb_ref[...]                # (TD*Bp, H) each
        pre_df = (jnp.dot(cf, sect("dec_wf_hf"), preferred_element_type=f32)
                  + jnp.dot(cbk, sect("dec_wf_hb"), preferred_element_type=f32)
                  + sect("dec_b"))                            # (TD*Bp, 8E)
        pre_db = (jnp.dot(cf, sect("dec_wb_hf"), preferred_element_type=f32)
                  + jnp.dot(cbk, sect("dec_wb_hb"), preferred_element_type=f32))
        whh_de = sect("dec_whh")                              # (2E, 8E)
        w2p, b2p = sect("pose_w"), sect("pose_b")

        hd = cd = None
        accs = [jnp.zeros((Bp, 2 * E), f32) for _ in range(TGT)]
        for u in range(TD):
            g_in = (pre_df[u * Bp:(u + 1) * Bp, :]
                    + pre_db[(TD - 1 - u) * Bp:(TD - u) * Bp, :])
            if hd is not None:
                g_in = g_in + jnp.dot(hd, whh_de, preferred_element_type=f32)
            sgd = sig(g_in)
            gi, gf, go = sgd[:, 0:2 * E], sgd[:, 2 * E:4 * E], sgd[:, 6 * E:8 * E]
            gg = jnp.tanh(g_in[:, 4 * E:6 * E])
            cd = gi * gg if cd is None else gf * cd + gi * gg
            hd = go * jnp.tanh(cd)                            # (Bp, 2E) = [h_f | h_b]
            # 5) hidden2pose accumulated against loop-order-paired weight rows
            for j in range(TGT):
                accs[j] = accs[j] + hd * w2p[TGT * u + j:TGT * u + j + 1, :]

        cols = [jnp.sum(accs[j], axis=-1, keepdims=True) + b2p[:, j:j + 1]
                for j in range(TGT)]
        tag = cur + jnp.concatenate(cols, axis=-1)            # residual on last pose
        pad = jnp.zeros((Bp, out_ref.shape[1] - TGT), f32)
        out_ref[...] = jnp.concatenate([tag, pad], axis=-1)   # lane-dense tile store

    return kernel


# ---------------------------------------------------------------------------
# Public wrapper.
# ---------------------------------------------------------------------------
def lstm_enc_delta_forward(scene, params):
    """Pallas equivalent of LSTM_enc_delta.forward(scene)."""
    scene = scene.astype(jnp.float32)
    B, T, D = scene.shape
    E = params["inp_emb"]["weight"].shape[0]
    H = params["node_hist_encoder"]["weight_hh_l0"].shape[1]
    TGT = params["hidden2pose"]["weight"].shape[0]
    TD = T + 1
    assert D == 2, "data_dim must be 2"
    assert TGT == 2, "residual scene[:, -1] + pose requires target_size == 2"
    assert params["hidden2pose"]["weight"].shape[1] == TD * 2 * E, (
        "hidden2pose requires history_size + 1 decoder steps (history_size=8)")

    Bp = max(8, _round_up(B, 8))                       # sublane-aligned batch
    scene_p = jnp.pad(scene, ((0, Bp - B), (0, 0), (0, 0)))
    # paired, time-major, batch-flattened scene: row block s = [x_s | x_{T-1-s}]
    sp = jnp.concatenate([scene_p, scene_p[:, ::-1, :]], axis=-1)   # (Bp, T, 4)
    sp = jnp.transpose(sp, (1, 0, 2)).reshape(T * Bp, 2 * D)

    pack, offsets = _pack_params(params, T, E, H, TGT)
    kernel = _make_kernel(T, Bp, E, H, TGT, offsets)

    mm_flops = 2 * ((T * Bp) * (2 * E) * (8 * H)          # node-hist input proj
                    + (T - 1) * Bp * (2 * H) * (8 * H)    # node-hist recurrence
                    + Bp * E * (8 * H)                    # edge encoder gates
                    + 4 * (TD * Bp) * H * (8 * E)         # decoder input projections
                    + (TD - 1) * Bp * (2 * E) * (8 * E))  # decoder recurrence
    trans = Bp * ((T + 1) * 12 * H + TD * 12 * E)
    bytes_acc = 4 * (int(sp.size) + int(pack.size) + Bp * 128)

    out = pl.pallas_call(
        kernel,
        out_shape=jax.ShapeDtypeStruct((Bp, 128), jnp.float32),
        in_specs=[pl.BlockSpec(memory_space=pltpu.MemorySpace.VMEM),
                  pl.BlockSpec(memory_space=pltpu.MemorySpace.VMEM)],
        out_specs=pl.BlockSpec(memory_space=pltpu.MemorySpace.VMEM),
        scratch_shapes=[pltpu.VMEM((TD * Bp, H), jnp.float32),   # cat fwd halves
                        pltpu.VMEM((TD * Bp, H), jnp.float32)],  # cat bwd halves
        cost_estimate=pl.CostEstimate(flops=int(mm_flops),
                                      transcendentals=int(trans),
                                      bytes_accessed=int(bytes_acc)),
    )(sp, pack)

    return out[:B, :TGT].reshape(B, 1, TGT)


# ----------------------------- plain-JAX reference -----------------------------
def _ref_lstm_cell(x, h, c, wih, whh, bih, bhh):
    gates = x @ wih.T + bih + h @ whh.T + bhh
    i, f, g, o = jnp.split(gates, 4, axis=-1)
    i, f, o = _sigmoid(i), _sigmoid(f), _sigmoid(o)
    g = jnp.tanh(g)
    c = f * c + i * g
    return o * jnp.tanh(c), c


def _ref_bilstm(xs, p, hid):
    B, T, _ = xs.shape

    def run(sfx, order):
        h = jnp.zeros((B, hid), jnp.float32)
        c = jnp.zeros((B, hid), jnp.float32)
        outs = [None] * T
        for t in order:
            h, c = _ref_lstm_cell(xs[:, t, :], h, c,
                                  p["weight_ih_l0" + sfx], p["weight_hh_l0" + sfx],
                                  p["bias_ih_l0" + sfx], p["bias_hh_l0" + sfx])
            outs[t] = h
        return jnp.stack(outs, axis=1)

    fwd = run("", range(T))
    bwd = run("_reverse", range(T - 1, -1, -1))
    return jnp.concatenate([fwd, bwd], axis=-1)


def ref_forward(scene, params):
    B, T, _ = scene.shape
    E = params["inp_emb"]["weight"].shape[0]
    H = params["node_hist_encoder"]["weight_hh_l0"].shape[1]
    lin = lambda x, p: x @ p["weight"].T + p["bias"]
    relu = lambda x: jnp.maximum(x, 0.0)

    embedded = relu(lin(scene, params["inp_emb"]))                      # (B,T,E)
    lstm_out = _ref_bilstm(embedded, params["node_hist_encoder"], H)    # (B,T,2H)
    current = scene[:, -1, :]
    current_emb = relu(lin(current, params["current_inp_emb"]))
    distr = _ref_bilstm(current_emb[:, None, :], params["edge_encoder"], H)
    catted = jnp.concatenate([lstm_out, distr], axis=1)                 # (B,T+1,2H)
    decoded = _ref_bilstm(catted, params["decoder"], E)                 # (B,T+1,2E)
    dec_flat = decoded.reshape(B, -1)
    tag = scene[:, -1, :] + lin(dec_flat, params["hidden2pose"])
    return tag[:, None, :]


# ----------------------------- parameter init ----------------------------------
def init_params(key, embedding_dim=16, lstm_hidden_dim=32, target_size=2,
                history_size=8):
    E, H = embedding_dim, lstm_hidden_dim
    keys = iter(jax.random.split(key, 40))

    def uni(shape, fan):
        bound = 1.0 / (fan ** 0.5)
        return jax.random.uniform(next(keys), shape, jnp.float32, -bound, bound)

    def linear_p(in_f, out_f):
        return {"weight": uni((out_f, in_f), in_f), "bias": uni((out_f,), in_f)}

    def bilstm_p(in_f, hid):
        p = {}
        for sfx in ("", "_reverse"):
            p["weight_ih_l0" + sfx] = uni((4 * hid, in_f), hid)
            p["weight_hh_l0" + sfx] = uni((4 * hid, hid), hid)
            p["bias_ih_l0" + sfx] = uni((4 * hid,), hid)
            p["bias_hh_l0" + sfx] = uni((4 * hid,), hid)
        return p

    return {
        "inp_emb": linear_p(2, E),
        "current_inp_emb": linear_p(2, E),
        "node_hist_encoder": bilstm_p(E, H),
        "edge_encoder": bilstm_p(E, H),
        "decoder": bilstm_p(2 * H, E),
        "hidden2pose": linear_p((history_size + 1) * 2 * E, target_size),
    }


if __name__ == "__main__":
    key = jax.random.PRNGKey(0)
    k_params, k_scene = jax.random.split(key)

    num_peds, history_size = 4, 8        # hidden2pose (9*2E inputs) => history=8
    embedding_dim, lstm_hidden_dim, target_size = 16, 32, 2

    params = init_params(k_params, embedding_dim, lstm_hidden_dim,
                         target_size, history_size)
    scene = jax.random.normal(k_scene, (num_peds, history_size, 2), jnp.float32)

    out = lstm_enc_delta_forward(scene, params)
    out = jax.block_until_ready(out)

    ref = ref_forward(scene, params)
    assert out.shape == (num_peds, 1, target_size), out.shape
    assert jnp.allclose(out, ref, atol=5e-3, rtol=5e-3), (out, ref)

    print("KERNEL_OK")
</pallas_src>

<mosaic_0001>
module attributes {stable_mosaic.version = 11 : i64} {
  func.func @kernel(%arg0: memref<64x4xf32, #tpu.memory_space<vmem>>, %arg1: memref<360x256xf32, #tpu.memory_space<vmem>>, %arg2: memref<8x128xf32, #tpu.memory_space<vmem>>, %arg3: memref<72x32xf32, #tpu.memory_space<vmem>>, %arg4: memref<72x32xf32, #tpu.memory_space<vmem>>) attributes {dimension_semantics = [], scalar_prefetch = 0 : i64, scratch_operands = 2 : i64, tpu.core_type = #tpu.core_type<tc>} {
    %c0 = arith.constant 0 : index
    %c0_0 = arith.constant 0 : index
    %0 = vector.load %arg0[%c0, %c0_0] : memref<64x4xf32, #tpu.memory_space<vmem>>, vector<64x4xf32>
    %c0_1 = arith.constant 0 : index
    %c0_2 = arith.constant 0 : index
    %1 = vector.load %arg1[%c0_1, %c0_2] : memref<360x256xf32, #tpu.memory_space<vmem>>, vector<4x32xf32>
    %c8 = arith.constant 8 : index
    %c0_3 = arith.constant 0 : index
    %2 = vector.load %arg1[%c8, %c0_3] : memref<360x256xf32, #tpu.memory_space<vmem>>, vector<1x32xf32>
    %3 = vector.extract_strided_slice %0 {offsets = [0, 0], sizes = [64, 1], strides = [1, 1]} : vector<64x4xf32> to vector<64x1xf32>
    %4 = vector.extract_strided_slice %1 {offsets = [0, 0], sizes = [1, 32], strides = [1, 1]} : vector<4x32xf32> to vector<1x32xf32>
    %5 = vector.broadcast %3 : vector<64x1xf32> to vector<64x32xf32>
    %6 = vector.broadcast %4 : vector<1x32xf32> to vector<64x32xf32>
    %7 = arith.mulf %5, %6 : vector<64x32xf32>
    %8 = vector.broadcast %2 : vector<1x32xf32> to vector<64x32xf32>
    %9 = arith.addf %8, %7 : vector<64x32xf32>
    %10 = vector.extract_strided_slice %0 {offsets = [0, 1], sizes = [64, 1], strides = [1, 1]} : vector<64x4xf32> to vector<64x1xf32>
    %11 = vector.extract_strided_slice %1 {offsets = [1, 0], sizes = [1, 32], strides = [1, 1]} : vector<4x32xf32> to vector<1x32xf32>
    %12 = vector.broadcast %10 : vector<64x1xf32> to vector<64x32xf32>
    %13 = vector.broadcast %11 : vector<1x32xf32> to vector<64x32xf32>
    %14 = arith.mulf %12, %13 : vector<64x32xf32>
    %15 = arith.addf %9, %14 : vector<64x32xf32>
    %16 = vector.extract_strided_slice %0 {offsets = [0, 2], sizes = [64, 1], strides = [1, 1]} : vector<64x4xf32> to vector<64x1xf32>
    %17 = vector.extract_strided_slice %1 {offsets = [2, 0], sizes = [1, 32], strides = [1, 1]} : vector<4x32xf32> to vector<1x32xf32>
    %18 = vector.broadcast %16 : vector<64x1xf32> to vector<64x32xf32>
    %19 = vector.broadcast %17 : vector<1x32xf32> to vector<64x32xf32>
    %20 = arith.mulf %18, %19 : vector<64x32xf32>
    %21 = arith.addf %15, %20 : vector<64x32xf32>
    %22 = vector.extract_strided_slice %0 {offsets = [0, 3], sizes = [64, 1], strides = [1, 1]} : vector<64x4xf32> to vector<64x1xf32>
    %23 = vector.extract_strided_slice %1 {offsets = [3, 0], sizes = [1, 32], strides = [1, 1]} : vector<4x32xf32> to vector<1x32xf32>
    %24 = vector.broadcast %22 : vector<64x1xf32> to vector<64x32xf32>
    %25 = vector.broadcast %23 : vector<1x32xf32> to vector<64x32xf32>
    %26 = arith.mulf %24, %25 : vector<64x32xf32>
    %27 = arith.addf %21, %26 : vector<64x32xf32>
    %cst = arith.constant 0.000000e+00 : f32
    %28 = vector.broadcast %cst : f32 to vector<64x32xf32>
    %29 = arith.maximumf %27, %28 : vector<64x32xf32>
    %c32 = arith.constant 32 : index
    %c0_4 = arith.constant 0 : index
    %30 = vector.load %arg1[%c32, %c0_4] : memref<360x256xf32, #tpu.memory_space<vmem>>, vector<32x256xf32>
    %cst_5 = arith.constant dense<0.000000e+00> : vector<64x256xf32>
    %31 = tpu.matmul %29, %30, %cst_5 {dimension_numbers = #tpu.dot_dimension_numbers<[1], [0], [0], [1], [0, 0, 1, 1], [], []>} : vector<64x32xf32>, vector<32x256xf32>, vector<64x256xf32> -> vector<64x256xf32>
    %c64 = arith.constant 64 : index
    %c0_6 = arith.constant 0 : index
    %32 = vector.load %arg1[%c64, %c0_6] : memref<360x256xf32, #tpu.memory_space<vmem>>, vector<1x256xf32>
    %33 = vector.broadcast %32 : vector<1x256xf32> to vector<64x256xf32>
    %34 = arith.addf %31, %33 : vector<64x256xf32>
    %c72 = arith.constant 72 : index
    %c0_7 = arith.constant 0 : index
    %35 = vector.load %arg1[%c72, %c0_7] : memref<360x256xf32, #tpu.memory_space<vmem>>, vector<64x256xf32>
    %36 = vector.extract_strided_slice %34 {offsets = [0, 0], sizes = [8, 256], strides = [1, 1]} : vector<64x256xf32> to vector<8x256xf32>
    %cst_8 = arith.constant 5.000000e-01 : f32
    %37 = vector.broadcast %cst_8 : f32 to vector<8x256xf32>
    %38 = arith.mulf %37, %36 : vector<8x256xf32>
    %39 = math.tanh %38 : vector<8x256xf32>
    %cst_9 = arith.constant 5.000000e-01 : f32
    %40 = vector.broadcast %cst_9 : f32 to vector<8x256xf32>
    %41 = arith.mulf %40, %39 : vector<8x256xf32>
    %cst_10 = arith.constant 5.000000e-01 : f32
    %42 = vector.broadcast %cst_10 : f32 to vector<8x256xf32>
    %43 = arith.addf %41, %42 : vector<8x256xf32>
    %44 = vector.extract_strided_slice %43 {offsets = [0, 0], sizes = [8, 64], strides = [1, 1]} : vector<8x256xf32> to vector<8x64xf32>
    %45 = vector.extract_strided_slice %43 {offsets = [0, 192], sizes = [8, 64], strides = [1, 1]} : vector<8x256xf32> to vector<8x64xf32>
    %46 = vector.extract_strided_slice %36 {offsets = [0, 128], sizes = [8, 64], strides = [1, 1]} : vector<8x256xf32> to vector<8x64xf32>
    %47 = math.tanh %46 : vector<8x64xf32>
    %48 = arith.mulf %44, %47 : vector<8x64xf32>
    %49 = math.tanh %48 : vector<8x64xf32>
    %50 = arith.mulf %45, %49 : vector<8x64xf32>
    %51 = vector.extract_strided_slice %50 {offsets = [0, 0], sizes = [8, 32], strides = [1, 1]} : vector<8x64xf32> to vector<8x32xf32>
    %c0_11 = arith.constant 0 : index
    %c0_12 = arith.constant 0 : index
    %52 = vector.load %arg3[%c0_11, %c0_12] : memref<72x32xf32, #tpu.memory_space<vmem>>, vector<8x32xf32>
    tpu.vector_store %arg3[%c0_11, %c0_12], %51 {strides = array<i32>} : memref<72x32xf32, #tpu.memory_space<vmem>>, vector<8x32xf32>,
    %53 = vector.extract_strided_slice %50 {offsets = [0, 32], sizes = [8, 32], strides = [1, 1]} : vector<8x64xf32> to vector<8x32xf32>
    %c56 = arith.constant 56 : index
    %c0_13 = arith.constant 0 : index
    %54 = vector.load %arg4[%c56, %c0_13] : memref<72x32xf32, #tpu.memory_space<vmem>>, vector<8x32xf32>
    tpu.vector_store %arg4[%c56, %c0_13], %53 {strides = array<i32>} : memref<72x32xf32, #tpu.memory_space<vmem>>, vector<8x32xf32>,
    %55 = vector.extract_strided_slice %34 {offsets = [8, 0], sizes = [8, 256], strides = [1, 1]} : vector<64x256xf32> to vector<8x256xf32>
    %cst_14 = arith.constant dense<0.000000e+00> : vector<8x256xf32>
    %56 = tpu.matmul %50, %35, %cst_14 {dimension_numbers = #tpu.dot_dimension_numbers<[1], [0], [0], [1], [0, 0, 1, 1], [], []>} : vector<8x64xf32>, vector<64x256xf32>, vector<8x256xf32> -> vector<8x256xf32>
    %57 = arith.addf %55, %56 : vector<8x256xf32>
    %cst_15 = arith.constant 5.000000e-01 : f32
    %58 = vector.broadcast %cst_15 : f32 to vector<8x256xf32>
    %59 = arith.mulf %58, %57 : vector<8x256xf32>
    %60 = math.tanh %59 : vector<8x256xf32>
    %cst_16 = arith.constant 5.000000e-01 : f32
    %61 = vector.broadcast %cst_16 : f32 to vector<8x256xf32>
    %62 = arith.mulf %61, %60 : vector<8x256xf32>
    %cst_17 = arith.constant 5.000000e-01 : f32
    %63 = vector.broadcast %cst_17 : f32 to vector<8x256xf32>
    %64 = arith.addf %62, %63 : vector<8x256xf32>
    %65 = vector.extract_strided_slice %64 {offsets = [0, 0], sizes = [8, 64], strides = [1, 1]} : vector<8x256xf32> to vector<8x64xf32>
    %66 = vector.extract_strided_slice %64 {offsets = [0, 64], sizes = [8, 64], strides = [1, 1]} : vector<8x256xf32> to vector<8x64xf32>
    %67 = vector.extract_strided_slice %64 {offsets = [0, 192], sizes = [8, 64], strides = [1, 1]} : vector<8x256xf32> to vector<8x64xf32>
    %68 = vector.extract_strided_slice %57 {offsets = [0, 128], sizes = [8, 64], strides = [1, 1]} : vector<8x256xf32> to vector<8x64xf32>
    %69 = math.tanh %68 : vector<8x64xf32>
    %70 = arith.mulf %66, %48 : vector<8x64xf32>
    %71 = arith.mulf %65, %69 : vector<8x64xf32>
    %72 = arith.addf %70, %71 : vector<8x64xf32>
    %73 = math.tanh %72 : vector<8x64xf32>
    %74 = arith.mulf %67, %73 : vector<8x64xf32>
    %75 = vector.extract_strided_slice %74 {offsets = [0, 0], sizes = [8, 32], strides = [1, 1]} : vector<8x64xf32> to vector<8x32xf32>
    %c8_18 = arith.constant 8 : index
    %c0_19 = arith.constant 0 : index
    %76 = vector.load %arg3[%c8_18, %c0_19] : memref<72x32xf32, #tpu.memory_space<vmem>>, vector<8x32xf32>
    tpu.vector_store %arg3[%c8_18, %c0_19], %75 {strides = array<i32>} : memref<72x32xf32, #tpu.memory_space<vmem>>, vector<8x32xf32>,
    %77 = vector.extract_strided_slice %74 {offsets = [0, 32], sizes = [8, 32], strides = [1, 1]} : vector<8x64xf32> to vector<8x32xf32>
    %c48 = arith.constant 48 : index
    %c0_20 = arith.constant 0 : index
    %78 = vector.load %arg4[%c48, %c0_20] : memref<72x32xf32, #tpu.memory_space<vmem>>, vector<8x32xf32>
    tpu.vector_store %arg4[%c48, %c0_20], %77 {strides = array<i32>} : memref<72x32xf32, #tpu.memory_space<vmem>>, vector<8x32xf32>,
    %79 = vector.extract_strided_slice %34 {offsets = [16, 0], sizes = [8, 256], strides = [1, 1]} : vector<64x256xf32> to vector<8x256xf32>
    %cst_21 = arith.constant dense<0.000000e+00> : vector<8x256xf32>
    %80 = tpu.matmul %74, %35, %cst_21 {dimension_numbers = #tpu.dot_dimension_numbers<[1], [0], [0], [1], [0, 0, 1, 1], [], []>} : vector<8x64xf32>, vector<64x256xf32>, vector<8x256xf32> -> vector<8x256xf32>
    %81 = arith.addf %79, %80 : vector<8x256xf32>
    %cst_22 = arith.constant 5.000000e-01 : f32
    %82 = vector.broadcast %cst_22 : f32 to vector<8x256xf32>
    %83 = arith.mulf %82, %81 : vector<8x256xf32>
    %84 = math.tanh %83 : vector<8x256xf32>
    %cst_23 = arith.constant 5.000000e-01 : f32
    %85 = vector.broadcast %cst_23 : f32 to vector<8x256xf32>
    %86 = arith.mulf %85, %84 : vector<8x256xf32>
    %cst_24 = arith.constant 5.000000e-01 : f32
    %87 = vector.broadcast %cst_24 : f32 to vector<8x256xf32>
    %88 = arith.addf %86, %87 : vector<8x256xf32>
    %89 = vector.extract_strided_slice %88 {offsets = [0, 0], sizes = [8, 64], strides = [1, 1]} : vector<8x256xf32> to vector<8x64xf32>
    %90 = vector.extract_strided_slice %88 {offsets = [0, 64], sizes = [8, 64], strides = [1, 1]} : vector<8x256xf32> to vector<8x64xf32>
    %91 = vector.extract_strided_slice %88 {offsets = [0, 192], sizes = [8, 64], strides = [1, 1]} : vector<8x256xf32> to vector<8x64xf32>
    %92 = vector.extract_strided_slice %81 {offsets = [0, 128], sizes = [8, 64], strides = [1, 1]} : vector<8x256xf32> to vector<8x64xf32>
    %93 = math.tanh %92 : vector<8x64xf32>
    %94 = arith.mulf %90, %72 : vector<8x64xf32>
    %95 = arith.mulf %89, %93 : vector<8x64xf32>
    %96 = arith.addf %94, %95 : vector<8x64xf32>
    %97 = math.tanh %96 : vector<8x64xf32>
    %98 = arith.mulf %91, %97 : vector<8x64xf32>
    %99 = vector.extract_strided_slice %98 {offsets = [0, 0], sizes = [8, 32], strides = [1, 1]} : vector<8x64xf32> to vector<8x32xf32>
    %c16 = arith.constant 16 : index
    %c0_25 = arith.constant 0 : index
    %100 = vector.load %arg3[%c16, %c0_25] : memref<72x32xf32, #tpu.memory_space<vmem>>, vector<8x32xf32>
    tpu.vector_store %arg3[%c16, %c0_25], %99 {strides = array<i32>} : memref<72x32xf32, #tpu.memory_space<vmem>>, vector<8x32xf32>,
    %101 = vector.extract_strided_slice %98 {offsets = [0, 32], sizes = [8, 32], strides = [1, 1]} : vector<8x64xf32> to vector<8x32xf32>
    %c40 = arith.constant 40 : index
    %c0_26 = arith.constant 0 : index
    %102 = vector.load %arg4[%c40, %c0_26] : memref<72x32xf32, #tpu.memory_space<vmem>>, vector<8x32xf32>
    tpu.vector_store %arg4[%c40, %c0_26], %101 {strides = array<i32>} : memref<72x32xf32, #tpu.memory_space<vmem>>, vector<8x32xf32>,
    %103 = vector.extract_strided_slice %34 {offsets = [24, 0], sizes = [8, 256], strides = [1, 1]} : vector<64x256xf32> to vector<8x256xf32>
    %cst_27 = arith.constant dense<0.000000e+00> : vector<8x256xf32>
    %104 = tpu.matmul %98, %35, %cst_27 {dimension_numbers = #tpu.dot_dimension_numbers<[1], [0], [0], [1], [0, 0, 1, 1], [], []>} : vector<8x64xf32>, vector<64x256xf32>, vector<8x256xf32> -> vector<8x256xf32>
    %105 = arith.addf %103, %104 : vector<8x256xf32>
    %cst_28 = arith.constant 5.000000e-01 : f32
    %106 = vector.broadcast %cst_28 : f32 to vector<8x256xf32>
    %107 = arith.mulf %106, %105 : vector<8x256xf32>
    %108 = math.tanh %107 : vector<8x256xf32>
    %cst_29 = arith.constant 5.000000e-01 : f32
    %109 = vector.broadcast %cst_29 : f32 to vector<8x256xf32>
    %110 = arith.mulf %109, %108 : vector<8x256xf32>
    %cst_30 = arith.constant 5.000000e-01 : f32
    %111 = vector.broadcast %cst_30 : f32 to vector<8x256xf32>
    %112 = arith.addf %110, %111 : vector<8x256xf32>
    %113 = vector.extract_strided_slice %112 {offsets = [0, 0], sizes = [8, 64], strides = [1, 1]} : vector<8x256xf32> to vector<8x64xf32>
    %114 = vector.extract_strided_slice %112 {offsets = [0, 64], sizes = [8, 64], strides = [1, 1]} : vector<8x256xf32> to vector<8x64xf32>
    %115 = vector.extract_strided_slice %112 {offsets = [0, 192], sizes = [8, 64], strides = [1, 1]} : vector<8x256xf32> to vector<8x64xf32>
    %116 = vector.extract_strided_slice %105 {offsets = [0, 128], sizes = [8, 64], strides = [1, 1]} : vector<8x256xf32> to vector<8x64xf32>
    %117 = math.tanh %116 : vector<8x64xf32>
    %118 = arith.mulf %114, %96 : vector<8x64xf32>
    %119 = arith.mulf %113, %117 : vector<8x64xf32>
    %120 = arith.addf %118, %119 : vector<8x64xf32>
    %121 = math.tanh %120 : vector<8x64xf32>
    %122 = arith.mulf %115, %121 : vector<8x64xf32>
    %123 = vector.extract_strided_slice %122 {offsets = [0, 0], sizes = [8, 32], strides = [1, 1]} : vector<8x64xf32> to vector<8x32xf32>
    %c24 = arith.constant 24 : index
    %c0_31 = arith.constant 0 : index
    %124 = vector.load %arg3[%c24, %c0_31] : memref<72x32xf32, #tpu.memory_space<vmem>>, vector<8x32xf32>
    tpu.vector_store %arg3[%c24, %c0_31], %123 {strides = array<i32>} : memref<72x32xf32, #tpu.memory_space<vmem>>, vector<8x32xf32>,
    %125 = vector.extract_strided_slice %122 {offsets = [0, 32], sizes = [8, 32], strides = [1, 1]} : vector<8x64xf32> to vector<8x32xf32>
    %c32_32 = arith.constant 32 : index
    %c0_33 = arith.constant 0 : index
    %126 = vector.load %arg4[%c32_32, %c0_33] : memref<72x32xf32, #tpu.memory_space<vmem>>, vector<8x32xf32>
    tpu.vector_store %arg4[%c32_32, %c0_33], %125 {strides = array<i32>} : memref<72x32xf32, #tpu.memory_space<vmem>>, vector<8x32xf32>,
    %127 = vector.extract_strided_slice %34 {offsets = [32, 0], sizes = [8, 256], strides = [1, 1]} : vector<64x256xf32> to vector<8x256xf32>
    %cst_34 = arith.constant dense<0.000000e+00> : vector<8x256xf32>
    %128 = tpu.matmul %122, %35, %cst_34 {dimension_numbers = #tpu.dot_dimension_numbers<[1], [0], [0], [1], [0, 0, 1, 1], [], []>} : vector<8x64xf32>, vector<64x256xf32>, vector<8x256xf32> -> vector<8x256xf32>
    %129 = arith.addf %127, %128 : vector<8x256xf32>
    %cst_35 = arith.constant 5.000000e-01 : f32
    %130 = vector.broadcast %cst_35 : f32 to vector<8x256xf32>
    %131 = arith.mulf %130, %129 : vector<8x256xf32>
    %132 = math.tanh %131 : vector<8x256xf32>
    %cst_36 = arith.constant 5.000000e-01 : f32
    %133 = vector.broadcast %cst_36 : f32 to vector<8x256xf32>
    %134 = arith.mulf %133, %132 : vector<8x256xf32>
    %cst_37 = arith.constant 5.000000e-01 : f32
    %135 = vector.broadcast %cst_37 : f32 to vector<8x256xf32>
    %136 = arith.addf %134, %135 : vector<8x256xf32>
    %137 = vector.extract_strided_slice %136 {offsets = [0, 0], sizes = [8, 64], strides = [1, 1]} : vector<8x256xf32> to vector<8x64xf32>
    %138 = vector.extract_strided_slice %136 {offsets = [0, 64], sizes = [8, 64], strides = [1, 1]} : vector<8x256xf32> to vector<8x64xf32>
    %139 = vector.extract_strided_slice %136 {offsets = [0, 192], sizes = [8, 64], strides = [1, 1]} : vector<8x256xf32> to vector<8x64xf32>
    %140 = vector.extract_strided_slice %129 {offsets = [0, 128], sizes = [8, 64], strides = [1, 1]} : vector<8x256xf32> to vector<8x64xf32>
    %141 = math.tanh %140 : vector<8x64xf32>
    %142 = arith.mulf %138, %120 : vector<8x64xf32>
    %143 = arith.mulf %137, %141 : vector<8x64xf32>
    %144 = arith.addf %142, %143 : vector<8x64xf32>
    %145 = math.tanh %144 : vector<8x64xf32>
    %146 = arith.mulf %139, %145 : vector<8x64xf32>
    %147 = vector.extract_strided_slice %146 {offsets = [0, 0], sizes = [8, 32], strides = [1, 1]} : vector<8x64xf32> to vector<8x32xf32>
    %c32_38 = arith.constant 32 : index
    %c0_39 = arith.constant 0 : index
    %148 = vector.load %arg3[%c32_38, %c0_39] : memref<72x32xf32, #tpu.memory_space<vmem>>, vector<8x32xf32>
    tpu.vector_store %arg3[%c32_38, %c0_39], %147 {strides = array<i32>} : memref<72x32xf32, #tpu.memory_space<vmem>>, vector<8x32xf32>,
    %149 = vector.extract_strided_slice %146 {offsets = [0, 32], sizes = [8, 32], strides = [1, 1]} : vector<8x64xf32> to vector<8x32xf32>
    %c24_40 = arith.constant 24 : index
    %c0_41 = arith.constant 0 : index
    %150 = vector.load %arg4[%c24_40, %c0_41] : memref<72x32xf32, #tpu.memory_space<vmem>>, vector<8x32xf32>
    tpu.vector_store %arg4[%c24_40, %c0_41], %149 {strides = array<i32>} : memref<72x32xf32, #tpu.memory_space<vmem>>, vector<8x32xf32>,
    %151 = vector.extract_strided_slice %34 {offsets = [40, 0], sizes = [8, 256], strides = [1, 1]} : vector<64x256xf32> to vector<8x256xf32>
    %cst_42 = arith.constant dense<0.000000e+00> : vector<8x256xf32>
    %152 = tpu.matmul %146, %35, %cst_42 {dimension_numbers = #tpu.dot_dimension_numbers<[1], [0], [0], [1], [0, 0, 1, 1], [], []>} : vector<8x64xf32>, vector<64x256xf32>, vector<8x256xf32> -> vector<8x256xf32>
    %153 = arith.addf %151, %152 : vector<8x256xf32>
    %cst_43 = arith.constant 5.000000e-01 : f32
    %154 = vector.broadcast %cst_43 : f32 to vector<8x256xf32>
    %155 = arith.mulf %154, %153 : vector<8x256xf32>
    %156 = math.tanh %155 : vector<8x256xf32>
    %cst_44 = arith.constant 5.000000e-01 : f32
    %157 = vector.broadcast %cst_44 : f32 to vector<8x256xf32>
    %158 = arith.mulf %157, %156 : vector<8x256xf32>
    %cst_45 = arith.constant 5.000000e-01 : f32
    %159 = vector.broadcast %cst_45 : f32 to vector<8x256xf32>
    %160 = arith.addf %158, %159 : vector<8x256xf32>
    %161 = vector.extract_strided_slice %160 {offsets = [0, 0], sizes = [8, 64], strides = [1, 1]} : vector<8x256xf32> to vector<8x64xf32>
    %162 = vector.extract_strided_slice %160 {offsets = [0, 64], sizes = [8, 64], strides = [1, 1]} : vector<8x256xf32> to vector<8x64xf32>
    %163 = vector.extract_strided_slice %160 {offsets = [0, 192], sizes = [8, 64], strides = [1, 1]} : vector<8x256xf32> to vector<8x64xf32>
    %164 = vector.extract_strided_slice %153 {offsets = [0, 128], sizes = [8, 64], strides = [1, 1]} : vector<8x256xf32> to vector<8x64xf32>
    %165 = math.tanh %164 : vector<8x64xf32>
    %166 = arith.mulf %162, %144 : vector<8x64xf32>
    %167 = arith.mulf %161, %165 : vector<8x64xf32>
    %168 = arith.addf %166, %167 : vector<8x64xf32>
    %169 = math.tanh %168 : vector<8x64xf32>
    %170 = arith.mulf %163, %169 : vector<8x64xf32>
    %171 = vector.extract_strided_slice %170 {offsets = [0, 0], sizes = [8, 32], strides = [1, 1]} : vector<8x64xf32> to vector<8x32xf32>
    %c40_46 = arith.constant 40 : index
    %c0_47 = arith.constant 0 : index
    %172 = vector.load %arg3[%c40_46, %c0_47] : memref<72x32xf32, #tpu.memory_space<vmem>>, vector<8x32xf32>
    tpu.vector_store %arg3[%c40_46, %c0_47], %171 {strides = array<i32>} : memref<72x32xf32, #tpu.memory_space<vmem>>, vector<8x32xf32>,
    %173 = vector.extract_strided_slice %170 {offsets = [0, 32], sizes = [8, 32], strides = [1, 1]} : vector<8x64xf32> to vector<8x32xf32>
    %c16_48 = arith.constant 16 : index
    %c0_49 = arith.constant 0 : index
    %174 = vector.load %arg4[%c16_48, %c0_49] : memref<72x32xf32, #tpu.memory_space<vmem>>, vector<8x32xf32>
    tpu.vector_store %arg4[%c16_48, %c0_49], %173 {strides = array<i32>} : memref<72x32xf32, #tpu.memory_space<vmem>>, vector<8x32xf32>,
    %175 = vector.extract_strided_slice %34 {offsets = [48, 0], sizes = [8, 256], strides = [1, 1]} : vector<64x256xf32> to vector<8x256xf32>
    %cst_50 = arith.constant dense<0.000000e+00> : vector<8x256xf32>
    %176 = tpu.matmul %170, %35, %cst_50 {dimension_numbers = #tpu.dot_dimension_numbers<[1], [0], [0], [1], [0, 0, 1, 1], [], []>} : vector<8x64xf32>, vector<64x256xf32>, vector<8x256xf32> -> vector<8x256xf32>
    %177 = arith.addf %175, %176 : vector<8x256xf32>
    %cst_51 = arith.constant 5.000000e-01 : f32
    %178 = vector.broadcast %cst_51 : f32 to vector<8x256xf32>
    %179 = arith.mulf %178, %177 : vector<8x256xf32>
    %180 = math.tanh %179 : vector<8x256xf32>
    %cst_52 = arith.constant 5.000000e-01 : f32
    %181 = vector.broadcast %cst_52 : f32 to vector<8x256xf32>
    %182 = arith.mulf %181, %180 : vector<8x256xf32>
    %cst_53 = arith.constant 5.000000e-01 : f32
    %183 = vector.broadcast %cst_53 : f32 to vector<8x256xf32>
    %184 = arith.addf %182, %183 : vector<8x256xf32>
    %185 = vector.extract_strided_slice %184 {offsets = [0, 0], sizes = [8, 64], strides = [1, 1]} : vector<8x256xf32> to vector<8x64xf32>
    %186 = vector.extract_strided_slice %184 {offsets = [0, 64], sizes = [8, 64], strides = [1, 1]} : vector<8x256xf32> to vector<8x64xf32>
    %187 = vector.extract_strided_slice %184 {offsets = [0, 192], sizes = [8, 64], strides = [1, 1]} : vector<8x256xf32> to vector<8x64xf32>
    %188 = vector.extract_strided_slice %177 {offsets = [0, 128], sizes = [8, 64], strides = [1, 1]} : vector<8x256xf32> to vector<8x64xf32>
    %189 = math.tanh %188 : vector<8x64xf32>
    %190 = arith.mulf %186, %168 : vector<8x64xf32>
    %191 = arith.mulf %185, %189 : vector<8x64xf32>
    %192 = arith.addf %190, %191 : vector<8x64xf32>
    %193 = math.tanh %192 : vector<8x64xf32>
    %194 = arith.mulf %187, %193 : vector<8x64xf32>
    %195 = vector.extract_strided_slice %194 {offsets = [0, 0], sizes = [8, 32], strides = [1, 1]} : vector<8x64xf32> to vector<8x32xf32>
    %c48_54 = arith.constant 48 : index
    %c0_55 = arith.constant 0 : index
    %196 = vector.load %arg3[%c48_54, %c0_55] : memref<72x32xf32, #tpu.memory_space<vmem>>, vector<8x32xf32>
    tpu.vector_store %arg3[%c48_54, %c0_55], %195 {strides = array<i32>} : memref<72x32xf32, #tpu.memory_space<vmem>>, vector<8x32xf32>,
    %197 = vector.extract_strided_slice %194 {offsets = [0, 32], sizes = [8, 32], strides = [1, 1]} : vector<8x64xf32> to vector<8x32xf32>
    %c8_56 = arith.constant 8 : index
    %c0_57 = arith.constant 0 : index
    %198 = vector.load %arg4[%c8_56, %c0_57] : memref<72x32xf32, #tpu.memory_space<vmem>>, vector<8x32xf32>
    tpu.vector_store %arg4[%c8_56, %c0_57], %197 {strides = array<i32>} : memref<72x32xf32, #tpu.memory_space<vmem>>, vector<8x32xf32>,
    %199 = vector.extract_strided_slice %34 {offsets = [56, 0], sizes = [8, 256], strides = [1, 1]} : vector<64x256xf32> to vector<8x256xf32>
    %cst_58 = arith.constant dense<0.000000e+00> : vector<8x256xf32>
    %200 = tpu.matmul %194, %35, %cst_58 {dimension_numbers = #tpu.dot_dimension_numbers<[1], [0], [0], [1], [0, 0, 1, 1], [], []>} : vector<8x64xf32>, vector<64x256xf32>, vector<8x256xf32> -> vector<8x256xf32>
    %201 = arith.addf %199, %200 : vector<8x256xf32>
    %cst_59 = arith.constant 5.000000e-01 : f32
    %202 = vector.broadcast %cst_59 : f32 to vector<8x256xf32>
    %203 = arith.mulf %202, %201 : vector<8x256xf32>
    %204 = math.tanh %203 : vector<8x256xf32>
    %cst_60 = arith.constant 5.000000e-01 : f32
    %205 = vector.broadcast %cst_60 : f32 to vector<8x256xf32>
    %206 = arith.mulf %205, %204 : vector<8x256xf32>
    %cst_61 = arith.constant 5.000000e-01 : f32
    %207 = vector.broadcast %cst_61 : f32 to vector<8x256xf32>
    %208 = arith.addf %206, %207 : vector<8x256xf32>
    %209 = vector.extract_strided_slice %208 {offsets = [0, 0], sizes = [8, 64], strides = [1, 1]} : vector<8x256xf32> to vector<8x64xf32>
    %210 = vector.extract_strided_slice %208 {offsets = [0, 64], sizes = [8, 64], strides = [1, 1]} : vector<8x256xf32> to vector<8x64xf32>
    %211 = vector.extract_strided_slice %208 {offsets = [0, 192], sizes = [8, 64], strides = [1, 1]} : vector<8x256xf32> to vector<8x64xf32>
    %212 = vector.extract_strided_slice %201 {offsets = [0, 128], sizes = [8, 64], strides = [1, 1]} : vector<8x256xf32> to vector<8x64xf32>
    %213 = math.tanh %212 : vector<8x64xf32>
    %214 = arith.mulf %210, %192 : vector<8x64xf32>
    %215 = arith.mulf %209, %213 : vector<8x64xf32>
    %216 = arith.addf %214, %215 : vector<8x64xf32>
    %217 = math.tanh %216 : vector<8x64xf32>
    %218 = arith.mulf %211, %217 : vector<8x64xf32>
    %219 = vector.extract_strided_slice %218 {offsets = [0, 0], sizes = [8, 32], strides = [1, 1]} : vector<8x64xf32> to vector<8x32xf32>
    %c56_62 = arith.constant 56 : index
    %c0_63 = arith.constant 0 : index
    %220 = vector.load %arg3[%c56_62, %c0_63] : memref<72x32xf32, #tpu.memory_space<vmem>>, vector<8x32xf32>
    tpu.vector_store %arg3[%c56_62, %c0_63], %219 {strides = array<i32>} : memref<72x32xf32, #tpu.memory_space<vmem>>, vector<8x32xf32>,
    %221 = vector.extract_strided_slice %218 {offsets = [0, 32], sizes = [8, 32], strides = [1, 1]} : vector<8x64xf32> to vector<8x32xf32>
    %c0_64 = arith.constant 0 : index
    %c0_65 = arith.constant 0 : index
    %222 = vector.load %arg4[%c0_64, %c0_65] : memref<72x32xf32, #tpu.memory_space<vmem>>, vector<8x32xf32>
    tpu.vector_store %arg4[%c0_64, %c0_65], %221 {strides = array<i32>} : memref<72x32xf32, #tpu.memory_space<vmem>>, vector<8x32xf32>,
    %223 = vector.extract_strided_slice %0 {offsets = [56, 0], sizes = [8, 2], strides = [1, 1]} : vector<64x4xf32> to vector<8x2xf32>
    %c16_66 = arith.constant 16 : index
    %c0_67 = arith.constant 0 : index
    %224 = vector.load %arg1[%c16_66, %c0_67] : memref<360x256xf32, #tpu.memory_space<vmem>>, vector<2x16xf32>
    %c24_68 = arith.constant 24 : index
    %c0_69 = arith.constant 0 : index
    %225 = vector.load %arg1[%c24_68, %c0_69] : memref<360x256xf32, #tpu.memory_space<vmem>>, vector<1x16xf32>
    %226 = vector.extract_strided_slice %223 {offsets = [0, 0], sizes = [8, 1], strides = [1, 1]} : vector<8x2xf32> to vector<8x1xf32>
    %227 = vector.extract_strided_slice %224 {offsets = [0, 0], sizes = [1, 16], strides = [1, 1]} : vector<2x16xf32> to vector<1x16xf32>
    %228 = vector.broadcast %226 : vector<8x1xf32> to vector<8x16xf32>
    %229 = vector.broadcast %227 : vector<1x16xf32> to vector<8x16xf32>
    %230 = arith.mulf %228, %229 : vector<8x16xf32>
    %231 = vector.extract_strided_slice %223 {offsets = [0, 1], sizes = [8, 1], strides = [1, 1]} : vector<8x2xf32> to vector<8x1xf32>
    %232 = vector.extract_strided_slice %224 {offsets = [1, 0], sizes = [1, 16], strides = [1, 1]} : vector<2x16xf32> to vector<1x16xf32>
    %233 = vector.broadcast %231 : vector<8x1xf32> to vector<8x16xf32>
    %234 = vector.broadcast %232 : vector<1x16xf32> to vector<8x16xf32>
    %235 = arith.mulf %233, %234 : vector<8x16xf32>
    %236 = arith.addf %230, %235 : vector<8x16xf32>
    %237 = vector.broadcast %225 : vector<1x16xf32> to vector<8x16xf32>
    %238 = arith.addf %236, %237 : vector<8x16xf32>
    %cst_70 = arith.constant 0.000000e+00 : f32
    %239 = vector.broadcast %cst_70 : f32 to vector<8x16xf32>
    %240 = arith.maximumf %238, %239 : vector<8x16xf32>
    %c136 = arith.constant 136 : index
    %c0_71 = arith.constant 0 : index
    %241 = vector.load %arg1[%c136, %c0_71] : memref<360x256xf32, #tpu.memory_space<vmem>>, vector<16x256xf32>
    %cst_72 = arith.constant dense<0.000000e+00> : vector<8x256xf32>
    %242 = tpu.matmul %240, %241, %cst_72 {dimension_numbers = #tpu.dot_dimension_numbers<[1], [0], [0], [1], [0, 0, 1, 1], [], []>} : vector<8x16xf32>, vector<16x256xf32>, vector<8x256xf32> -> vector<8x256xf32>
    %c152 = arith.constant 152 : index
    %c0_73 = arith.constant 0 : index
    %243 = vector.load %arg1[%c152, %c0_73] : memref<360x256xf32, #tpu.memory_space<vmem>>, vector<1x256xf32>
    %244 = vector.broadcast %243 : vector<1x256xf32> to vector<8x256xf32>
    %245 = arith.addf %242, %244 : vector<8x256xf32>
    %cst_74 = arith.constant 5.000000e-01 : f32
    %246 = vector.broadcast %cst_74 : f32 to vector<8x256xf32>
    %247 = arith.mulf %246, %245 : vector<8x256xf32>
    %248 = math.tanh %247 : vector<8x256xf32>
    %cst_75 = arith.constant 5.000000e-01 : f32
    %249 = vector.broadcast %cst_75 : f32 to vector<8x256xf32>
    %250 = arith.mulf %249, %248 : vector<8x256xf32>
    %cst_76 = arith.constant 5.000000e-01 : f32
    %251 = vector.broadcast %cst_76 : f32 to vector<8x256xf32>
    %252 = arith.addf %250, %251 : vector<8x256xf32>
    %253 = vector.extract_strided_slice %252 {offsets = [0, 0], sizes = [8, 64], strides = [1, 1]} : vector<8x256xf32> to vector<8x64xf32>
    %254 = vector.extract_strided_slice %245 {offsets = [0, 128], sizes = [8, 64], strides = [1, 1]} : vector<8x256xf32> to vector<8x64xf32>
    %255 = math.tanh %254 : vector<8x64xf32>
    %256 = arith.mulf %253, %255 : vector<8x64xf32>
    %257 = vector.extract_strided_slice %252 {offsets = [0, 192], sizes = [8, 64], strides = [1, 1]} : vector<8x256xf32> to vector<8x64xf32>
    %258 = math.tanh %256 : vector<8x64xf32>
    %259 = arith.mulf %257, %258 : vector<8x64xf32>
    %260 = vector.extract_strided_slice %259 {offsets = [0, 0], sizes = [8, 32], strides = [1, 1]} : vector<8x64xf32> to vector<8x32xf32>
    %c64_77 = arith.constant 64 : index
    %c0_78 = arith.constant 0 : index
    %261 = vector.load %arg3[%c64_77, %c0_78] : memref<72x32xf32, #tpu.memory_space<vmem>>, vector<8x32xf32>
    tpu.vector_store %arg3[%c64_77, %c0_78], %260 {strides = array<i32>} : memref<72x32xf32, #tpu.memory_space<vmem>>, vector<8x32xf32>,
    %262 = vector.extract_strided_slice %259 {offsets = [0, 32], sizes = [8, 32], strides = [1, 1]} : vector<8x64xf32> to vector<8x32xf32>
    %c64_79 = arith.constant 64 : index
    %c0_80 = arith.constant 0 : index
    %263 = vector.load %arg4[%c64_79, %c0_80] : memref<72x32xf32, #tpu.memory_space<vmem>>, vector<8x32xf32>
    tpu.vector_store %arg4[%c64_79, %c0_80], %262 {strides = array<i32>} : memref<72x32xf32, #tpu.memory_space<vmem>>, vector<8x32xf32>,
    %c0_81 = arith.constant 0 : index
    %c0_82 = arith.constant 0 : index
    %264 = vector.load %arg3[%c0_81, %c0_82] : memref<72x32xf32, #tpu.memory_space<vmem>>, vector<72x32xf32>
    %c0_83 = arith.constant 0 : index
    %c0_84 = arith.constant 0 : index
    %265 = vector.load %arg4[%c0_83, %c0_84] : memref<72x32xf32, #tpu.memory_space<vmem>>, vector<72x32xf32>
    %c160 = arith.constant 160 : index
    %c0_85 = arith.constant 0 : index
    %266 = vector.load %arg1[%c160, %c0_85] : memref<360x256xf32, #tpu.memory_space<vmem>>, vector<32x128xf32>
    %cst_86 = arith.constant dense<0.000000e+00> : vector<72x128xf32>
    %267 = tpu.matmul %264, %266, %cst_86 {dimension_numbers = #tpu.dot_dimension_numbers<[1], [0], [0], [1], [0, 0, 1, 1], [], []>} : vector<72x32xf32>, vector<32x128xf32>, vector<72x128xf32> -> vector<72x128xf32>
    %c192 = arith.constant 192 : index
    %c0_87 = arith.constant 0 : index
    %268 = vector.load %arg1[%c192, %c0_87] : memref<360x256xf32, #tpu.memory_space<vmem>>, vector<32x128xf32>
    %cst_88 = arith.constant dense<0.000000e+00> : vector<72x128xf32>
    %269 = tpu.matmul %265, %268, %cst_88 {dimension_numbers = #tpu.dot_dimension_numbers<[1], [0], [0], [1], [0, 0, 1, 1], [], []>} : vector<72x32xf32>, vector<32x128xf32>, vector<72x128xf32> -> vector<72x128xf32>
    %270 = arith.addf %267, %269 : vector<72x128xf32>
    %c288 = arith.constant 288 : index
    %c0_89 = arith.constant 0 : index
    %271 = vector.load %arg1[%c288, %c0_89] : memref<360x256xf32, #tpu.memory_space<vmem>>, vector<1x128xf32>
    %272 = vector.broadcast %271 : vector<1x128xf32> to vector<72x128xf32>
    %273 = arith.addf %270, %272 : vector<72x128xf32>
    %c224 = arith.constant 224 : index
    %c0_90 = arith.constant 0 : index
    %274 = vector.load %arg1[%c224, %c0_90] : memref<360x256xf32, #tpu.memory_space<vmem>>, vector<32x128xf32>
    %cst_91 = arith.constant dense<0.000000e+00> : vector<72x128xf32>
    %275 = tpu.matmul %264, %274, %cst_91 {dimension_numbers = #tpu.dot_dimension_numbers<[1], [0], [0], [1], [0, 0, 1, 1], [], []>} : vector<72x32xf32>, vector<32x128xf32>, vector<72x128xf32> -> vector<72x128xf32>
    %c256 = arith.constant 256 : index
    %c0_92 = arith.constant 0 : index
    %276 = vector.load %arg1[%c256, %c0_92] : memref<360x256xf32, #tpu.memory_space<vmem>>, vector<32x128xf32>
    %cst_93 = arith.constant dense<0.000000e+00> : vector<72x128xf32>
    %277 = tpu.matmul %265, %276, %cst_93 {dimension_numbers = #tpu.dot_dimension_numbers<[1], [0], [0], [1], [0, 0, 1, 1], [], []>} : vector<72x32xf32>, vector<32x128xf32>, vector<72x128xf32> -> vector<72x128xf32>
    %278 = arith.addf %275, %277 : vector<72x128xf32>
    %c296 = arith.constant 296 : index
    %c0_94 = arith.constant 0 : index
    %279 = vector.load %arg1[%c296, %c0_94] : memref<360x256xf32, #tpu.memory_space<vmem>>, vector<32x128xf32>
    %c328 = arith.constant 328 : index
    %c0_95 = arith.constant 0 : index
    %280 = vector.load %arg1[%c328, %c0_95] : memref<360x256xf32, #tpu.memory_space<vmem>>, vector<18x32xf32>
    %c352 = arith.constant 352 : index
    %c0_96 = arith.constant 0 : index
    %281 = vector.load %arg1[%c352, %c0_96] : memref<360x256xf32, #tpu.memory_space<vmem>>, vector<1x2xf32>
    %cst_97 = arith.constant 0.000000e+00 : f32
    %282 = vector.broadcast %cst_97 : f32 to vector<8x32xf32>
    %cst_98 = arith.constant 0.000000e+00 : f32
    %283 = vector.broadcast %cst_98 : f32 to vector<8x32xf32>
    %284 = vector.extract_strided_slice %273 {offsets = [0, 0], sizes = [8, 128], strides = [1, 1]} : vector<72x128xf32> to vector<8x128xf32>
    %285 = vector.extract_strided_slice %278 {offsets = [64, 0], sizes = [8, 128], strides = [1, 1]} : vector<72x128xf32> to vector<8x128xf32>
    %286 = arith.addf %284, %285 : vector<8x128xf32>
    %cst_99 = arith.constant 5.000000e-01 : f32
    %287 = vector.broadcast %cst_99 : f32 to vector<8x128xf32>
    %288 = arith.mulf %287, %286 : vector<8x128xf32>
    %289 = math.tanh %288 : vector<8x128xf32>
    %cst_100 = arith.constant 5.000000e-01 : f32
    %290 = vector.broadcast %cst_100 : f32 to vector<8x128xf32>
    %291 = arith.mulf %290, %289 : vector<8x128xf32>
    %cst_101 = arith.constant 5.000000e-01 : f32
    %292 = vector.broadcast %cst_101 : f32 to vector<8x128xf32>
    %293 = arith.addf %291, %292 : vector<8x128xf32>
    %294 = vector.extract_strided_slice %293 {offsets = [0, 0], sizes = [8, 32], strides = [1, 1]} : vector<8x128xf32> to vector<8x32xf32>
    %295 = vector.extract_strided_slice %293 {offsets = [0, 96], sizes = [8, 32], strides = [1, 1]} : vector<8x128xf32> to vector<8x32xf32>
    %296 = vector.extract_strided_slice %286 {offsets = [0, 64], sizes = [8, 32], strides = [1, 1]} : vector<8x128xf32> to vector<8x32xf32>
    %297 = math.tanh %296 : vector<8x32xf32>
    %298 = arith.mulf %294, %297 : vector<8x32xf32>
    %299 = math.tanh %298 : vector<8x32xf32>
    %300 = arith.mulf %295, %299 : vector<8x32xf32>
    %301 = vector.extract_strided_slice %280 {offsets = [0, 0], sizes = [1, 32], strides = [1, 1]} : vector<18x32xf32> to vector<1x32xf32>
    %302 = vector.broadcast %301 : vector<1x32xf32> to vector<8x32xf32>
    %303 = arith.mulf %300, %302 : vector<8x32xf32>
    %304 = arith.addf %282, %303 : vector<8x32xf32>
    %305 = vector.extract_strided_slice %280 {offsets = [1, 0], sizes = [1, 32], strides = [1, 1]} : vector<18x32xf32> to vector<1x32xf32>
    %306 = vector.broadcast %305 : vector<1x32xf32> to vector<8x32xf32>
    %307 = arith.mulf %300, %306 : vector<8x32xf32>
    %308 = arith.addf %283, %307 : vector<8x32xf32>
    %309 = vector.extract_strided_slice %273 {offsets = [8, 0], sizes = [8, 128], strides = [1, 1]} : vector<72x128xf32> to vector<8x128xf32>
    %310 = vector.extract_strided_slice %278 {offsets = [56, 0], sizes = [8, 128], strides = [1, 1]} : vector<72x128xf32> to vector<8x128xf32>
    %311 = arith.addf %309, %310 : vector<8x128xf32>
    %cst_102 = arith.constant dense<0.000000e+00> : vector<8x128xf32>
    %312 = tpu.matmul %300, %279, %cst_102 {dimension_numbers = #tpu.dot_dimension_numbers<[1], [0], [0], [1], [0, 0, 1, 1], [], []>} : vector<8x32xf32>, vector<32x128xf32>, vector<8x128xf32> -> vector<8x128xf32>
    %313 = arith.addf %311, %312 : vector<8x128xf32>
    %cst_103 = arith.constant 5.000000e-01 : f32
    %314 = vector.broadcast %cst_103 : f32 to vector<8x128xf32>
    %315 = arith.mulf %314, %313 : vector<8x128xf32>
    %316 = math.tanh %315 : vector<8x128xf32>
    %cst_104 = arith.constant 5.000000e-01 : f32
    %317 = vector.broadcast %cst_104 : f32 to vector<8x128xf32>
    %318 = arith.mulf %317, %316 : vector<8x128xf32>
    %cst_105 = arith.constant 5.000000e-01 : f32
    %319 = vector.broadcast %cst_105 : f32 to vector<8x128xf32>
    %320 = arith.addf %318, %319 : vector<8x128xf32>
    %321 = vector.extract_strided_slice %320 {offsets = [0, 0], sizes = [8, 32], strides = [1, 1]} : vector<8x128xf32> to vector<8x32xf32>
    %322 = vector.extract_strided_slice %320 {offsets = [0, 32], sizes = [8, 32], strides = [1, 1]} : vector<8x128xf32> to vector<8x32xf32>
    %323 = vector.extract_strided_slice %320 {offsets = [0, 96], sizes = [8, 32], strides = [1, 1]} : vector<8x128xf32> to vector<8x32xf32>
    %324 = vector.extract_strided_slice %313 {offsets = [0, 64], sizes = [8, 32], strides = [1, 1]} : vector<8x128xf32> to vector<8x32xf32>
    %325 = math.tanh %324 : vector<8x32xf32>
    %326 = arith.mulf %322, %298 : vector<8x32xf32>
    %327 = arith.mulf %321, %325 : vector<8x32xf32>
    %328 = arith.addf %326, %327 : vector<8x32xf32>
    %329 = math.tanh %328 : vector<8x32xf32>
    %330 = arith.mulf %323, %329 : vector<8x32xf32>
    %331 = vector.extract_strided_slice %280 {offsets = [2, 0], sizes = [1, 32], strides = [1, 1]} : vector<18x32xf32> to vector<1x32xf32>
    %332 = vector.broadcast %331 : vector<1x32xf32> to vector<8x32xf32>
    %333 = arith.mulf %330, %332 : vector<8x32xf32>
    %334 = arith.addf %304, %333 : vector<8x32xf32>
    %335 = vector.extract_strided_slice %280 {offsets = [3, 0], sizes = [1, 32], strides = [1, 1]} : vector<18x32xf32> to vector<1x32xf32>
    %336 = vector.broadcast %335 : vector<1x32xf32> to vector<8x32xf32>
    %337 = arith.mulf %330, %336 : vector<8x32xf32>
    %338 = arith.addf %308, %337 : vector<8x32xf32>
    %339 = vector.extract_strided_slice %273 {offsets = [16, 0], sizes = [8, 128], strides = [1, 1]} : vector<72x128xf32> to vector<8x128xf32>
    %340 = vector.extract_strided_slice %278 {offsets = [48, 0], sizes = [8, 128], strides = [1, 1]} : vector<72x128xf32> to vector<8x128xf32>
    %341 = arith.addf %339, %340 : vector<8x128xf32>
    %cst_106 = arith.constant dense<0.000000e+00> : vector<8x128xf32>
    %342 = tpu.matmul %330, %279, %cst_106 {dimension_numbers = #tpu.dot_dimension_numbers<[1], [0], [0], [1], [0, 0, 1, 1], [], []>} : vector<8x32xf32>, vector<32x128xf32>, vector<8x128xf32> -> vector<8x128xf32>
    %343 = arith.addf %341, %342 : vector<8x128xf32>
    %cst_107 = arith.constant 5.000000e-01 : f32
    %344 = vector.broadcast %cst_107 : f32 to vector<8x128xf32>
    %345 = arith.mulf %344, %343 : vector<8x128xf32>
    %346 = math.tanh %345 : vector<8x128xf32>
    %cst_108 = arith.constant 5.000000e-01 : f32
    %347 = vector.broadcast %cst_108 : f32 to vector<8x128xf32>
    %348 = arith.mulf %347, %346 : vector<8x128xf32>
    %cst_109 = arith.constant 5.000000e-01 : f32
    %349 = vector.broadcast %cst_109 : f32 to vector<8x128xf32>
    %350 = arith.addf %348, %349 : vector<8x128xf32>
    %351 = vector.extract_strided_slice %350 {offsets = [0, 0], sizes = [8, 32], strides = [1, 1]} : vector<8x128xf32> to vector<8x32xf32>
    %352 = vector.extract_strided_slice %350 {offsets = [0, 32], sizes = [8, 32], strides = [1, 1]} : vector<8x128xf32> to vector<8x32xf32>
    %353 = vector.extract_strided_slice %350 {offsets = [0, 96], sizes = [8, 32], strides = [1, 1]} : vector<8x128xf32> to vector<8x32xf32>
    %354 = vector.extract_strided_slice %343 {offsets = [0, 64], sizes = [8, 32], strides = [1, 1]} : vector<8x128xf32> to vector<8x32xf32>
    %355 = math.tanh %354 : vector<8x32xf32>
    %356 = arith.mulf %352, %328 : vector<8x32xf32>
    %357 = arith.mulf %351, %355 : vector<8x32xf32>
    %358 = arith.addf %356, %357 : vector<8x32xf32>
    %359 = math.tanh %358 : vector<8x32xf32>
    %360 = arith.mulf %353, %359 : vector<8x32xf32>
    %361 = vector.extract_strided_slice %280 {offsets = [4, 0], sizes = [1, 32], strides = [1, 1]} : vector<18x32xf32> to vector<1x32xf32>
    %362 = vector.broadcast %361 : vector<1x32xf32> to vector<8x32xf32>
    %363 = arith.mulf %360, %362 : vector<8x32xf32>
    %364 = arith.addf %334, %363 : vector<8x32xf32>
    %365 = vector.extract_strided_slice %280 {offsets = [5, 0], sizes = [1, 32], strides = [1, 1]} : vector<18x32xf32> to vector<1x32xf32>
    %366 = vector.broadcast %365 : vector<1x32xf32> to vector<8x32xf32>
    %367 = arith.mulf %360, %366 : vector<8x32xf32>
    %368 = arith.addf %338, %367 : vector<8x32xf32>
    %369 = vector.extract_strided_slice %273 {offsets = [24, 0], sizes = [8, 128], strides = [1, 1]} : vector<72x128xf32> to vector<8x128xf32>
    %370 = vector.extract_strided_slice %278 {offsets = [40, 0], sizes = [8, 128], strides = [1, 1]} : vector<72x128xf32> to vector<8x128xf32>
    %371 = arith.addf %369, %370 : vector<8x128xf32>
    %cst_110 = arith.constant dense<0.000000e+00> : vector<8x128xf32>
    %372 = tpu.matmul %360, %279, %cst_110 {dimension_numbers = #tpu.dot_dimension_numbers<[1], [0], [0], [1], [0, 0, 1, 1], [], []>} : vector<8x32xf32>, vector<32x128xf32>, vector<8x128xf32> -> vector<8x128xf32>
    %373 = arith.addf %371, %372 : vector<8x128xf32>
    %cst_111 = arith.constant 5.000000e-01 : f32
    %374 = vector.broadcast %cst_111 : f32 to vector<8x128xf32>
    %375 = arith.mulf %374, %373 : vector<8x128xf32>
    %376 = math.tanh %375 : vector<8x128xf32>
    %cst_112 = arith.constant 5.000000e-01 : f32
    %377 = vector.broadcast %cst_112 : f32 to vector<8x128xf32>
    %378 = arith.mulf %377, %376 : vector<8x128xf32>
    %cst_113 = arith.constant 5.000000e-01 : f32
    %379 = vector.broadcast %cst_113 : f32 to vector<8x128xf32>
    %380 = arith.addf %378, %379 : vector<8x128xf32>
    %381 = vector.extract_strided_slice %380 {offsets = [0, 0], sizes = [8, 32], strides = [1, 1]} : vector<8x128xf32> to vector<8x32xf32>
    %382 = vector.extract_strided_slice %380 {offsets = [0, 32], sizes = [8, 32], strides = [1, 1]} : vector<8x128xf32> to vector<8x32xf32>
    %383 = vector.extract_strided_slice %380 {offsets = [0, 96], sizes = [8, 32], strides = [1, 1]} : vector<8x128xf32> to vector<8x32xf32>
    %384 = vector.extract_strided_slice %373 {offsets = [0, 64], sizes = [8, 32], strides = [1, 1]} : vector<8x128xf32> to vector<8x32xf32>
    %385 = math.tanh %384 : vector<8x32xf32>
    %386 = arith.mulf %382, %358 : vector<8x32xf32>
    %387 = arith.mulf %381, %385 : vector<8x32xf32>
    %388 = arith.addf %386, %387 : vector<8x32xf32>
    %389 = math.tanh %388 : vector<8x32xf32>
    %390 = arith.mulf %383, %389 : vector<8x32xf32>
    %391 = vector.extract_strided_slice %280 {offsets = [6, 0], sizes = [1, 32], strides = [1, 1]} : vector<18x32xf32> to vector<1x32xf32>
    %392 = vector.broadcast %391 : vector<1x32xf32> to vector<8x32xf32>
    %393 = arith.mulf %390, %392 : vector<8x32xf32>
    %394 = arith.addf %364, %393 : vector<8x32xf32>
    %395 = vector.extract_strided_slice %280 {offsets = [7, 0], sizes = [1, 32], strides = [1, 1]} : vector<18x32xf32> to vector<1x32xf32>
    %396 = vector.broadcast %395 : vector<1x32xf32> to vector<8x32xf32>
    %397 = arith.mulf %390, %396 : vector<8x32xf32>
    %398 = arith.addf %368, %397 : vector<8x32xf32>
    %399 = vector.extract_strided_slice %273 {offsets = [32, 0], sizes = [8, 128], strides = [1, 1]} : vector<72x128xf32> to vector<8x128xf32>
    %400 = vector.extract_strided_slice %278 {offsets = [32, 0], sizes = [8, 128], strides = [1, 1]} : vector<72x128xf32> to vector<8x128xf32>
    %401 = arith.addf %399, %400 : vector<8x128xf32>
    %cst_114 = arith.constant dense<0.000000e+00> : vector<8x128xf32>
    %402 = tpu.matmul %390, %279, %cst_114 {dimension_numbers = #tpu.dot_dimension_numbers<[1], [0], [0], [1], [0, 0, 1, 1], [], []>} : vector<8x32xf32>, vector<32x128xf32>, vector<8x128xf32> -> vector<8x128xf32>
    %403 = arith.addf %401, %402 : vector<8x128xf32>
    %cst_115 = arith.constant 5.000000e-01 : f32
    %404 = vector.broadcast %cst_115 : f32 to vector<8x128xf32>
    %405 = arith.mulf %404, %403 : vector<8x128xf32>
    %406 = math.tanh %405 : vector<8x128xf32>
    %cst_116 = arith.constant 5.000000e-01 : f32
    %407 = vector.broadcast %cst_116 : f32 to vector<8x128xf32>
    %408 = arith.mulf %407, %406 : vector<8x128xf32>
    %cst_117 = arith.constant 5.000000e-01 : f32
    %409 = vector.broadcast %cst_117 : f32 to vector<8x128xf32>
    %410 = arith.addf %408, %409 : vector<8x128xf32>
    %411 = vector.extract_strided_slice %410 {offsets = [0, 0], sizes = [8, 32], strides = [1, 1]} : vector<8x128xf32> to vector<8x32xf32>
    %412 = vector.extract_strided_slice %410 {offsets = [0, 32], sizes = [8, 32], strides = [1, 1]} : vector<8x128xf32> to vector<8x32xf32>
    %413 = vector.extract_strided_slice %410 {offsets = [0, 96], sizes = [8, 32], strides = [1, 1]} : vector<8x128xf32> to vector<8x32xf32>
    %414 = vector.extract_strided_slice %403 {offsets = [0, 64], sizes = [8, 32], strides = [1, 1]} : vector<8x128xf32> to vector<8x32xf32>
    %415 = math.tanh %414 : vector<8x32xf32>
    %416 = arith.mulf %412, %388 : vector<8x32xf32>
    %417 = arith.mulf %411, %415 : vector<8x32xf32>
    %418 = arith.addf %416, %417 : vector<8x32xf32>
    %419 = math.tanh %418 : vector<8x32xf32>
    %420 = arith.mulf %413, %419 : vector<8x32xf32>
    %421 = vector.extract_strided_slice %280 {offsets = [8, 0], sizes = [1, 32], strides = [1, 1]} : vector<18x32xf32> to vector<1x32xf32>
    %422 = vector.broadcast %421 : vector<1x32xf32> to vector<8x32xf32>
    %423 = arith.mulf %420, %422 : vector<8x32xf32>
    %424 = arith.addf %394, %423 : vector<8x32xf32>
    %425 = vector.extract_strided_slice %280 {offsets = [9, 0], sizes = [1, 32], strides = [1, 1]} : vector<18x32xf32> to vector<1x32xf32>
    %426 = vector.broadcast %425 : vector<1x32xf32> to vector<8x32xf32>
    %427 = arith.mulf %420, %426 : vector<8x32xf32>
    %428 = arith.addf %398, %427 : vector<8x32xf32>
    %429 = vector.extract_strided_slice %273 {offsets = [40, 0], sizes = [8, 128], strides = [1, 1]} : vector<72x128xf32> to vector<8x128xf32>
    %430 = vector.extract_strided_slice %278 {offsets = [24, 0], sizes = [8, 128], strides = [1, 1]} : vector<72x128xf32> to vector<8x128xf32>
    %431 = arith.addf %429, %430 : vector<8x128xf32>
    %cst_118 = arith.constant dense<0.000000e+00> : vector<8x128xf32>
    %432 = tpu.matmul %420, %279, %cst_118 {dimension_numbers = #tpu.dot_dimension_numbers<[1], [0], [0], [1], [0, 0, 1, 1], [], []>} : vector<8x32xf32>, vector<32x128xf32>, vector<8x128xf32> -> vector<8x128xf32>
    %433 = arith.addf %431, %432 : vector<8x128xf32>
    %cst_119 = arith.constant 5.000000e-01 : f32
    %434 = vector.broadcast %cst_119 : f32 to vector<8x128xf32>
    %435 = arith.mulf %434, %433 : vector<8x128xf32>
    %436 = math.tanh %435 : vector<8x128xf32>
    %cst_120 = arith.constant 5.000000e-01 : f32
    %437 = vector.broadcast %cst_120 : f32 to vector<8x128xf32>
    %438 = arith.mulf %437, %436 : vector<8x128xf32>
    %cst_121 = arith.constant 5.000000e-01 : f32
    %439 = vector.broadcast %cst_121 : f32 to vector<8x128xf32>
    %440 = arith.addf %438, %439 : vector<8x128xf32>
    %441 = vector.extract_strided_slice %440 {offsets = [0, 0], sizes = [8, 32], strides = [1, 1]} : vector<8x128xf32> to vector<8x32xf32>
    %442 = vector.extract_strided_slice %440 {offsets = [0, 32], sizes = [8, 32], strides = [1, 1]} : vector<8x128xf32> to vector<8x32xf32>
    %443 = vector.extract_strided_slice %440 {offsets = [0, 96], sizes = [8, 32], strides = [1, 1]} : vector<8x128xf32> to vector<8x32xf32>
    %444 = vector.extract_strided_slice %433 {offsets = [0, 64], sizes = [8, 32], strides = [1, 1]} : vector<8x128xf32> to vector<8x32xf32>
    %445 = math.tanh %444 : vector<8x32xf32>
    %446 = arith.mulf %442, %418 : vector<8x32xf32>
    %447 = arith.mulf %441, %445 : vector<8x32xf32>
    %448 = arith.addf %446, %447 : vector<8x32xf32>
    %449 = math.tanh %448 : vector<8x32xf32>
    %450 = arith.mulf %443, %449 : vector<8x32xf32>
    %451 = vector.extract_strided_slice %280 {offsets = [10, 0], sizes = [1, 32], strides = [1, 1]} : vector<18x32xf32> to vector<1x32xf32>
    %452 = vector.broadcast %451 : vector<1x32xf32> to vector<8x32xf32>
    %453 = arith.mulf %450, %452 : vector<8x32xf32>
    %454 = arith.addf %424, %453 : vector<8x32xf32>
    %455 = vector.extract_strided_slice %280 {offsets = [11, 0], sizes = [1, 32], strides = [1, 1]} : vector<18x32xf32> to vector<1x32xf32>
    %456 = vector.broadcast %455 : vector<1x32xf32> to vector<8x32xf32>
    %457 = arith.mulf %450, %456 : vector<8x32xf32>
    %458 = arith.addf %428, %457 : vector<8x32xf32>
    %459 = vector.extract_strided_slice %273 {offsets = [48, 0], sizes = [8, 128], strides = [1, 1]} : vector<72x128xf32> to vector<8x128xf32>
    %460 = vector.extract_strided_slice %278 {offsets = [16, 0], sizes = [8, 128], strides = [1, 1]} : vector<72x128xf32> to vector<8x128xf32>
    %461 = arith.addf %459, %460 : vector<8x128xf32>
    %cst_122 = arith.constant dense<0.000000e+00> : vector<8x128xf32>
    %462 = tpu.matmul %450, %279, %cst_122 {dimension_numbers = #tpu.dot_dimension_numbers<[1], [0], [0], [1], [0, 0, 1, 1], [], []>} : vector<8x32xf32>, vector<32x128xf32>, vector<8x128xf32> -> vector<8x128xf32>
    %463 = arith.addf %461, %462 : vector<8x128xf32>
    %cst_123 = arith.constant 5.000000e-01 : f32
    %464 = vector.broadcast %cst_123 : f32 to vector<8x128xf32>
    %465 = arith.mulf %464, %463 : vector<8x128xf32>
    %466 = math.tanh %465 : vector<8x128xf32>
    %cst_124 = arith.constant 5.000000e-01 : f32
    %467 = vector.broadcast %cst_124 : f32 to vector<8x128xf32>
    %468 = arith.mulf %467, %466 : vector<8x128xf32>
    %cst_125 = arith.constant 5.000000e-01 : f32
    %469 = vector.broadcast %cst_125 : f32 to vector<8x128xf32>
    %470 = arith.addf %468, %469 : vector<8x128xf32>
    %471 = vector.extract_strided_slice %470 {offsets = [0, 0], sizes = [8, 32], strides = [1, 1]} : vector<8x128xf32> to vector<8x32xf32>
    %472 = vector.extract_strided_slice %470 {offsets = [0, 32], sizes = [8, 32], strides = [1, 1]} : vector<8x128xf32> to vector<8x32xf32>
    %473 = vector.extract_strided_slice %470 {offsets = [0, 96], sizes = [8, 32], strides = [1, 1]} : vector<8x128xf32> to vector<8x32xf32>
    %474 = vector.extract_strided_slice %463 {offsets = [0, 64], sizes = [8, 32], strides = [1, 1]} : vector<8x128xf32> to vector<8x32xf32>
    %475 = math.tanh %474 : vector<8x32xf32>
    %476 = arith.mulf %472, %448 : vector<8x32xf32>
    %477 = arith.mulf %471, %475 : vector<8x32xf32>
    %478 = arith.addf %476, %477 : vector<8x32xf32>
    %479 = math.tanh %478 : vector<8x32xf32>
    %480 = arith.mulf %473, %479 : vector<8x32xf32>
    %481 = vector.extract_strided_slice %280 {offsets = [12, 0], sizes = [1, 32], strides = [1, 1]} : vector<18x32xf32> to vector<1x32xf32>
    %482 = vector.broadcast %481 : vector<1x32xf32> to vector<8x32xf32>
    %483 = arith.mulf %480, %482 : vector<8x32xf32>
    %484 = arith.addf %454, %483 : vector<8x32xf32>
    %485 = vector.extract_strided_slice %280 {offsets = [13, 0], sizes = [1, 32], strides = [1, 1]} : vector<18x32xf32> to vector<1x32xf32>
    %486 = vector.broadcast %485 : vector<1x32xf32> to vector<8x32xf32>
    %487 = arith.mulf %480, %486 : vector<8x32xf32>
    %488 = arith.addf %458, %487 : vector<8x32xf32>
    %489 = vector.extract_strided_slice %273 {offsets = [56, 0], sizes = [8, 128], strides = [1, 1]} : vector<72x128xf32> to vector<8x128xf32>
    %490 = vector.extract_strided_slice %278 {offsets = [8, 0], sizes = [8, 128], strides = [1, 1]} : vector<72x128xf32> to vector<8x128xf32>
    %491 = arith.addf %489, %490 : vector<8x128xf32>
    %cst_126 = arith.constant dense<0.000000e+00> : vector<8x128xf32>
    %492 = tpu.matmul %480, %279, %cst_126 {dimension_numbers = #tpu.dot_dimension_numbers<[1], [0], [0], [1], [0, 0, 1, 1], [], []>} : vector<8x32xf32>, vector<32x128xf32>, vector<8x128xf32> -> vector<8x128xf32>
    %493 = arith.addf %491, %492 : vector<8x128xf32>
    %cst_127 = arith.constant 5.000000e-01 : f32
    %494 = vector.broadcast %cst_127 : f32 to vector<8x128xf32>
    %495 = arith.mulf %494, %493 : vector<8x128xf32>
    %496 = math.tanh %495 : vector<8x128xf32>
    %cst_128 = arith.constant 5.000000e-01 : f32
    %497 = vector.broadcast %cst_128 : f32 to vector<8x128xf32>
    %498 = arith.mulf %497, %496 : vector<8x128xf32>
    %cst_129 = arith.constant 5.000000e-01 : f32
    %499 = vector.broadcast %cst_129 : f32 to vector<8x128xf32>
    %500 = arith.addf %498, %499 : vector<8x128xf32>
    %501 = vector.extract_strided_slice %500 {offsets = [0, 0], sizes = [8, 32], strides = [1, 1]} : vector<8x128xf32> to vector<8x32xf32>
    %502 = vector.extract_strided_slice %500 {offsets = [0, 32], sizes = [8, 32], strides = [1, 1]} : vector<8x128xf32> to vector<8x32xf32>
    %503 = vector.extract_strided_slice %500 {offsets = [0, 96], sizes = [8, 32], strides = [1, 1]} : vector<8x128xf32> to vector<8x32xf32>
    %504 = vector.extract_strided_slice %493 {offsets = [0, 64], sizes = [8, 32], strides = [1, 1]} : vector<8x128xf32> to vector<8x32xf32>
    %505 = math.tanh %504 : vector<8x32xf32>
    %506 = arith.mulf %502, %478 : vector<8x32xf32>
    %507 = arith.mulf %501, %505 : vector<8x32xf32>
    %508 = arith.addf %506, %507 : vector<8x32xf32>
    %509 = math.tanh %508 : vector<8x32xf32>
    %510 = arith.mulf %503, %509 : vector<8x32xf32>
    %511 = vector.extract_strided_slice %280 {offsets = [14, 0], sizes = [1, 32], strides = [1, 1]} : vector<18x32xf32> to vector<1x32xf32>
    %512 = vector.broadcast %511 : vector<1x32xf32> to vector<8x32xf32>
    %513 = arith.mulf %510, %512 : vector<8x32xf32>
    %514 = arith.addf %484, %513 : vector<8x32xf32>
    %515 = vector.extract_strided_slice %280 {offsets = [15, 0], sizes = [1, 32], strides = [1, 1]} : vector<18x32xf32> to vector<1x32xf32>
    %516 = vector.broadcast %515 : vector<1x32xf32> to vector<8x32xf32>
    %517 = arith.mulf %510, %516 : vector<8x32xf32>
    %518 = arith.addf %488, %517 : vector<8x32xf32>
    %519 = vector.extract_strided_slice %273 {offsets = [64, 0], sizes = [8, 128], strides = [1, 1]} : vector<72x128xf32> to vector<8x128xf32>
    %520 = vector.extract_strided_slice %278 {offsets = [0, 0], sizes = [8, 128], strides = [1, 1]} : vector<72x128xf32> to vector<8x128xf32>
    %521 = arith.addf %519, %520 : vector<8x128xf32>
    %cst_130 = arith.constant dense<0.000000e+00> : vector<8x128xf32>
    %522 = tpu.matmul %510, %279, %cst_130 {dimension_numbers = #tpu.dot_dimension_numbers<[1], [0], [0], [1], [0, 0, 1, 1], [], []>} : vector<8x32xf32>, vector<32x128xf32>, vector<8x128xf32> -> vector<8x128xf32>
    %523 = arith.addf %521, %522 : vector<8x128xf32>
    %cst_131 = arith.constant 5.000000e-01 : f32
    %524 = vector.broadcast %cst_131 : f32 to vector<8x128xf32>
    %525 = arith.mulf %524, %523 : vector<8x128xf32>
    %526 = math.tanh %525 : vector<8x128xf32>
    %cst_132 = arith.constant 5.000000e-01 : f32
    %527 = vector.broadcast %cst_132 : f32 to vector<8x128xf32>
    %528 = arith.mulf %527, %526 : vector<8x128xf32>
    %cst_133 = arith.constant 5.000000e-01 : f32
    %529 = vector.broadcast %cst_133 : f32 to vector<8x128xf32>
    %530 = arith.addf %528, %529 : vector<8x128xf32>
    %531 = vector.extract_strided_slice %530 {offsets = [0, 0], sizes = [8, 32], strides = [1, 1]} : vector<8x128xf32> to vector<8x32xf32>
    %532 = vector.extract_strided_slice %530 {offsets = [0, 32], sizes = [8, 32], strides = [1, 1]} : vector<8x128xf32> to vector<8x32xf32>
    %533 = vector.extract_strided_slice %530 {offsets = [0, 96], sizes = [8, 32], strides = [1, 1]} : vector<8x128xf32> to vector<8x32xf32>
    %534 = vector.extract_strided_slice %523 {offsets = [0, 64], sizes = [8, 32], strides = [1, 1]} : vector<8x128xf32> to vector<8x32xf32>
    %535 = math.tanh %534 : vector<8x32xf32>
    %536 = arith.mulf %532, %508 : vector<8x32xf32>
    %537 = arith.mulf %531, %535 : vector<8x32xf32>
    %538 = arith.addf %536, %537 : vector<8x32xf32>
    %539 = math.tanh %538 : vector<8x32xf32>
    %540 = arith.mulf %533, %539 : vector<8x32xf32>
    %541 = vector.extract_strided_slice %280 {offsets = [16, 0], sizes = [1, 32], strides = [1, 1]} : vector<18x32xf32> to vector<1x32xf32>
    %542 = vector.broadcast %541 : vector<1x32xf32> to vector<8x32xf32>
    %543 = arith.mulf %540, %542 : vector<8x32xf32>
    %544 = arith.addf %514, %543 : vector<8x32xf32>
    %545 = vector.extract_strided_slice %280 {offsets = [17, 0], sizes = [1, 32], strides = [1, 1]} : vector<18x32xf32> to vector<1x32xf32>
    %546 = vector.broadcast %545 : vector<1x32xf32> to vector<8x32xf32>
    %547 = arith.mulf %540, %546 : vector<8x32xf32>
    %548 = arith.addf %518, %547 : vector<8x32xf32>
    %cst_134 = arith.constant dense<0.000000e+00> : vector<8xf32>
    %549 = vector.multi_reduction <add>, %544, %cst_134 [1] : vector<8x32xf32> to vector<8xf32>
    %550 = vector.shape_cast %549 : vector<8xf32> to vector<8x1xf32>
    %551 = vector.extract_strided_slice %281 {offsets = [0, 0], sizes = [1, 1], strides = [1, 1]} : vector<1x2xf32> to vector<1x1xf32>
    %552 = vector.broadcast %551 : vector<1x1xf32> to vector<8x1xf32>
    %553 = arith.addf %550, %552 : vector<8x1xf32>
    %cst_135 = arith.constant dense<0.000000e+00> : vector<8xf32>
    %554 = vector.multi_reduction <add>, %548, %cst_135 [1] : vector<8x32xf32> to vector<8xf32>
    %555 = vector.shape_cast %554 : vector<8xf32> to vector<8x1xf32>
    %556 = vector.extract_strided_slice %281 {offsets = [0, 1], sizes = [1, 1], strides = [1, 1]} : vector<1x2xf32> to vector<1x1xf32>
    %557 = vector.broadcast %556 : vector<1x1xf32> to vector<8x1xf32>
    %558 = arith.addf %555, %557 : vector<8x1xf32>
    %559 = tpu.concatenate %553, %558 in 1 : vector<8x1xf32>, vector<8x1xf32> -> vector<8x2xf32>
    %560 = arith.addf %223, %559 : vector<8x2xf32>
    %cst_136 = arith.constant 0.000000e+00 : f32
    %561 = vector.broadcast %cst_136 : f32 to vector<8x126xf32>
    %562 = tpu.concatenate %560, %561 in 1 : vector<8x2xf32>, vector<8x126xf32> -> vector<8x128xf32>
    %c0_137 = arith.constant 0 : index
    %c0_138 = arith.constant 0 : index
    %563 = vector.load %arg2[%c0_137, %c0_138] : memref<8x128xf32, #tpu.memory_space<vmem>>, vector<8x128xf32>
    tpu.vector_store %arg2[%c0_137, %c0_138], %562 {strides = array<i32>} : memref<8x128xf32, #tpu.memory_space<vmem>>, vector<8x128xf32>,
    return
  }
}

</mosaic_0001>

<bundles_post_ra>
// kernel: tpu_custom_call.1
= control target key start
LH: loop header
LB: loop body
LE: loop exit
PB: predicated region body
PF: predicated region fallthrough
CT: control target
= control target key end

     0   :  { %7 = vsyncpa [#allocation5], 0  ;;  %s4568_s0 = inlined_call_operand.vmem [shape: f32[64,4], index: 0, kind: input, shape index: {}]   ;;  %s4569_s1 = inlined_call_operand.hbm [shape: f32[360,256], index: 1, kind: input, shape index: {}]   ;;  %s4570_s2 = inlined_call_operand.hbm [shape: f32[8,128], index: 2, kind: output, shape index: {}]  }
   0x1   :  { %8 = vsyncpa [#allocation6], 0  ;;  %s3777_s9 = smov [#allocation4]   ;;  %s3729_s13 = scalar_lea.hbm %s4569_s1, 11520 }
   0x2   :  { %s16_s10 = sshll.u32 %s3777_s9, 4  ;;  %p3730_p0 = scmp.ne.s32.totalorder %s4569_s1, %s3729_s13  ;;  %s17_s10 = int_to_ptr.vmem [resolvable:$true] %s16_s10 }
   0x3   :  { %p3733_p1 = scmp.lt.u32.totalorder %s3729_s13, %s4569_s1 }
   0x5   :  { %p3735_p2 = pnand %p3733_p1, %p3730_p0 }
   0x7   :  { %3738 = shalt.err (!%p3735_p2)
}
   0x8   :  { %s3739_s18 = scalar_lea.vmem %s17_s10, 11520  ;;  %p3744_p4 = scmp.lt.s32.totalorder %s17_s10, %s17_s10 }
   0x9   :  { %p3740_p3 = scmp.ne.s32.totalorder %s17_s10, %s3739_s18  ;;  %p3745_p5 = scmp.lt.s32.totalorder %s3739_s18, %s3739_s18 }
   0xb   :  { %p3746_p6 = por %p3745_p5, %p3744_p4 }
   0xd   :  { %p3747_p7 = pnand %p3746_p6, %p3740_p3 }
   0xf   :  { %3750 = shalt.err (!%p3747_p7)
}
  0x10   :  { %s3778_s19 = smov 256   ;;  %s3779_s20 = smov 16  }
  0x11   :  { %22 = dma.hbm_to_vmem [thread:$0]  %s4569_s1, 11520, %s17_s10, [#allocation5], %s3778_s19, %s3778_s19, %s3779_s20  }
  0x12   :  { %3773 = dma.done.wait [#allocation5], 11520  }
  0x13   :  { %3774 = vsyncadd [#allocation5], 4294955776  ;;  %v3780_v0 = vmov 2   ;;  %v3781_v1 = vmov 0   ;;  %v26_v2 = vld [vmem:[%s4568_s0] sm:$0xff]  ;;  %v3782_v3 = vmov 3   ;;  %v76_v23 = vlaneseq }
  0x14   :  { %3577 = vset.pattern.permute.xlu1 %v3780_v0  ;;  %3575 = vset.pattern.permute.xlu0 %v3781_v1  ;;  %v3783_v4 = vmov 1   ;;  %v261_v5 = vld [vmem:[#allocation4 + $0x48] sm:$0xff]  ;;  %v263_v6 = vld [vmem:[#allocation4 + $0x58] sm:$0xff]  ;;  %v260_v8 = vld [vmem:[#allocation4 + $0x40] sm:$0xff]  ;;  %v3784_v20 = vmov 0.0   ;;  %vm281_vm0 = vcmask 261120  }
  0x15   :  { %149 = vperm.xlu1 %3577, %v26_v2   ;;  %38 = vperm.xlu0 %3575, %v26_v2   ;;  %v3267_v7 = vpack.c.bf16 %v263_v6, %v261_v5  ;;  %v262_v9 = vld [vmem:[#allocation4 + $0x50] sm:$0xff]  ;;  %v27_v12 = vld [vmem:[%s4568_s0 + $0x8] sm:$0xff]  ;;  %v265_v13 = vld [vmem:[#allocation4 + $0x68] sm:$0xff]  ;;  %v3865_v24 = vshrl.u32 %v76_v23, 7  ;;  %s3785_s10 = smov 64   ;;  %vm1211_vm1 = vcmask 130048  }
  0x16   :  { %v3828_v10 = vld [vmem:[%s4568_s0 + $0x20] sm:$0xff]  ;;  %v3269_v11 = vpack.c.bf16 %v262_v9, %v260_v8  ;;  %v267_v14 = vld [vmem:[#allocation4 + $0x78] sm:$0xff]  ;;  %v264_v16 = vld [vmem:[#allocation4 + $0x60] sm:$0xff]  ;;  %370 = vmatprep.mubr.f32.mxu0 %v3784_v20  ;;  %1279 = vmatprep.mubr.f32.mxu1 %v3784_v20  ;;  %vm3787_vm2 = vmmov 0   ;;  %vm460_vm3 = vcmask 523264   ;;  %s3788_s11 = smov 32  }
  0x17   :  { %3268 = vmatprep.subr.bf16.mxu0 %v3267_v7  ;;  %v3271_v15 = vpack.c.bf16 %v267_v14, %v265_v13  ;;  %v266_v17 = vld [vmem:[#allocation4 + $0x70] sm:$0xff]  ;;  %v28_v19 = vld [vmem:[%s4568_s0 + $0x10] sm:$0xff]  ;;  %v3849_v21 = vld [vmem:[%s4568_s0 + $0x18] sm:$0xff]  ;;  %v3868_v25 = vsub.s32 0, %v3865_v24  ;;  %v3874_v28 = vsub.s32 1, %v3865_v24  ;;  %v3877_v30 = vsub.s32 2, %v3865_v24 }
  0x18   :  { %3270 = vmatpush1.bf16.msra.mxu0 %v3269_v11  ;;  %v3273_v18 = vpack.c.bf16 %v266_v17, %v264_v16  ;;  %v3861_v22 = vld [vmem:[%s4568_s0 + $0x30] sm:$0xff]  ;;  %v3880_v32 = vsub.s32 3, %v3865_v24  ;;  %v3886_v35 = vld [vmem:[#allocation4 + $0x10] ss:$0 sm:$0xff]  ;;  %v3903_v48 = vld [vmem:[%s4568_s0 + $0x28] sm:$0xff]  ;;  %s3789_s12 = smov 96  }
  0x19   :  { %3578 = vset.pattern.permute.xlu1 %v3782_v3  ;;  %3576 = vset.pattern.permute.xlu0 %v3783_v4  ;;  %v34_v26 = vld [vmem:[#allocation4] sm:$0xf]  ;;  %v3912_v52 = vld [vmem:[%s4568_s0 + $0x38] sm:$0xff]  ;;  %vm2866_vm4 = vcmask 7168   ;;  %s3790_s13 = smov [#allocation7]   ;;  %vm2869_vm5 = vcmask 15360  }
  0x1a   :  { %201 = vperm.xlu1 %3578, %v26_v2   ;;  %97 = vperm.xlu0 %3576, %v26_v2   ;;  %v3871_v27 = vrot.slane %v34_v26, %v3868_v25  ;;  %v3884_v34 = vrot.slane %v34_v26, %v3874_v28  ;;  %v3889_v36 = vrot.slane %v34_v26, %v3877_v30  ;;  %s2878_s14 = sshll.u32 %s3790_s13, 4  ;;  %s2879_s14 = int_to_ptr.vmem [resolvable:$true] %s2878_s14 }
  0x1b   :  { %3272 = vmatprep.subr.bf16.mxu0 %v3271_v15  ;;  %v3892_v37 = vrot.slane %v34_v26, %v3880_v32  ;;  %v269_v26 = vld [vmem:[#allocation4 + $0x80] ss:$8 sm:$0x3]  ;;  %s3751_s17 = scalar_lea.vmem %s2879_s14, 128  ;;  %p3756_p9 = scmp.lt.s32.totalorder %s2879_s14, %s2879_s14 }
  0x1c   :  { %3274 = vmatpush1.bf16.msra.mxu0 %v3273_v18  ;;  %p3752_p8 = scmp.ne.s32.totalorder %s2879_s14, %s3751_s17  ;;  %p3757_p10 = scmp.lt.s32.totalorder %s3751_s17, %s3751_s17 }
  0x1e   :  { %3579 = vset.pattern.permute.xlu1 %v3783_v4  ;;  %113 = vperm.xlu0 %3576, %v3828_v10   ;;  %p3758_p11 = por %p3757_p10, %p3756_p9 }
  0x1f   :  { %101 = vperm.xlu1 %3579, %v27_v12  }
  0x20   :  { %p3759_p12 = pnand %p3758_p11, %p3752_p8 }
  0x22   :  { %3587 = vset.pattern.permute.xlu0 %v3780_v0 }
  0x23   :  { %3580 = vset.pattern.permute.xlu1 %v3781_v1  ;;  %153 = vperm.xlu0 %3587, %v27_v12  }
  0x24   :  { %48 = vperm.xlu1 %3580, %v28_v19  }
  0x27   :  { %165 = vperm.xlu0 %3587, %v3828_v10  }
  0x28   :  { %3581 = vset.pattern.permute.xlu1 %v3783_v4 }
  0x29   :  { %105 = vperm.xlu1 %3581, %v28_v19  }
  0x2b   :  { %3590 = vset.pattern.permute.xlu0 %v3781_v1 }
  0x2c   :  { %43 = vperm.xlu0 %3590, %v27_v12  }
  0x2d   :  { %3582 = vset.pattern.permute.xlu1 %v3782_v3 }
  0x2e   :  { %205 = vperm.xlu1 %3582, %v27_v12  }
  0x30   :  { %53 = vperm.xlu0 %3590, %v3849_v21  }
  0x32   :  { %3583 = vset.pattern.permute.xlu1 %v3780_v0 }
  0x33   :  { %157 = vperm.xlu1 %3583, %v28_v19  }
  0x34   :  { %68 = vperm.xlu0 %3590, %v3861_v22  }
  0x37   :  { %3584 = vset.pattern.permute.xlu1 %v3783_v4 }
  0x38   :  { %109 = vperm.xlu1 %3584, %v3849_v21   ;;  %3593 = vset.pattern.permute.xlu0 %v3782_v3 }
  0x39   :  { %209 = vperm.xlu0 %3593, %v28_v19  }
  0x3c   :  { %3585 = vset.pattern.permute.xlu1 %v3781_v1 }
  0x3d   :  { %58 = vperm.xlu1 %3585, %v3828_v10   ;;  %221 = vperm.xlu0 %3593, %v3903_v48  }
  0x41   :  { %3586 = vset.pattern.permute.xlu1 %v3780_v0  ;;  %3598 = vset.pattern.permute.xlu0 %v3783_v4 }
  0x42   :  { %125 = vperm.xlu0 %3598, %v3912_v52  }
  0x46   :  { %3601 = vset.pattern.permute.xlu0 %v3782_v3 }
  0x47   :  { %229 = vperm.xlu0 %3601, %v3912_v52  }
  0x94   :  { %v39_v29 = vpop.permute.xlu0 %38  ;;  %v150_v31 = vpop.permute.xlu1 %149 }
  0x95   :  { %v80_v33 = vmul.f32 %v3871_v27, %v39_v29  ;;  %v184_v42 = vmul.f32 %v3889_v36, %v150_v31  ;;  %v3938_v29 = vrot.slane %v269_v26, %v3868_v25 }
  0x97   :  { %v88_v40 = vadd.f32 %v80_v33, %v3886_v35 }
  0x99   :  { %v98_v38 = vpop.permute.xlu0 %97  ;;  %v202_v39 = vpop.permute.xlu1 %201 }
  0x9a   :  { %v132_v41 = vmul.f32 %v3884_v34, %v98_v38  ;;  %v236_v44 = vmul.f32 %v3892_v37, %v202_v39  ;;  %v3942_v38 = vrot.slane %v269_v26, %v3874_v28 }
  0x9c   :  { %v140_v43 = vadd.f32 %v132_v41, %v88_v40 }
  0x9d   :  { %v3907_v50 = vpop.permute.xlu0 %113 }
  0x9e   :  { %v192_v45 = vadd.f32 %v184_v42, %v140_v43  ;;  %v102_v49 = vpop.permute.xlu1 %101 }
  0x9f   :  { %v133_v58 = vmul.f32 %v3884_v34, %v102_v49 }
  0xa0   :  { %v244_v46 = vadd.f32 %v236_v44, %v192_v45 }
  0xa2   :  { %v252_v47 = vmax.f32 %v244_v46, 0.0  ;;  %v154_v53 = vpop.permute.xlu0 %153 }
  0xa3   :  { %v49_v51 = vpop.permute.xlu1 %48  ;;  %v185_v61 = vmul.f32 %v3889_v36, %v154_v53  ;;  %v1197_v53 = vld [vmem:[#allocation4 + $0x128] sm:$0xff] }
  0xa4   :  { %2887 = vmatmul.mubr.msk.f32.vlgmr.msra.gmra.mrb[0].mxu0 %vm281_vm0, %v252_v47  ;;  %v82_v56 = vmul.f32 %v3871_v27, %v49_v51  ;;  %v1195_v51 = vld [vmem:[#allocation4 + $0x118] sm:$0xff] }
  0xa5   :  { %376 = vmatprep.mubr.f32.mxu0 %v3784_v20 }
  0xa6   :  { %v3917_v55 = vpop.permute.xlu0 %165  ;;  %v90_v63 = vadd.f32 %v82_v56, %v3886_v35  ;;  %v1196_v56 = vld [vmem:[#allocation4 + $0x120] sm:$0xff] }
  0xa8   :  { %v106_v54 = vpop.permute.xlu1 %105 }
  0xa9   :  { %v134_v2 = vmul.f32 %v3884_v34, %v106_v54  ;;  %v1194_v54 = vld [vmem:[#allocation4 + $0x110] sm:$0xff] }
  0xab   :  { %v44_v57 = vpop.permute.xlu0 %43  ;;  %v142_v11 = vadd.f32 %v134_v2, %v90_v63  ;;  %v427_v63 = vld [vmem:[#allocation4 + $0xd0] sm:$0xff] }
  0xac   :  { %v81_v60 = vmul.f32 %v3871_v27, %v44_v57  ;;  %v426_v57 = vld [vmem:[#allocation4 + $0xc8] sm:$0xff] }
  0xad   :  { %v206_v59 = vpop.permute.xlu1 %205 }
  0xae   :  { %v89_v62 = vadd.f32 %v81_v60, %v3886_v35  ;;  %v237_v5 = vmul.f32 %v3892_v37, %v206_v59  ;;  %v425_v59 = vld [vmem:[#allocation4 + $0xc0] sm:$0xff] }
  0xaf   :  { %v3927_v7 = vpop.permute.xlu0 %53 }
  0xb0   :  { %v141_v6 = vadd.f32 %v133_v58, %v89_v62  ;;  %v430_v62 = vld [vmem:[#allocation4 + $0xe8] sm:$0xff] }
  0xb2   :  { %v158_v8 = vpop.permute.xlu1 %157  ;;  %v193_v9 = vadd.f32 %v185_v61, %v141_v6  ;;  %v428_v61 = vld [vmem:[#allocation4 + $0xd8] sm:$0xff] }
  0xb3   :  { %v186_v12 = vmul.f32 %v3889_v36, %v158_v8  ;;  %v3930_v13 = vpop.permute.xlu0 %68  ;;  %v3985_v2 = vpack.c.bf16 %v430_v62, %v428_v61  ;;  %v432_v8 = vld [vmem:[#allocation4 + $0xf8] sm:$0xff] }
  0xb4   :  { %v245_v14 = vadd.f32 %v237_v5, %v193_v9  ;;  %v429_v5 = vld [vmem:[#allocation4 + $0xe0] sm:$0xff]  ;;  %v434_v9 = vld [vmem:[#allocation4 + $0x108] sm:$0xff] }
  0xb5   :  { %v194_v16 = vadd.f32 %v186_v12, %v142_v11  ;;  %v3987_v6 = vpack.c.bf16 %v429_v5, %v427_v63  ;;  %v431_v11 = vld [vmem:[#allocation4 + $0xf0] sm:$0xff]  ;;  %v3990_v12 = vpack.c.bf16 %v434_v9, %v432_v8 }
  0xb6   :  { %v253_v15 = vmax.f32 %v245_v14, 0.0  ;;  %v433_v14 = vld [vmem:[#allocation4 + $0x100] sm:$0xff] }
  0xb8   :  { %2888 = vmatmul.mubr.msk.f32.gmra.mrb[2].mxu0 %vm281_vm0, %v253_v15  ;;  %v210_v17 = vpop.permute.xlu0 %209  ;;  %v3993_v15 = vpack.c.bf16 %v433_v14, %v431_v11 }
  0xb9   :  { %v238_v18 = vmul.f32 %v3892_v37, %v210_v17  ;;  %382 = vmatprep.mubr.f32.mxu0 %v3784_v20  ;;  %v110_v17 = vpop.permute.xlu1 %109 }
  0xbb   :  { %v246_v19 = vadd.f32 %v238_v18, %v194_v16  ;;  %v3786_v18 = vmov 0.0|0.0  }
  0xbc   :  { %v222_v63 = vpop.permute.xlu0 %221 }
  0xbd   :  { %v254_v23 = vmax.f32 %v246_v19, 0.0  ;;  %v59_v26 = vpop.permute.xlu1 %58  ;;  %v241_v11 = vmul.f32 %v3892_v37, %v222_v63 }
  0xbf   :  { %2889 = vmatmul.mubr.msk.f32.gmra.mrb[4].mxu0 %vm281_vm0, %v254_v23 }
  0xc0   :  { %388 = vmatprep.mubr.f32.mxu0 %v3784_v20 }
 0x177   :  { %v372_v31 = vpop.f32.mrb[0].mxu0 }
 0x178   :  { %v373_v33 = vadd.f32 %v372_v31, %v3938_v29  ;;  %v374_v39 = vpop.f32.mrb[1].mxu0 }
 0x179   :  { %v3945_v41 = vadd.f32 %v374_v39, %v3942_v38 }
 0x17a   :  { %v435_v40 = vmul.f32 0.5, %v373_v33 }
 0x17b   :  { %v436_v16 = vmul.f32 0.5, %v3945_v41 }
 0x17c   :  { %3602 = vtanh.f32 %v435_v40  ;;  %v83_v40 = vmul.f32 %v3871_v27, %v3927_v7 }
 0x17d   :  { %3604 = vtanh.f32 %v3945_v41  ;;  %v135_v41 = vmul.f32 %v3884_v34, %v110_v17 }
 0x186   :  { %v3603_v42 = vpop.eup %3602 }
 0x187   :  { %v439_v43 = vmul.f32 0.5, %v3603_v42  ;;  %v3605_v45 = vpop.eup %3604  ;;  %v91_v42 = vadd.f32 %v83_v40, %v3886_v35 }
 0x189   :  { %v441_v44 = vadd.f32 0.5, %v439_v43 }
 0x18b   :  { %v3948_v46 = vmul.f32 %v3605_v45, %v441_v44  ;;  %v143_v45 = vadd.f32 %v135_v41, %v91_v42 }
 0x18d   :  { %3606 = vtanh.f32 %v3948_v46 }
 0x18e   :  { %3608 = vtanh.f32 %v436_v16 }
 0x197   :  { %v3607_v47 = vpop.eup %3606 }
 0x198   :  { %447 = vrot.lane.b32.xlu1 %v3607_v47, %s3785_s10  ;;  %v3609_v19 = vpop.eup %3608 }
 0x199   :  { %v440_v23 = vmul.f32 0.5, %v3609_v19 }
 0x19b   :  { %v442_v31 = vadd.f32 0.5, %v440_v23  ;;  %v126_v23 = vpop.permute.xlu0 %125 }
 0x19c   :  { %161 = vperm.xlu1 %3586, %v3849_v21  }
 0x1a0   :  { %3588 = vset.pattern.permute.xlu1 %v3782_v3 }
 0x1a1   :  { %213 = vperm.xlu1 %3588, %v3849_v21   ;;  %v422_v21 = vld [vmem:[#allocation4 + $0xa8] sm:$0xff] }
 0x1a5   :  { %3589 = vset.pattern.permute.xlu1 %v3781_v1 }
 0x1a6   :  { %63 = vperm.xlu1 %3589, %v3903_v48  }
 0x1aa   :  { %3591 = vset.pattern.permute.xlu1 %v3783_v4 }
 0x1ab   :  { %117 = vperm.xlu1 %3591, %v3903_v48  }
 0x1af   :  { %3592 = vset.pattern.permute.xlu1 %v3782_v3 }
 0x1b0   :  { %217 = vperm.xlu1 %3592, %v3828_v10   ;;  %v420_v10 = vld [vmem:[#allocation4 + $0x98] sm:$0xff] }
 0x1b4   :  { %3594 = vset.pattern.permute.xlu1 %v3780_v0 }
 0x1b5   :  { %169 = vperm.xlu1 %3594, %v3903_v48   ;;  %v419_v48 = vld [vmem:[#allocation4 + $0x90] sm:$0xff] }
 0x1b9   :  { %3595 = vset.pattern.permute.xlu1 %v3783_v4  ;;  %v3973_v4 = vpack.c.bf16 %v422_v21, %v420_v10 }
 0x1ba   :  { %121 = vperm.xlu1 %3595, %v3861_v22  }
 0x1bb   :  { %3276 = vmatprep.subr.bf16.mxu0 %v3973_v4 }
 0x1be   :  { %3596 = vset.pattern.permute.xlu1 %v3781_v1  ;;  %v421_v1 = vld [vmem:[#allocation4 + $0xa0] sm:$0xff] }
 0x1bf   :  { %73 = vperm.xlu1 %3596, %v3912_v52   ;;  %v3975_v49 = vpack.c.bf16 %v421_v1, %v419_v48  ;;  %v84_v1 = vmul.f32 %v3871_v27, %v59_v26  ;;  %v86_v26 = vmul.f32 %v3871_v27, %v3930_v13 }
 0x1c1   :  { %3278 = vmatpush1.bf16.msra.mxu0 %v3975_v49  ;;  %v92_v7 = vadd.f32 %v84_v1, %v3886_v35  ;;  %v94_v42 = vadd.f32 %v86_v26, %v3886_v35 }
 0x1c3   :  { %3597 = vset.pattern.permute.xlu1 %v3780_v0 }
 0x1c4   :  { %173 = vperm.xlu1 %3597, %v3861_v22  }
 0x1c8   :  { %3599 = vset.pattern.permute.xlu1 %v3782_v3  ;;  %v3387_v3 = vpack.c.bf16 %v1197_v53, %v1195_v51  ;;  %v136_v53 = vmul.f32 %v3884_v34, %v3907_v50 }
 0x1c9   :  { %225 = vperm.xlu1 %3599, %v3861_v22   ;;  %v424_v22 = vld [vmem:[#allocation4 + $0xb8] sm:$0xff] }
 0x1ca   :  { %v3979_v58 = vpack.c.bf16 %v426_v57, %v424_v22  ;;  %3388 = vmatprep.subr.bf16.mxu1 %v3387_v3  ;;  %v188_v22 = vmul.f32 %v3889_v36, %v3917_v55  ;;  %v1179_v55 = vld [vmem:[#allocation4 + $0x20] sm:$0x3] }
 0x1cb   :  { %v1189_v19 = vrot.slane %v1179_v55, %v3874_v28 }
 0x1cc   :  { %3280 = vmatprep.subr.bf16.mxu0 %v3979_v58 }
 0x1cd   :  { %3600 = vset.pattern.permute.xlu1 %v3780_v0  ;;  %v3389_v0 = vpack.c.bf16 %v1196_v56, %v1194_v54  ;;  %v144_v56 = vadd.f32 %v136_v53, %v92_v7  ;;  %v1190_v40 = vmul.f32 %v1189_v19, %v126_v23 }
 0x1ce   :  { %177 = vperm.xlu1 %3600, %v3912_v52   ;;  %v423_v52 = vld [vmem:[#allocation4 + $0xb0] sm:$0xff] }
 0x1cf   :  { %v3981_v60 = vpack.c.bf16 %v425_v59, %v423_v52  ;;  %3390 = vmatpush1.bf16.msra.mxu1 %v3389_v0  ;;  %v196_v59 = vadd.f32 %v188_v22, %v144_v56 }
 0x1d0   :  { %3397 = vmatprep.subr.bf16.mxu1 %v3786_v18 }
 0x1d1   :  { %3282 = vmatpush1.bf16.msra.mxu0 %v3981_v60 }
 0x1d2   :  { %3284 = vmatprep.subr.bf16.mxu0 %v3985_v2 }
 0x1d5   :  { %3286 = vmatpush1.bf16.msra.mxu0 %v3987_v6 }
 0x1d6   :  { %3288 = vmatprep.subr.bf16.mxu0 %v3990_v12 }
 0x1d9   :  { %3290 = vmatpush1.bf16.msra.mxu0 %v3993_v15 }
 0x1da   :  { %3292 = vmatprep.subr.bf16.mxu0 %v3973_v4 }
 0x20a   :  { %v448_v33 = vpop.permute.xlu1 %447 }
 0x20b   :  { %v4000_v39 = vmul.f32 %v448_v33, %v442_v31  ;;  %v1184_v33 = vrot.slane %v1179_v55, %v3868_v25 }
 0x20d   :  { %452 = vrot.lane.b32.xlu1 %v4000_v39, %s3785_s10 }
 0x211   :  { %546 = vrot.lane.b32.xlu1 %v3948_v46, %s3785_s10 }
 0x21b   :  { %v162_v43 = vpop.permute.xlu1 %161 }
 0x21c   :  { %v187_v44 = vmul.f32 %v3889_v36, %v162_v43 }
 0x21e   :  { %v195_v10 = vadd.f32 %v187_v44, %v143_v45  ;;  %v1180_v45 = vld [vmem:[#allocation4 + $0x30] ss:$0 sm:$0xff] }
 0x220   :  { %v214_v47 = vpop.permute.xlu1 %213 }
 0x221   :  { %v239_v21 = vmul.f32 %v3892_v37, %v214_v47 }
 0x223   :  { %v247_v48 = vadd.f32 %v239_v21, %v195_v10  ;;  %v1329_v10 = vld [vmem:[#allocation4 + $0x140] sm:$0xff]  ;;  %v1330_v21 = vld [vmem:[#allocation4 + $0x150] sm:$0xff] }
 0x224   :  { %v3398_v7 = vpack.c.bf16 %v1330_v21, %v1329_v10 }
 0x225   :  { %v255_v51 = vmax.f32 %v247_v48, 0.0  ;;  %v64_v46 = vpop.permute.xlu1 %63 }
 0x226   :  { %v85_v3 = vmul.f32 %v3871_v27, %v64_v46 }
 0x227   :  { %2890 = vmatmul.mubr.msk.f32.gmra.mrb[6].mxu0 %vm281_vm0, %v255_v51 }
 0x228   :  { %394 = vmatprep.mubr.f32.mxu0 %v3784_v20  ;;  %v93_v57 = vadd.f32 %v85_v3, %v3886_v35  ;;  %v1332_v3 = vld [vmem:[#allocation4 + $0x170] sm:$0xff] }
 0x22a   :  { %v118_v54 = vpop.permute.xlu1 %117 }
 0x22b   :  { %v137_v0 = vmul.f32 %v3884_v34, %v118_v54  ;;  %v1331_v54 = vld [vmem:[#allocation4 + $0x160] sm:$0xff] }
 0x22d   :  { %v145_v5 = vadd.f32 %v137_v0, %v93_v57  ;;  %v139_v0 = vmul.f32 %v3884_v34, %v126_v23 }
 0x22f   :  { %v218_v52 = vpop.permute.xlu1 %217 }
 0x230   :  { %v240_v61 = vmul.f32 %v3892_v37, %v218_v52  ;;  %v3401_v52 = vpack.c.bf16 %v1332_v3, %v1331_v54 }
 0x232   :  { %v248_v62 = vadd.f32 %v240_v61, %v196_v59  ;;  %v230_v61 = vpop.permute.xlu0 %229 }
 0x234   :  { %v256_v8 = vmax.f32 %v248_v62, 0.0  ;;  %v170_v50 = vpop.permute.xlu1 %169 }
 0x235   :  { %v189_v9 = vmul.f32 %v3889_v36, %v170_v50 }
 0x236   :  { %2891 = vmatmul.mubr.msk.f32.gmra.mrb[8].mxu0 %vm281_vm0, %v256_v8 }
 0x237   :  { %v197_v14 = vadd.f32 %v189_v9, %v145_v5  ;;  %400 = vmatprep.mubr.f32.mxu0 %v3784_v20 }
 0x239   :  { %v122_v16 = vpop.permute.xlu1 %121  ;;  %v249_v17 = vadd.f32 %v241_v11, %v197_v14 }
 0x23a   :  { %v138_v43 = vmul.f32 %v3884_v34, %v122_v16 }
 0x23b   :  { %v257_v31 = vmax.f32 %v249_v17, 0.0 }
 0x23c   :  { %v146_v48 = vadd.f32 %v138_v43, %v94_v42 }
 0x23d   :  { %2892 = vmatmul.mubr.msk.f32.gmra.mrb[10].mxu0 %vm281_vm0, %v257_v31 }
 0x23e   :  { %v74_v41 = vpop.permute.xlu1 %73  ;;  %406 = vmatprep.mubr.f32.mxu0 %v3784_v20 }
 0x23f   :  { %v1185_v44 = vmul.f32 %v1184_v33, %v74_v41  ;;  %v87_v51 = vmul.f32 %v3871_v27, %v74_v41 }
 0x241   :  { %v1191_v47 = vadd.f32 %v1190_v40, %v1185_v44  ;;  %v95_v22 = vadd.f32 %v87_v51, %v3886_v35  ;;  %v243_v35 = vmul.f32 %v3892_v37, %v230_v61 }
 0x243   :  { %v174_v13 = vpop.permute.xlu1 %173  ;;  %v1192_v1 = vadd.f32 %v1191_v47, %v1180_v45  ;;  %v147_v62 = vadd.f32 %v139_v0, %v95_v22 }
 0x244   :  { %v190_v46 = vmul.f32 %v3889_v36, %v174_v13 }
 0x245   :  { %v1193_v53 = vmax.f32 %v1192_v1, 0.0 }
 0x246   :  { %v198_v56 = vadd.f32 %v190_v46, %v146_v48 }
 0x247   :  { %2902 = vmatmul.mubr.msk.f32.vlgmr.msra.gmra.mrb[0].mxu1 %vm1211_vm1, %v1193_v53 }
 0x248   :  { %v226_v57 = vpop.permute.xlu1 %225  ;;  %3399 = vmatpush3.bf16.msra.mxu1 %v3398_v7  ;;  %3082 = vmatprep.mubr.msk.f32.mxu1 %vm3787_vm2, %v3784_v20 }
 0x249   :  { %v242_v27 = vmul.f32 %v3892_v37, %v226_v57  ;;  %3400 = vmatprep.subr.bf16.mxu1 %v3786_v18  ;;  %v1199_v37 = vld [vmem:[#allocation4 + $0x130] ss:$8 sm:$0x3] }
 0x24a   :  { %v1204_v55 = vrot.slane %v1199_v37, %v3868_v25  ;;  %v1208_v14 = vrot.slane %v1199_v37, %v3874_v28 }
 0x24b   :  { %v250_v59 = vadd.f32 %v242_v27, %v198_v56 }
 0x24c   :  { %3402 = vmatpush3.bf16.msra.mxu1 %v3401_v52 }
 0x24d   :  { %v258_v63 = vmax.f32 %v250_v59, 0.0  ;;  %v178_v5 = vpop.permute.xlu1 %177  ;;  %3403 = vmatprep.subr.bf16.mxu1 %v3786_v18 }
 0x24e   :  { %v191_v34 = vmul.f32 %v3889_v36, %v178_v5 }
 0x24f   :  { %2893 = vmatmul.mubr.msk.f32.gmra.mrb[12].mxu0 %vm281_vm0, %v258_v63 }
 0x250   :  { %v199_v8 = vadd.f32 %v191_v34, %v147_v62  ;;  %412 = vmatprep.mubr.f32.mxu0 %v3784_v20 }
 0x252   :  { %v251_v50 = vadd.f32 %v243_v35, %v199_v8 }
 0x254   :  { %v259_v9 = vmax.f32 %v251_v50, 0.0 }
 0x256   :  { %2894 = vmatmul.mubr.msk.f32.gmra.mrb[14].mxu0 %vm281_vm0, %v259_v9 }
 0x257   :  { %527 = vmatprep.mubr.f32.mxu0 %v3784_v20 }
 0x27f   :  { %v453_v11 = vpop.permute.xlu1 %452 }
 0x280   :  { %455 = vst.msk [vmem:[#allocation2] sm:$0xff] %vm281_vm0, %v453_v11  ;;  %2895 = vmatmul.mubr.msk.f32.vlgmr.msra.gmra.mrb[2].mxu0 %vm460_vm3, %v453_v11 }
 0x281   :  { %3294 = vmatpush1.bf16.msra.mxu0 %v3975_v49  ;;  %633 = vmatprep.mubr.f32.mxu0 %v3784_v20 }
 0x282   :  { %3296 = vmatprep.subr.bf16.mxu0 %v3979_v58 }
 0x283   :  { %v547_v7 = vpop.permute.xlu1 %546 }
 0x285   :  { %3298 = vmatpush1.bf16.msra.mxu0 %v3981_v60 }
 0x286   :  { %3300 = vmatprep.subr.bf16.mxu0 %v3985_v2 }
 0x287   :  { %v4058_v36 = vld [vmem:[#allocation2] sm:$0xff] }
 0x288   :  { %3083 = vmatmul.mubr.msk.f32.vlgmr.msra.gmra.mrb[2].mxu1 %vm281_vm0, %v4058_v36 }
 0x289   :  { %3302 = vmatpush1.bf16.msra.mxu0 %v3987_v6  ;;  %3085 = vmatprep.mubr.msk.f32.mxu1 %vm3787_vm2, %v3784_v20 }
 0x28a   :  { %3304 = vmatprep.subr.bf16.mxu0 %v3990_v12 }
 0x28d   :  { %3306 = vmatpush1.bf16.msra.mxu0 %v3993_v15 }
 0x28e   :  { %3308 = vmatprep.subr.bf16.mxu0 %v3973_v4 }
 0x31a   :  { %v1281_v16 = vpop.f32.mrb[0].mxu1 }
 0x31b   :  { %v1282_v17 = vadd.f32 %v1281_v16, %v1204_v55  ;;  %v1283_v19 = vpop.f32.mrb[1].mxu1 }
 0x31c   :  { %v4070_v26 = vadd.f32 %v1283_v19, %v1208_v14 }
 0x31d   :  { %v1286_v23 = vmul.f32 0.5, %v1282_v17 }
 0x31f   :  { %3610 = vtanh.f32 %v1286_v23 }
 0x320   :  { %3612 = vtanh.f32 %v4070_v26 }
 0x329   :  { %v3611_v31 = vpop.eup %3610 }
 0x32a   :  { %v1290_v33 = vmul.f32 0.5, %v3611_v31  ;;  %v3613_v40 = vpop.eup %3612 }
 0x32c   :  { %v1292_v41 = vadd.f32 0.5, %v1290_v33 }
 0x32e   :  { %v4073_v42 = vmul.f32 %v3613_v40, %v1292_v41 }
 0x353   :  { %v529_v43 = vpop.f32.mrb[2].mxu0 }
 0x354   :  { %v3463_v44 = vadd.f32 %v529_v43, %v3938_v29  ;;  %v531_v45 = vpop.f32.mrb[3].mxu0 }
 0x355   :  { %v3464_v10 = vadd.f32 %v531_v45, %v3942_v38 }
 0x356   :  { %v536_v47 = vmul.f32 0.5, %v3463_v44 }
 0x357   :  { %v537_v46 = vmul.f32 0.5, %v3464_v10 }
 0x358   :  { %3614 = vtanh.f32 %v536_v47 }
 0x359   :  { %3616 = vtanh.f32 %v3464_v10 }
 0x35a   :  { %3618 = vtanh.f32 %v537_v46 }
 0x362   :  { %v3615_v21 = vpop.eup %3614 }
 0x363   :  { %v540_v48 = vmul.f32 0.5, %v3615_v21  ;;  %v3617_v1 = vpop.eup %3616 }
 0x364   :  { %v3619_v56 = vpop.eup %3618 }
 0x365   :  { %v542_v13 = vadd.f32 0.5, %v540_v48  ;;  %v541_v22 = vmul.f32 0.5, %v3619_v56 }
 0x367   :  { %v550_v51 = vmul.f32 %v3617_v1, %v542_v13  ;;  %v549_v53 = vmul.f32 %v547_v7, %v542_v13  ;;  %v543_v57 = vadd.f32 0.5, %v541_v22 }
 0x369   :  { %552 = vrot.lane.b32.xlu0 %v550_v51, %s3785_s10 }
 0x3db   :  { %v553_v54 = vpop.permute.xlu0 %552 }
 0x3dc   :  { %v555_v3 = vadd.f32 %v553_v54, %v549_v53 }
 0x3de   :  { %3620 = vtanh.f32 %v555_v3 }
 0x3e8   :  { %v3621_v0 = vpop.eup %3620 }
 0x3e9   :  { %v4078_v52 = vmul.f32 %v3621_v0, %v543_v57 }
 0x3eb   :  { %559 = vrot.lane.b32.xlu1 %v4078_v52, %s3785_s10 }
 0x45d   :  { %v560_v27 = vpop.permute.xlu1 %559 }
 0x45e   :  { %562 = vst.msk [vmem:[#allocation2 + $0x8] sm:$0xff] %vm281_vm0, %v560_v27  ;;  %2896 = vmatmul.mubr.msk.f32.vlgmr.msra.gmra.mrb[4].mxu0 %vm460_vm3, %v560_v27 }
 0x45f   :  { %3310 = vmatpush1.bf16.msra.mxu0 %v3975_v49  ;;  %735 = vmatprep.mubr.f32.mxu0 %v3784_v20 }
 0x460   :  { %3312 = vmatprep.subr.bf16.mxu0 %v3979_v58 }
 0x463   :  { %3314 = vmatpush1.bf16.msra.mxu0 %v3981_v60 }
 0x464   :  { %3316 = vmatprep.subr.bf16.mxu0 %v3985_v2 }
 0x465   :  { %v4089_v59 = vld [vmem:[#allocation2 + $0x8] sm:$0xff] }
 0x466   :  { %3086 = vmatmul.mubr.msk.f32.gmra.mrb[4].mxu1 %vm281_vm0, %v4089_v59 }
 0x467   :  { %3318 = vmatpush1.bf16.msra.mxu0 %v3987_v6  ;;  %3088 = vmatprep.mubr.msk.f32.mxu1 %vm3787_vm2, %v3784_v20 }
 0x468   :  { %3320 = vmatprep.subr.bf16.mxu0 %v3990_v12 }
 0x46b   :  { %3322 = vmatpush1.bf16.msra.mxu0 %v3993_v15 }
 0x46c   :  { %3324 = vmatprep.subr.bf16.mxu0 %v3973_v4 }
 0x531   :  { %v635_v61 = vpop.f32.mrb[4].mxu0 }
 0x532   :  { %v3465_v62 = vadd.f32 %v635_v61, %v3938_v29  ;;  %v637_v63 = vpop.f32.mrb[5].mxu0 }
 0x533   :  { %v3466_v34 = vadd.f32 %v637_v63, %v3942_v38 }
 0x534   :  { %v642_v5 = vmul.f32 0.5, %v3465_v62 }
 0x535   :  { %v643_v37 = vmul.f32 0.5, %v3466_v34 }
 0x536   :  { %3622 = vtanh.f32 %v642_v5 }
 0x537   :  { %3624 = vtanh.f32 %v3466_v34 }
 0x538   :  { %3626 = vtanh.f32 %v643_v37 }
 0x540   :  { %v3623_v35 = vpop.eup %3622 }
 0x541   :  { %v646_v8 = vmul.f32 0.5, %v3623_v35  ;;  %v3625_v9 = vpop.eup %3624 }
 0x542   :  { %v3627_v17 = vpop.eup %3626 }
 0x543   :  { %v648_v50 = vadd.f32 0.5, %v646_v8  ;;  %v647_v19 = vmul.f32 0.5, %v3627_v17 }
 0x545   :  { %v652_v11 = vmul.f32 %v3625_v9, %v648_v50  ;;  %v651_v55 = vmul.f32 %v648_v50, %v555_v3  ;;  %v649_v23 = vadd.f32 0.5, %v647_v19 }
 0x547   :  { %654 = vrot.lane.b32.xlu0 %v652_v11, %s3785_s10 }
 0x5b9   :  { %v655_v14 = vpop.permute.xlu0 %654 }
 0x5ba   :  { %v657_v16 = vadd.f32 %v655_v14, %v651_v55 }
 0x5bc   :  { %3628 = vtanh.f32 %v657_v16 }
 0x5c6   :  { %v3629_v31 = vpop.eup %3628 }
 0x5c7   :  { %v4102_v33 = vmul.f32 %v3629_v31, %v649_v23 }
 0x5c9   :  { %661 = vrot.lane.b32.xlu1 %v4102_v33, %s3785_s10 }
 0x63b   :  { %v662_v40 = vpop.permute.xlu1 %661 }
 0x63c   :  { %664 = vst.msk [vmem:[#allocation2 + $0x10] sm:$0xff] %vm281_vm0, %v662_v40  ;;  %2897 = vmatmul.mubr.msk.f32.vlgmr.msra.gmra.mrb[6].mxu0 %vm460_vm3, %v662_v40 }
 0x63d   :  { %3326 = vmatpush1.bf16.msra.mxu0 %v3975_v49  ;;  %837 = vmatprep.mubr.f32.mxu0 %v3784_v20 }
 0x63e   :  { %3328 = vmatprep.subr.bf16.mxu0 %v3979_v58 }
 0x641   :  { %3330 = vmatpush1.bf16.msra.mxu0 %v3981_v60 }
 0x642   :  { %3332 = vmatprep.subr.bf16.mxu0 %v3985_v2 }
 0x643   :  { %v4113_v41 = vld [vmem:[#allocation2 + $0x10] sm:$0xff] }
 0x644   :  { %3089 = vmatmul.mubr.msk.f32.gmra.mrb[6].mxu1 %vm281_vm0, %v4113_v41 }
 0x645   :  { %3334 = vmatpush1.bf16.msra.mxu0 %v3987_v6  ;;  %3091 = vmatprep.mubr.msk.f32.mxu1 %vm3787_vm2, %v3784_v20 }
 0x646   :  { %3336 = vmatprep.subr.bf16.mxu0 %v3990_v12 }
 0x649   :  { %3338 = vmatpush1.bf16.msra.mxu0 %v3993_v15 }
 0x64a   :  { %3340 = vmatprep.subr.bf16.mxu0 %v3973_v4 }
 0x70f   :  { %v737_v43 = vpop.f32.mrb[6].mxu0 }
 0x710   :  { %v3467_v44 = vadd.f32 %v737_v43, %v3938_v29  ;;  %v739_v45 = vpop.f32.mrb[7].mxu0 }
 0x711   :  { %v3468_v10 = vadd.f32 %v739_v45, %v3942_v38 }
 0x712   :  { %v744_v47 = vmul.f32 0.5, %v3467_v44 }
 0x713   :  { %v745_v46 = vmul.f32 0.5, %v3468_v10 }
 0x714   :  { %3630 = vtanh.f32 %v744_v47 }
 0x715   :  { %3632 = vtanh.f32 %v3468_v10 }
 0x716   :  { %3634 = vtanh.f32 %v745_v46 }
 0x71e   :  { %v3631_v21 = vpop.eup %3630 }
 0x71f   :  { %v748_v48 = vmul.f32 0.5, %v3631_v21  ;;  %v3633_v1 = vpop.eup %3632 }
 0x720   :  { %v3635_v3 = vpop.eup %3634 }
 0x721   :  { %v750_v13 = vadd.f32 0.5, %v748_v48  ;;  %v749_v56 = vmul.f32 0.5, %v3635_v3 }
 0x723   :  { %v754_v51 = vmul.f32 %v3633_v1, %v750_v13  ;;  %v753_v7 = vmul.f32 %v750_v13, %v657_v16  ;;  %v751_v22 = vadd.f32 0.5, %v749_v56 }
 0x725   :  { %756 = vrot.lane.b32.xlu0 %v754_v51, %s3785_s10 }
 0x797   :  { %v757_v53 = vpop.permute.xlu0 %756 }
 0x798   :  { %v759_v54 = vadd.f32 %v757_v53, %v753_v7 }
 0x79a   :  { %3636 = vtanh.f32 %v759_v54 }
 0x7a4   :  { %v3637_v57 = vpop.eup %3636 }
 0x7a5   :  { %v4126_v0 = vmul.f32 %v3637_v57, %v751_v22 }
 0x7a7   :  { %763 = vrot.lane.b32.xlu1 %v4126_v0, %s3785_s10 }
 0x819   :  { %v764_v27 = vpop.permute.xlu1 %763 }
 0x81a   :  { %766 = vst.msk [vmem:[#allocation2 + $0x18] sm:$0xff] %vm281_vm0, %v764_v27  ;;  %2898 = vmatmul.mubr.msk.f32.vlgmr.msra.gmra.mrb[8].mxu0 %vm460_vm3, %v764_v27 }
 0x81b   :  { %3342 = vmatpush1.bf16.msra.mxu0 %v3975_v49  ;;  %939 = vmatprep.mubr.f32.mxu0 %v3784_v20 }
 0x81c   :  { %3344 = vmatprep.subr.bf16.mxu0 %v3979_v58 }
 0x81f   :  { %3346 = vmatpush1.bf16.msra.mxu0 %v3981_v60 }
 0x820   :  { %3348 = vmatprep.subr.bf16.mxu0 %v3985_v2 }
 0x821   :  { %v4137_v61 = vld [vmem:[#allocation2 + $0x18] sm:$0xff] }
 0x822   :  { %3092 = vmatmul.mubr.msk.f32.gmra.mrb[8].mxu1 %vm281_vm0, %v4137_v61 }
 0x823   :  { %3350 = vmatpush1.bf16.msra.mxu0 %v3987_v6  ;;  %3094 = vmatprep.mubr.msk.f32.mxu1 %vm3787_vm2, %v3784_v20 }
 0x824   :  { %3352 = vmatprep.subr.bf16.mxu0 %v3990_v12 }
 0x827   :  { %3354 = vmatpush1.bf16.msra.mxu0 %v3993_v15 }
 0x828   :  { %3356 = vmatprep.subr.bf16.mxu0 %v3973_v4 }
 0x8ed   :  { %v839_v62 = vpop.f32.mrb[8].mxu0 }
 0x8ee   :  { %v3469_v63 = vadd.f32 %v839_v62, %v3938_v29  ;;  %v841_v5 = vpop.f32.mrb[9].mxu0 }
 0x8ef   :  { %v3470_v35 = vadd.f32 %v841_v5, %v3942_v38 }
 0x8f0   :  { %v846_v34 = vmul.f32 0.5, %v3469_v63 }
 0x8f1   :  { %v847_v55 = vmul.f32 0.5, %v3470_v35 }
 0x8f2   :  { %3638 = vtanh.f32 %v846_v34 }
 0x8f3   :  { %3640 = vtanh.f32 %v3470_v35 }
 0x8f4   :  { %3642 = vtanh.f32 %v847_v55 }
 0x8fc   :  { %v3639_v8 = vpop.eup %3638 }
 0x8fd   :  { %v850_v50 = vmul.f32 0.5, %v3639_v8  ;;  %v3641_v11 = vpop.eup %3640 }
 0x8fe   :  { %v3643_v19 = vpop.eup %3642 }
 0x8ff   :  { %v852_v9 = vadd.f32 0.5, %v850_v50  ;;  %v851_v23 = vmul.f32 0.5, %v3643_v19 }
 0x901   :  { %v856_v37 = vmul.f32 %v3641_v11, %v852_v9  ;;  %v855_v14 = vmul.f32 %v852_v9, %v759_v54  ;;  %v853_v31 = vadd.f32 0.5, %v851_v23 }
 0x903   :  { %858 = vrot.lane.b32.xlu0 %v856_v37, %s3785_s10 }
 0x975   :  { %v859_v16 = vpop.permute.xlu0 %858 }
 0x976   :  { %v861_v17 = vadd.f32 %v859_v16, %v855_v14 }
 0x978   :  { %3644 = vtanh.f32 %v861_v17 }
 0x982   :  { %v3645_v40 = vpop.eup %3644 }
 0x983   :  { %v4150_v43 = vmul.f32 %v3645_v40, %v853_v31  ;;  %v1287_v40 = vmul.f32 0.5, %v4070_v26 }
 0x985   :  { %865 = vrot.lane.b32.xlu1 %v4150_v43, %s3785_s10 }
 0x9f7   :  { %v866_v44 = vpop.permute.xlu1 %865 }
 0x9f8   :  { %868 = vst.msk [vmem:[#allocation2 + $0x20] sm:$0xff] %vm281_vm0, %v866_v44  ;;  %2899 = vmatmul.mubr.msk.f32.vlgmr.msra.gmra.mrb[10].mxu0 %vm460_vm3, %v866_v44 }
 0x9f9   :  { %3358 = vmatpush1.bf16.msra.mxu0 %v3975_v49  ;;  %1041 = vmatprep.mubr.f32.mxu0 %v3784_v20 }
 0x9fa   :  { %3360 = vmatprep.subr.bf16.mxu0 %v3979_v58 }
 0x9fd   :  { %3362 = vmatpush1.bf16.msra.mxu0 %v3981_v60 }
 0x9fe   :  { %3364 = vmatprep.subr.bf16.mxu0 %v3985_v2 }
 0x9ff   :  { %v4161_v45 = vld [vmem:[#allocation2 + $0x20] sm:$0xff] }
 0xa00   :  { %3095 = vmatmul.mubr.msk.f32.gmra.mrb[10].mxu1 %vm281_vm0, %v4161_v45 }
 0xa01   :  { %3366 = vmatpush1.bf16.msra.mxu0 %v3987_v6  ;;  %3097 = vmatprep.mubr.msk.f32.mxu1 %vm3787_vm2, %v3784_v20 }
 0xa02   :  { %3368 = vmatprep.subr.bf16.mxu0 %v3990_v12 }
 0xa05   :  { %3370 = vmatpush1.bf16.msra.mxu0 %v3993_v15 }
 0xa06   :  { %3372 = vmatprep.subr.bf16.mxu0 %v3973_v4 }
 0xacb   :  { %v941_v47 = vpop.f32.mrb[10].mxu0 }
 0xacc   :  { %v3471_v10 = vadd.f32 %v941_v47, %v3938_v29  ;;  %v943_v21 = vpop.f32.mrb[11].mxu0 }
 0xacd   :  { %v3472_v13 = vadd.f32 %v943_v21, %v3942_v38 }
 0xace   :  { %v948_v48 = vmul.f32 0.5, %v3471_v10 }
 0xacf   :  { %v949_v54 = vmul.f32 0.5, %v3472_v13 }
 0xad0   :  { %3646 = vtanh.f32 %v948_v48 }
 0xad1   :  { %3648 = vtanh.f32 %v3472_v13 }
 0xad2   :  { %3650 = vtanh.f32 %v949_v54 }
 0xada   :  { %v3647_v1 = vpop.eup %3646 }
 0xadb   :  { %v952_v51 = vmul.f32 0.5, %v3647_v1  ;;  %v3649_v7 = vpop.eup %3648 }
 0xadc   :  { %v3651_v22 = vpop.eup %3650 }
 0xadd   :  { %v954_v46 = vadd.f32 0.5, %v952_v51  ;;  %v953_v57 = vmul.f32 0.5, %v3651_v22 }
 0xadf   :  { %v958_v53 = vmul.f32 %v3649_v7, %v954_v46  ;;  %v957_v3 = vmul.f32 %v954_v46, %v861_v17  ;;  %v955_v27 = vadd.f32 0.5, %v953_v57 }
 0xae1   :  { %960 = vrot.lane.b32.xlu0 %v958_v53, %s3785_s10 }
 0xb53   :  { %v961_v4 = vpop.permute.xlu0 %960 }
 0xb54   :  { %v963_v56 = vadd.f32 %v961_v4, %v957_v3 }
 0xb56   :  { %3652 = vtanh.f32 %v963_v56 }
 0xb60   :  { %v3653_v62 = vpop.eup %3652 }
 0xb61   :  { %v4174_v63 = vmul.f32 %v3653_v62, %v955_v27  ;;  %v1625_v27 = vld [vmem:[#allocation4 + $0x200] sm:$0xff]  ;;  %v1626_v62 = vld [vmem:[#allocation4 + $0x210] sm:$0xff] }
 0xb63   :  { %967 = vrot.lane.b32.xlu1 %v4174_v63, %s3785_s10 }
 0xbd5   :  { %v968_v5 = vpop.permute.xlu1 %967 }
 0xbd6   :  { %970 = vst.msk [vmem:[#allocation2 + $0x28] sm:$0xff] %vm281_vm0, %v968_v5  ;;  %2900 = vmatmul.mubr.msk.f32.vlgmr.msra.gmra.mrb[12].mxu0 %vm460_vm3, %v968_v5  ;;  %v3404_v5 = vpack.c.bf16 %v1626_v62, %v1625_v27 }
 0xbd7   :  { %3374 = vmatpush1.bf16.msra.mxu0 %v3975_v49  ;;  %1143 = vmatprep.mubr.f32.mxu0 %v3784_v20 }
 0xbd8   :  { %3376 = vmatprep.subr.bf16.mxu0 %v3979_v58  ;;  %3405 = vmatpush3.bf16.msra.mxu1 %v3404_v5 }
 0xbd9   :  { %3406 = vmatprep.subr.bf16.mxu1 %v3786_v18 }
 0xbdb   :  { %3378 = vmatpush1.bf16.msra.mxu0 %v3981_v60 }
 0xbdc   :  { %3380 = vmatprep.subr.bf16.mxu0 %v3985_v2 }
 0xbdd   :  { %v4185_v34 = vld [vmem:[#allocation2 + $0x28] sm:$0xff] }
 0xbde   :  { %3098 = vmatmul.mubr.msk.f32.gmra.mrb[12].mxu1 %vm281_vm0, %v4185_v34 }
 0xbdf   :  { %3382 = vmatpush1.bf16.msra.mxu0 %v3987_v6  ;;  %3100 = vmatprep.mubr.msk.f32.mxu1 %vm3787_vm2, %v3784_v20 }
 0xbe0   :  { %3384 = vmatprep.subr.bf16.mxu0 %v3990_v12 }
 0xbe3   :  { %3386 = vmatpush1.bf16.msra.mxu0 %v3993_v15 }
 0xbe4   :  { %3391 = vmatprep.subr.bf16.mxu0 %v3786_v18 }
 0xca9   :  { %v1043_v49 = vpop.f32.mrb[12].mxu0 }
 0xcaa   :  { %v3473_v58 = vadd.f32 %v1043_v49, %v3938_v29  ;;  %v1045_v60 = vpop.f32.mrb[13].mxu0 }
 0xcab   :  { %v3474_v35 = vadd.f32 %v1045_v60, %v3942_v38 }
 0xcac   :  { %v1050_v2 = vmul.f32 0.5, %v3473_v58 }
 0xcad   :  { %v1051_v12 = vmul.f32 0.5, %v3474_v35 }
 0xcae   :  { %3654 = vtanh.f32 %v1050_v2  ;;  %v1628_v2 = vld [vmem:[#allocation4 + $0x230] sm:$0xff] }
 0xcaf   :  { %3656 = vtanh.f32 %v3474_v35 }
 0xcb0   :  { %3658 = vtanh.f32 %v1051_v12  ;;  %v1335_v12 = vld [vmem:[#allocation4 + $0x1a0] sm:$0xff] }
 0xcb8   :  { %v3655_v8 = vpop.eup %3654 }
 0xcb9   :  { %v1054_v6 = vmul.f32 0.5, %v3655_v8  ;;  %v3657_v9 = vpop.eup %3656 }
 0xcba   :  { %v3659_v14 = vpop.eup %3658 }
 0xcbb   :  { %v1056_v50 = vadd.f32 0.5, %v1054_v6  ;;  %v1055_v16 = vmul.f32 0.5, %v3659_v14  ;;  %v1333_v6 = vld [vmem:[#allocation4 + $0x180] sm:$0xff] }
 0xcbd   :  { %v1060_v11 = vmul.f32 %v3657_v9, %v1056_v50  ;;  %v1059_v15 = vmul.f32 %v1056_v50, %v963_v56  ;;  %v1057_v17 = vadd.f32 0.5, %v1055_v16  ;;  %v1334_v50 = vld [vmem:[#allocation4 + $0x190] sm:$0xff] }
 0xcbe   :  { %v3392_v9 = vpack.c.bf16 %v1334_v50, %v1333_v6 }
 0xcbf   :  { %1062 = vrot.lane.b32.xlu0 %v1060_v11, %s3785_s10 }
 0xd31   :  { %v1063_v37 = vpop.permute.xlu0 %1062 }
 0xd32   :  { %v1065_v55 = vadd.f32 %v1063_v37, %v1059_v15  ;;  %v1336_v15 = vld [vmem:[#allocation4 + $0x1b0] sm:$0xff] }
 0xd33   :  { %v3395_v37 = vpack.c.bf16 %v1336_v15, %v1335_v12 }
 0xd34   :  { %3660 = vtanh.f32 %v1065_v55 }
 0xd35   :  { %3662 = vtanh.f32 %v4073_v42 }
 0xd36   :  { %3664 = vtanh.f32 %v1287_v40  ;;  %v1621_v40 = vld [vmem:[#allocation4 + $0x1c0] sm:$0xff] }
 0xd3e   :  { %v3661_v19 = vpop.eup %3660 }
 0xd3f   :  { %v1067_v23 = vmul.f32 %v3661_v19, %v1057_v17  ;;  %v3663_v31 = vpop.eup %3662 }
 0xd40   :  { %v3665_v44 = vpop.eup %3664 }
 0xd41   :  { %1069 = vrot.lane.b32.xlu1 %v1067_v23, %s3785_s10  ;;  %v1291_v47 = vmul.f32 0.5, %v3665_v44  ;;  %v1622_v44 = vld [vmem:[#allocation4 + $0x1d0] sm:$0xff] }
 0xd43   :  { %v1293_v42 = vadd.f32 0.5, %v1291_v47 }
 0xd45   :  { %1298 = vrot.lane.b32.xlu1 %v3663_v31, %s3785_s10 }
 0xdb3   :  { %v1070_v10 = vpop.permute.xlu1 %1069 }
 0xdb4   :  { %1072 = vst.msk [vmem:[#allocation2 + $0x30] sm:$0xff] %vm281_vm0, %v1070_v10  ;;  %2901 = vmatmul.mubr.msk.f32.vlgmr.msra.gmra.mrb[14].mxu0 %vm460_vm3, %v1070_v10 }
 0xdb5   :  { %3047 = vmatprep.mubr.msk.f32.mxu0 %vm3787_vm2, %v3784_v20  ;;  %3393 = vmatpush3.bf16.msra.mxu0 %v3392_v9 }
 0xdb6   :  { %3394 = vmatprep.subr.bf16.mxu0 %v3786_v18 }
 0xdb7   :  { %v1299_v21 = vpop.permute.xlu1 %1298 }
 0xdb8   :  { %v4206_v48 = vmul.f32 %v1299_v21, %v1293_v42  ;;  %v3410_v42 = vpack.c.bf16 %v1622_v44, %v1621_v40  ;;  %v1852_v44 = vld [vmem:[#allocation4 + $0x280] sm:$0xff] }
 0xdb9   :  { %3396 = vmatpush3.bf16.msra.mxu0 %v3395_v37 }
 0xdba   :  { %1303 = vrot.lane.b32.xlu1 %v4206_v48, %s3785_s10 }
 0xdbb   :  { %v4210_v13 = vld [vmem:[#allocation2 + $0x30] sm:$0xff] }
 0xdbc   :  { %3101 = vmatmul.mubr.msk.f32.gmra.mrb[14].mxu1 %vm281_vm0, %v4210_v13 }
 0xdbd   :  { %3103 = vmatprep.mubr.msk.f32.mxu1 %vm3787_vm2, %v3784_v20 }
 0xdbe   :  { %1073 = vrot.lane.b32.xlu1 %v1067_v23, %s3788_s11 }
 0xdc2   :  { %869 = vrot.lane.b32.xlu1 %v4150_v43, %s3788_s11 }
 0xdc6   :  { %665 = vrot.lane.b32.xlu1 %v4102_v33, %s3788_s11 }
 0xdca   :  { %456 = vrot.lane.b32.xlu1 %v4000_v39, %s3788_s11 }
 0xe2c   :  { %v1304_v26 = vpop.permute.xlu1 %1303 }
 0xe2d   :  { %1306 = vst.msk [vmem:[#allocation2 + $0x40] sm:$0xff] %vm281_vm0, %v1304_v26  ;;  %v1623_v26 = vld [vmem:[#allocation4 + $0x1e0] sm:$0xff] }
 0xe30   :  { %v1074_v1 = vpop.permute.xlu1 %1073 }
 0xe31   :  { %1076 = vst.msk [vmem:[#allocation3 + $0x8] sm:$0xff] %vm281_vm0, %v1074_v1  ;;  %v1624_v1 = vld [vmem:[#allocation4 + $0x1f0] sm:$0xff] }
 0xe34   :  { %v870_v51 = vpop.permute.xlu1 %869 }
 0xe35   :  { %872 = vst.msk [vmem:[#allocation3 + $0x18] sm:$0xff] %vm281_vm0, %v870_v51  ;;  %v3413_v51 = vpack.c.bf16 %v1624_v1, %v1623_v26 }
 0xe38   :  { %v666_v46 = vpop.permute.xlu1 %665  ;;  %v1321_v10 = vld [vmem:[#allocation3 + $0x8] sm:$0xff] }
 0xe39   :  { %668 = vst.msk [vmem:[#allocation3 + $0x28] sm:$0xff] %vm281_vm0, %v666_v46 }
 0xe3c   :  { %v457_v7 = vpop.permute.xlu1 %456  ;;  %v1323_v46 = vld [vmem:[#allocation3 + $0x18] sm:$0xff] }
 0xe3d   :  { %459 = vst.msk [vmem:[#allocation3 + $0x38] sm:$0xff] %vm281_vm0, %v457_v7 }
 0xe87   :  { %v1145_v43 = vpop.f32.mrb[14].mxu0 }
 0xe88   :  { %v3475_v33 = vadd.f32 %v1145_v43, %v3938_v29  ;;  %v1147_v53 = vpop.f32.mrb[15].mxu0  ;;  %v1325_v43 = vld [vmem:[#allocation3 + $0x28] sm:$0xff] }
 0xe89   :  { %v3476_v54 = vadd.f32 %v1147_v53, %v3942_v38  ;;  %v1627_v38 = vld [vmem:[#allocation4 + $0x220] sm:$0xff]  ;;  %v1327_v53 = vld [vmem:[#allocation3 + $0x38] sm:$0xff] }
 0xe8a   :  { %v1152_v39 = vmul.f32 0.5, %v3475_v33  ;;  %v3407_v35 = vpack.c.bf16 %v1628_v2, %v1627_v38 }
 0xe8b   :  { %v1153_v29 = vmul.f32 0.5, %v3476_v54 }
 0xe8c   :  { %3666 = vtanh.f32 %v1152_v39  ;;  %3408 = vmatpush3.bf16.msra.mxu1 %v3407_v35 }
 0xe8d   :  { %3668 = vtanh.f32 %v3476_v54  ;;  %3409 = vmatprep.subr.bf16.mxu1 %v3786_v18 }
 0xe8e   :  { %3670 = vtanh.f32 %v1153_v29 }
 0xe96   :  { %v3667_v3 = vpop.eup %3666 }
 0xe97   :  { %v1156_v4 = vmul.f32 0.5, %v3667_v3  ;;  %v3669_v22 = vpop.eup %3668 }
 0xe98   :  { %v3671_v8 = vpop.eup %3670 }
 0xe99   :  { %v1158_v56 = vadd.f32 0.5, %v1156_v4  ;;  %v1157_v11 = vmul.f32 0.5, %v3671_v8 }
 0xe9b   :  { %v1162_v57 = vmul.f32 %v3669_v22, %v1158_v56  ;;  %v1161_v49 = vmul.f32 %v1158_v56, %v1065_v55  ;;  %v1159_v55 = vadd.f32 0.5, %v1157_v11 }
 0xe9d   :  { %1164 = vrot.lane.b32.xlu0 %v1162_v57, %s3785_s10 }
 0xf0f   :  { %v1165_v58 = vpop.permute.xlu0 %1164 }
 0xf10   :  { %v1167_v60 = vadd.f32 %v1165_v58, %v1161_v49 }
 0xf12   :  { %3672 = vtanh.f32 %v1167_v60 }
 0xf1c   :  { %v3673_v14 = vpop.eup %3672 }
 0xf1d   :  { %v1169_v16 = vmul.f32 %v3673_v14, %v1159_v55 }
 0xf1f   :  { %1171 = vrot.lane.b32.xlu0 %v1169_v16, %s3785_s10 }
 0xf23   :  { %1175 = vrot.lane.b32.xlu0 %v1169_v16, %s3788_s11 }
 0xf27   :  { %971 = vrot.lane.b32.xlu0 %v4174_v63, %s3788_s11  ;;  %v4253_v63 = vld [vmem:[#allocation2 + $0x40] sm:$0xff] }
 0xf2b   :  { %767 = vrot.lane.b32.xlu0 %v4126_v0, %s3788_s11 }
 0xf2f   :  { %563 = vrot.lane.b32.xlu0 %v4078_v52, %s3788_s11 }
 0xf33   :  { %1307 = vrot.lane.b32.xlu0 %v4206_v48, %s3788_s11 }
 0xf91   :  { %v1172_v17 = vpop.permute.xlu0 %1171 }
 0xf92   :  { %1174 = vst.msk [vmem:[#allocation2 + $0x38] sm:$0xff] %vm281_vm0, %v1172_v17 }
 0xf95   :  { %v1176_v19 = vpop.permute.xlu0 %1175 }
 0xf96   :  { %1178 = vst.msk [vmem:[#allocation3] sm:$0xff] %vm281_vm0, %v1176_v19 }
 0xf99   :  { %v972_v23 = vpop.permute.xlu0 %971  ;;  %v4246_v31 = vld [vmem:[#allocation2 + $0x38] sm:$0xff] }
 0xf9a   :  { %974 = vst.msk [vmem:[#allocation3 + $0x10] sm:$0xff] %vm281_vm0, %v972_v23  ;;  %3104 = vmatmul.mubr.msk.f32.gmra.mrb[16].mxu1 %vm281_vm0, %v4246_v31 }
 0xf9b   :  { %3106 = vmatprep.mubr.msk.f32.mxu1 %vm3787_vm2, %v3784_v20 }
 0xf9d   :  { %v768_v52 = vpop.permute.xlu0 %767  ;;  %v1320_v0 = vld [vmem:[#allocation3] sm:$0xff] }
 0xf9e   :  { %770 = vst.msk [vmem:[#allocation3 + $0x20] sm:$0xff] %vm281_vm0, %v768_v52  ;;  %3048 = vmatmul.mubr.msk.f32.vlgmr.msra.gmra.mrb[16].mxu0 %vm281_vm0, %v1320_v0  ;;  %3107 = vmatmul.mubr.msk.f32.gmra.mrb[18].mxu1 %vm281_vm0, %v4253_v63  ;;  %v1849_v52 = vld [vmem:[#allocation4 + $0x250] sm:$0xff] }
 0xf9f   :  { %3050 = vmatprep.mubr.msk.f32.mxu0 %vm3787_vm2, %v3784_v20  ;;  %3117 = vmatprep.mubr.msk.f32.mxu1 %vm3787_vm2, %v3784_v20 }
 0xfa1   :  { %v564_v47 = vpop.permute.xlu0 %563  ;;  %v1322_v48 = vld [vmem:[#allocation3 + $0x10] sm:$0xff] }
 0xfa2   :  { %566 = vst.msk [vmem:[#allocation3 + $0x30] sm:$0xff] %vm281_vm0, %v564_v47  ;;  %3051 = vmatmul.mubr.msk.f32.gmra.mrb[18].mxu0 %vm281_vm0, %v1321_v10 }
 0xfa3   :  { %3053 = vmatprep.mubr.msk.f32.mxu0 %vm3787_vm2, %v3784_v20 }
 0xfa5   :  { %v1308_v21 = vpop.permute.xlu0 %1307  ;;  %v1324_v7 = vld [vmem:[#allocation3 + $0x20] sm:$0xff] }
 0xfa6   :  { %1310 = vst.msk [vmem:[#allocation3 + $0x40] sm:$0xff] %vm281_vm0, %v1308_v21  ;;  %3054 = vmatmul.mubr.msk.f32.gmra.mrb[20].mxu0 %vm281_vm0, %v1322_v48  ;;  %3118 = vmatmul.mubr.msk.f32.vlgmr.msra.gmra.mrb[18].mxu1 %vm281_vm0, %v1320_v0  ;;  %v1850_v0 = vld [vmem:[#allocation4 + $0x260] sm:$0xff] }
 0xfa7   :  { %3411 = vmatpush3.bf16.msra.mxu1 %v3410_v42  ;;  %3056 = vmatprep.mubr.msk.f32.mxu0 %vm3787_vm2, %v3784_v20  ;;  %v4369_v40 = vpack.c.bf16 %v1850_v0, %v1849_v52 }
 0xfa8   :  { %3120 = vmatprep.mubr.msk.f32.mxu1 %vm3787_vm2, %v3784_v20  ;;  %3412 = vmatprep.subr.bf16.mxu1 %v3786_v18 }
 0xfa9   :  { %v1326_v33 = vld [vmem:[#allocation3 + $0x30] sm:$0xff] }
 0xfaa   :  { %3057 = vmatmul.mubr.msk.f32.gmra.mrb[22].mxu0 %vm281_vm0, %v1323_v46  ;;  %3121 = vmatmul.mubr.msk.f32.gmra.mrb[16].mxu1 %vm281_vm0, %v1321_v10 }
 0xfab   :  { %3059 = vmatprep.mubr.msk.f32.mxu0 %vm3787_vm2, %v3784_v20  ;;  %3123 = vmatprep.mubr.msk.f32.mxu1 %vm3787_vm2, %v3784_v20 }
 0xfac   :  { %3414 = vmatpush3.bf16.msra.mxu1 %v3413_v51 }
 0xfad   :  { %3415 = vmatprep.subr.bf16.mxu1 %v3786_v18  ;;  %v1328_v39 = vld [vmem:[#allocation3 + $0x40] sm:$0xff] }
 0xfae   :  { %3060 = vmatmul.mubr.msk.f32.gmra.mrb[24].mxu0 %vm281_vm0, %v1324_v7  ;;  %3124 = vmatmul.mubr.msk.f32.gmra.mrb[14].mxu1 %vm281_vm0, %v1322_v48 }
 0xfaf   :  { %3062 = vmatprep.mubr.msk.f32.mxu0 %vm3787_vm2, %v3784_v20  ;;  %3126 = vmatprep.mubr.msk.f32.mxu1 %vm3787_vm2, %v3784_v20 }
 0xfb2   :  { %3063 = vmatmul.mubr.msk.f32.gmra.mrb[26].mxu0 %vm281_vm0, %v1325_v43  ;;  %3127 = vmatmul.mubr.msk.f32.gmra.mrb[12].mxu1 %vm281_vm0, %v1323_v46 }
 0xfb3   :  { %3065 = vmatprep.mubr.msk.f32.mxu0 %vm3787_vm2, %v3784_v20  ;;  %3129 = vmatprep.mubr.msk.f32.mxu1 %vm3787_vm2, %v3784_v20 }
 0xfb6   :  { %3066 = vmatmul.mubr.msk.f32.gmra.mrb[28].mxu0 %vm281_vm0, %v1326_v33  ;;  %3130 = vmatmul.mubr.msk.f32.gmra.mrb[10].mxu1 %vm281_vm0, %v1324_v7 }
 0xfb7   :  { %3068 = vmatprep.mubr.msk.f32.mxu0 %vm3787_vm2, %v3784_v20  ;;  %3132 = vmatprep.mubr.msk.f32.mxu1 %vm3787_vm2, %v3784_v20 }
 0xfba   :  { %3069 = vmatmul.mubr.msk.f32.gmra.mrb[30].mxu0 %vm281_vm0, %v1327_v53  ;;  %3133 = vmatmul.mubr.msk.f32.gmra.mrb[8].mxu1 %vm281_vm0, %v1325_v43 }
 0xfbb   :  { %3071 = vmatprep.mubr.msk.f32.mxu0 %vm3787_vm2, %v3784_v20  ;;  %3135 = vmatprep.mubr.msk.f32.mxu1 %vm3787_vm2, %v3784_v20 }
 0xfbe   :  { %3072 = vmatmul.mubr.msk.f32.gmra.mrb[32].mxu0 %vm281_vm0, %v1328_v39  ;;  %3136 = vmatmul.mubr.msk.f32.gmra.mrb[6].mxu1 %vm281_vm0, %v1326_v33 }
 0xfbf   :  { %3138 = vmatprep.mubr.msk.f32.mxu1 %vm3787_vm2, %v3784_v20 }
 0xfc2   :  { %3139 = vmatmul.mubr.msk.f32.gmra.mrb[4].mxu1 %vm281_vm0, %v1327_v53 }
 0xfc3   :  { %3141 = vmatprep.mubr.msk.f32.mxu1 %vm3787_vm2, %v3784_v20 }
 0xfc6   :  { %3142 = vmatmul.mubr.msk.f32.gmra.mrb[2].mxu1 %vm281_vm0, %v1328_v39 }
 0xfc7   :  { %3152 = vmatprep.mubr.msk.f32.mxu1 %vm3787_vm2, %v3784_v20 }
 0xfca   :  { %3153 = vmatmul.mubr.msk.f32.vlgmr.msra.gmra.mrb[18].mxu1 %vm281_vm0, %v4058_v36 }
 0xfcb   :  { %3155 = vmatprep.mubr.msk.f32.mxu1 %vm3787_vm2, %v3784_v20  ;;  %3417 = vmatpush3.bf16.msra.mxu1 %v4369_v40 }
 0xfcc   :  { %3418 = vmatprep.subr.bf16.mxu1 %v3786_v18 }
 0xfce   :  { %3156 = vmatmul.mubr.msk.f32.gmra.mrb[16].mxu1 %vm281_vm0, %v4089_v59 }
 0xfcf   :  { %3158 = vmatprep.mubr.msk.f32.mxu1 %vm3787_vm2, %v3784_v20 }
 0xfd2   :  { %3159 = vmatmul.mubr.msk.f32.gmra.mrb[14].mxu1 %vm281_vm0, %v4113_v41  ;;  %v1611_v41 = vld [vmem:[#allocation4 + $0x240] ss:$0 sm:$0xff] }
 0xfd3   :  { %3161 = vmatprep.mubr.msk.f32.mxu1 %vm3787_vm2, %v3784_v20 }
 0xfd6   :  { %3162 = vmatmul.mubr.msk.f32.gmra.mrb[12].mxu1 %vm281_vm0, %v4137_v61 }
 0xfd7   :  { %3164 = vmatprep.mubr.msk.f32.mxu1 %vm3787_vm2, %v3784_v20 }
 0xfda   :  { %3165 = vmatmul.mubr.msk.f32.gmra.mrb[10].mxu1 %vm281_vm0, %v4161_v45 }
 0xfdb   :  { %3167 = vmatprep.mubr.msk.f32.mxu1 %vm3787_vm2, %v3784_v20 }
 0xfde   :  { %3168 = vmatmul.mubr.msk.f32.gmra.mrb[8].mxu1 %vm281_vm0, %v4185_v34 }
 0xfdf   :  { %3170 = vmatprep.mubr.msk.f32.mxu1 %vm3787_vm2, %v3784_v20 }
 0xfe2   :  { %3171 = vmatmul.mubr.msk.f32.gmra.mrb[6].mxu1 %vm281_vm0, %v4210_v13 }
 0xfe3   :  { %3173 = vmatprep.mubr.msk.f32.mxu1 %vm3787_vm2, %v3784_v20 }
 0xfe6   :  { %3174 = vmatmul.mubr.msk.f32.gmra.mrb[4].mxu1 %vm281_vm0, %v4246_v31 }
 0xfe7   :  { %3176 = vmatprep.mubr.msk.f32.mxu1 %vm3787_vm2, %v3784_v20 }
 0xfea   :  { %3177 = vmatmul.mubr.msk.f32.gmra.mrb[2].mxu1 %vm281_vm0, %v4253_v63  ;;  %v1851_v63 = vld [vmem:[#allocation4 + $0x270] sm:$0xff] }
 0xfeb   :  { %3187 = vmatprep.mubr.msk.f32.mxu1 %vm3787_vm2, %v3784_v20  ;;  %v4372_v47 = vpack.c.bf16 %v1852_v44, %v1851_v63 }
 0xfed   :  { %3420 = vmatpush3.bf16.msra.mxu1 %v4372_v47 }
 0xfee   :  { %3421 = vmatprep.subr.bf16.mxu1 %v3786_v18 }
0x1071   :  { %v1430_v36 = vpop.f32.mrb[16].mxu0 }
0x1072   :  { %v3049_v59 = vpop.f32.mrb[17].mxu0  ;;  %v3477_v11 = vadd.f32 %v1611_v41, %v1430_v36 }
0x1075   :  { %v1435_v61 = vpop.f32.mrb[18].mxu0 }
0x1076   :  { %v4352_v45 = vadd.f32 %v1611_v41, %v1435_v61  ;;  %v3052_v34 = vpop.f32.mrb[19].mxu0 }
0x1079   :  { %v1440_v13 = vpop.f32.mrb[20].mxu0 }
0x107a   :  { %v4354_v54 = vadd.f32 %v1611_v41, %v1440_v13  ;;  %v3055_v3 = vpop.f32.mrb[21].mxu0 }
0x107d   :  { %v1445_v4 = vpop.f32.mrb[22].mxu0 }
0x107e   :  { %v4356_v56 = vadd.f32 %v1611_v41, %v1445_v4  ;;  %v3058_v22 = vpop.f32.mrb[23].mxu0 }
0x1081   :  { %v1450_v57 = vpop.f32.mrb[24].mxu0 }
0x1082   :  { %v4358_v27 = vadd.f32 %v1611_v41, %v1450_v57  ;;  %v3061_v62 = vpop.f32.mrb[25].mxu0 }
0x1085   :  { %v1455_v5 = vpop.f32.mrb[26].mxu0 }
0x1086   :  { %v4360_v29 = vadd.f32 %v1611_v41, %v1455_v5  ;;  %v3064_v49 = vpop.f32.mrb[27].mxu0 }
0x1089   :  { %v1460_v58 = vpop.f32.mrb[28].mxu0 }
0x108a   :  { %v4362_v60 = vadd.f32 %v1611_v41, %v1460_v58  ;;  %v3067_v38 = vpop.f32.mrb[29].mxu0 }
0x108d   :  { %v1465_v2 = vpop.f32.mrb[30].mxu0 }
0x108e   :  { %v4364_v35 = vadd.f32 %v1611_v41, %v1465_v2  ;;  %v3070_v8 = vpop.f32.mrb[31].mxu0 }
0x1091   :  { %v1470_v6 = vpop.f32.mrb[32].mxu0 }
0x1092   :  { %v4366_v50 = vadd.f32 %v1611_v41, %v1470_v6  ;;  %v3073_v9 = vpop.f32.mrb[33].mxu0 }
0x10bd   :  { %v1845_v12 = vpop.f32.mrb[2].mxu1 }
0x10be   :  { %v3478_v15 = vadd.f32 %v3477_v11, %v1845_v12  ;;  %v3178_v37 = vpop.f32.mrb[3].mxu1 }
0x10c0   :  { %3674 = vtanh.f32 %v3478_v15  ;;  %v1858_v14 = vmul.f32 0.5, %v3478_v15 }
0x10c2   :  { %3676 = vtanh.f32 %v1858_v14 }
0x10ca   :  { %v3675_v55 = vpop.eup %3674 }
0x10cb   :  { %1864 = vrot.lane.b32.xlu1 %v3675_v55, %s3785_s10 }
0x10cc   :  { %v3677_v16 = vpop.eup %3676 }
0x10cd   :  { %v1860_v17 = vmul.f32 0.5, %v3677_v16 }
0x10cf   :  { %v1861_v19 = vadd.f32 0.5, %v1860_v17 }
0x113d   :  { %v1865_v23 = vpop.permute.xlu1 %1864 }
0x113e   :  { %v1867_v31 = vmul.f32 %v1865_v23, %v1861_v19 }
0x1140   :  { %3678 = vtanh.f32 %v1867_v31 }
0x114a   :  { %v3679_v10 = vpop.eup %3678 }
0x114b   :  { %1870 = vrot.lane.b32.xlu0 %v3679_v10, %s3789_s12 }
0x11bd   :  { %v1871_v42 = vpop.permute.xlu0 %1870 }
0x11be   :  { %v4378_v21 = vmul.f32 %v1871_v42, %v1861_v19 }
0x11c0   :  { %1896 = vrot.lane.b32.xlu1 %v4378_v21, %s3788_s11 }
0x11c4   :  { %1977 = vrot.lane.b32.xlu1 %v1867_v31, %s3788_s11 }
0x1232   :  { %v1897_v48 = vpop.permute.xlu1 %1896 }
0x1233   :  { %3188 = vmatmul.mubr.msk.f32.vlgmr.msra.gmra.mrb[4].mxu1 %vm281_vm0, %v1897_v48 }
0x1234   :  { %3423 = vmatpush3.bf16.msra.mxu1 %v4369_v40  ;;  %3198 = vmatprep.mubr.msk.f32.mxu1 %vm3787_vm2, %v3784_v20 }
0x1235   :  { %3424 = vmatprep.subr.bf16.mxu1 %v3786_v18 }
0x1236   :  { %v1978_v59 = vpop.permute.xlu1 %1977 }
0x1238   :  { %3426 = vmatpush3.bf16.msra.mxu1 %v4372_v47 }
0x1239   :  { %3427 = vmatprep.subr.bf16.mxu1 %v3786_v18 }
0x1306   :  { %v1966_v26 = vpop.f32.mrb[4].mxu1 }
0x1307   :  { %v3480_v1 = vadd.f32 %v4352_v45, %v1966_v26  ;;  %v3189_v51 = vpop.f32.mrb[5].mxu1 }
0x1309   :  { %3680 = vtanh.f32 %v3480_v1  ;;  %v1971_v7 = vmul.f32 0.5, %v3480_v1 }
0x130b   :  { %3682 = vtanh.f32 %v1971_v7 }
0x1313   :  { %v3681_v46 = vpop.eup %3680 }
0x1314   :  { %1982 = vrot.lane.b32.xlu0 %v3681_v46, %s3785_s10 }
0x1315   :  { %v3683_v43 = vpop.eup %3682 }
0x1316   :  { %v1973_v33 = vmul.f32 0.5, %v3683_v43 }
0x1318   :  { %v1974_v53 = vadd.f32 0.5, %v1973_v33 }
0x131a   :  { %v1980_v41 = vmul.f32 %v1978_v59, %v1974_v53 }
0x1386   :  { %v1983_v39 = vpop.permute.xlu0 %1982 }
0x1387   :  { %v1985_v36 = vmul.f32 %v1983_v39, %v1974_v53 }
0x1389   :  { %1987 = vrot.lane.b32.xlu0 %v1985_v36, %s3788_s11 }
0x13fb   :  { %v1988_v61 = vpop.permute.xlu0 %1987 }
0x13fc   :  { %v1990_v34 = vadd.f32 %v1988_v61, %v1980_v41 }
0x13fe   :  { %3684 = vtanh.f32 %v1990_v34 }
0x1408   :  { %v3685_v45 = vpop.eup %3684 }
0x1409   :  { %1993 = vrot.lane.b32.xlu1 %v3685_v45, %s3785_s10 }
0x147b   :  { %v1994_v13 = vpop.permute.xlu1 %1993 }
0x147c   :  { %v4394_v3 = vmul.f32 %v1994_v13, %v1974_v53 }
0x147e   :  { %2019 = vrot.lane.b32.xlu0 %v4394_v3, %s3788_s11 }
0x14f0   :  { %v2020_v4 = vpop.permute.xlu0 %2019 }
0x14f1   :  { %3199 = vmatmul.mubr.msk.f32.vlgmr.msra.gmra.mrb[6].mxu1 %vm281_vm0, %v2020_v4 }
0x14f2   :  { %3429 = vmatpush3.bf16.msra.mxu1 %v4369_v40  ;;  %3209 = vmatprep.mubr.msk.f32.mxu1 %vm3787_vm2, %v3784_v20 }
0x14f3   :  { %3430 = vmatprep.subr.bf16.mxu1 %v3786_v18 }
0x14f6   :  { %3432 = vmatpush3.bf16.msra.mxu1 %v4372_v47 }
0x14f7   :  { %3433 = vmatprep.subr.bf16.mxu1 %v3786_v18 }
0x15c4   :  { %v2089_v22 = vpop.f32.mrb[6].mxu1 }
0x15c5   :  { %v3482_v57 = vadd.f32 %v4354_v54, %v2089_v22  ;;  %v3200_v62 = vpop.f32.mrb[7].mxu1 }
0x15c7   :  { %3686 = vtanh.f32 %v3482_v57  ;;  %v2094_v49 = vmul.f32 0.5, %v3482_v57 }
0x15c9   :  { %3688 = vtanh.f32 %v2094_v49 }
0x15d1   :  { %v3687_v5 = vpop.eup %3686 }
0x15d2   :  { %2101 = vrot.lane.b32.xlu1 %v3687_v5, %s3785_s10 }
0x15d3   :  { %v3689_v58 = vpop.eup %3688 }
0x15d4   :  { %v2096_v38 = vmul.f32 0.5, %v3689_v58 }
0x15d6   :  { %v2097_v2 = vadd.f32 0.5, %v2096_v38 }
0x15d8   :  { %v2099_v9 = vmul.f32 %v2097_v2, %v1990_v34 }
0x1644   :  { %v2102_v8 = vpop.permute.xlu1 %2101 }
0x1645   :  { %v2104_v6 = vmul.f32 %v2102_v8, %v2097_v2 }
0x1647   :  { %2106 = vrot.lane.b32.xlu0 %v2104_v6, %s3788_s11 }
0x16b9   :  { %v2107_v11 = vpop.permute.xlu0 %2106 }
0x16ba   :  { %v2109_v12 = vadd.f32 %v2107_v11, %v2099_v9 }
0x16bc   :  { %3690 = vtanh.f32 %v2109_v12 }
0x16c6   :  { %v3691_v15 = vpop.eup %3690 }
0x16c7   :  { %2112 = vrot.lane.b32.xlu1 %v3691_v15, %s3785_s10 }
0x1739   :  { %v2113_v54 = vpop.permute.xlu1 %2112 }
0x173a   :  { %v4409_v37 = vmul.f32 %v2113_v54, %v2097_v2 }
0x173c   :  { %2138 = vrot.lane.b32.xlu0 %v4409_v37, %s3788_s11 }
0x17ae   :  { %v2139_v55 = vpop.permute.xlu0 %2138 }
0x17af   :  { %3210 = vmatmul.mubr.msk.f32.vlgmr.msra.gmra.mrb[8].mxu1 %vm281_vm0, %v2139_v55 }
0x17b0   :  { %3435 = vmatpush3.bf16.msra.mxu1 %v4369_v40  ;;  %3220 = vmatprep.mubr.msk.f32.mxu1 %vm3787_vm2, %v3784_v20 }
0x17b1   :  { %3436 = vmatprep.subr.bf16.mxu1 %v3786_v18 }
0x17b4   :  { %3438 = vmatpush3.bf16.msra.mxu1 %v4372_v47 }
0x17b5   :  { %3439 = vmatprep.subr.bf16.mxu1 %v3786_v18 }
0x1882   :  { %v2208_v14 = vpop.f32.mrb[8].mxu1 }
0x1883   :  { %v3484_v16 = vadd.f32 %v4356_v56, %v2208_v14  ;;  %v3211_v17 = vpop.f32.mrb[9].mxu1 }
0x1885   :  { %3692 = vtanh.f32 %v3484_v16  ;;  %v2213_v23 = vmul.f32 0.5, %v3484_v16 }
0x1887   :  { %3694 = vtanh.f32 %v2213_v23 }
0x188f   :  { %v3693_v19 = vpop.eup %3692 }
0x1890   :  { %2220 = vrot.lane.b32.xlu1 %v3693_v19, %s3785_s10 }
0x1891   :  { %v3695_v31 = vpop.eup %3694 }
0x1892   :  { %v2215_v52 = vmul.f32 0.5, %v3695_v31 }
0x1894   :  { %v2216_v0 = vadd.f32 0.5, %v2215_v52 }
0x1896   :  { %v2218_v10 = vmul.f32 %v2216_v0, %v2109_v12 }
0x1902   :  { %v2221_v63 = vpop.permute.xlu1 %2220 }
0x1903   :  { %v2223_v44 = vmul.f32 %v2221_v63, %v2216_v0 }
0x1905   :  { %2225 = vrot.lane.b32.xlu0 %v2223_v44, %s3788_s11 }
0x1977   :  { %v2226_v42 = vpop.permute.xlu0 %2225 }
0x1978   :  { %v2228_v48 = vadd.f32 %v2226_v42, %v2218_v10 }
0x197a   :  { %3696 = vtanh.f32 %v2228_v48 }
0x1984   :  { %v3697_v26 = vpop.eup %3696 }
0x1985   :  { %2231 = vrot.lane.b32.xlu1 %v3697_v26, %s3785_s10 }
0x19f7   :  { %v2232_v56 = vpop.permute.xlu1 %2231 }
0x19f8   :  { %v4424_v1 = vmul.f32 %v2232_v56, %v2216_v0 }
0x19fa   :  { %2257 = vrot.lane.b32.xlu0 %v4424_v1, %s3788_s11 }
0x1a6c   :  { %v2258_v51 = vpop.permute.xlu0 %2257 }
0x1a6d   :  { %3221 = vmatmul.mubr.msk.f32.vlgmr.msra.gmra.mrb[10].mxu1 %vm281_vm0, %v2258_v51 }
0x1a6e   :  { %3441 = vmatpush3.bf16.msra.mxu1 %v4369_v40  ;;  %3231 = vmatprep.mubr.msk.f32.mxu1 %vm3787_vm2, %v3784_v20 }
0x1a6f   :  { %3442 = vmatprep.subr.bf16.mxu1 %v3786_v18 }
0x1a72   :  { %3444 = vmatpush3.bf16.msra.mxu1 %v4372_v47 }
0x1a73   :  { %3445 = vmatprep.subr.bf16.mxu1 %v3786_v18 }
0x1b40   :  { %v2327_v46 = vpop.f32.mrb[10].mxu1 }
0x1b41   :  { %v3486_v7 = vadd.f32 %v4358_v27, %v2327_v46  ;;  %v3222_v43 = vpop.f32.mrb[11].mxu1 }
0x1b43   :  { %3698 = vtanh.f32 %v3486_v7  ;;  %v2332_v53 = vmul.f32 0.5, %v3486_v7 }
0x1b45   :  { %3700 = vtanh.f32 %v2332_v53 }
0x1b4d   :  { %v3699_v33 = vpop.eup %3698 }
0x1b4e   :  { %2339 = vrot.lane.b32.xlu1 %v3699_v33, %s3785_s10 }
0x1b4f   :  { %v3701_v39 = vpop.eup %3700 }
0x1b50   :  { %v2334_v36 = vmul.f32 0.5, %v3701_v39 }
0x1b52   :  { %v2335_v59 = vadd.f32 0.5, %v2334_v36 }
0x1b54   :  { %v2337_v34 = vmul.f32 %v2335_v59, %v2228_v48 }
0x1bc0   :  { %v2340_v41 = vpop.permute.xlu1 %2339 }
0x1bc1   :  { %v2342_v61 = vmul.f32 %v2340_v41, %v2335_v59 }
0x1bc3   :  { %2344 = vrot.lane.b32.xlu0 %v2342_v61, %s3788_s11 }
0x1c35   :  { %v2345_v45 = vpop.permute.xlu0 %2344 }
0x1c36   :  { %v2347_v13 = vadd.f32 %v2345_v45, %v2337_v34 }
0x1c38   :  { %3702 = vtanh.f32 %v2347_v13 }
0x1c42   :  { %v3703_v4 = vpop.eup %3702 }
0x1c43   :  { %2350 = vrot.lane.b32.xlu1 %v3703_v4, %s3785_s10 }
0x1cb5   :  { %v2351_v27 = vpop.permute.xlu1 %2350 }
0x1cb6   :  { %v4439_v22 = vmul.f32 %v2351_v27, %v2335_v59 }
0x1cb8   :  { %2376 = vrot.lane.b32.xlu0 %v4439_v22, %s3788_s11 }
0x1d2a   :  { %v2377_v57 = vpop.permute.xlu0 %2376 }
0x1d2b   :  { %3232 = vmatmul.mubr.msk.f32.vlgmr.msra.gmra.mrb[12].mxu1 %vm281_vm0, %v2377_v57 }
0x1d2c   :  { %3447 = vmatpush3.bf16.msra.mxu1 %v4369_v40  ;;  %3242 = vmatprep.mubr.msk.f32.mxu1 %vm3787_vm2, %v3784_v20 }
0x1d2d   :  { %3448 = vmatprep.subr.bf16.mxu1 %v3786_v18 }
0x1d30   :  { %3450 = vmatpush3.bf16.msra.mxu1 %v4372_v47 }
0x1d31   :  { %3451 = vmatprep.subr.bf16.mxu1 %v3786_v18 }
0x1dfe   :  { %v2446_v62 = vpop.f32.mrb[12].mxu1 }
0x1dff   :  { %v3488_v5 = vadd.f32 %v4360_v29, %v2446_v62  ;;  %v3233_v49 = vpop.f32.mrb[13].mxu1 }
0x1e01   :  { %3704 = vtanh.f32 %v3488_v5  ;;  %v2451_v38 = vmul.f32 0.5, %v3488_v5  ;;  %v1853_v5 = vld [vmem:[#allocation4 + $0x290] sm:$0xff] }
0x1e03   :  { %3706 = vtanh.f32 %v2451_v38  ;;  %v2000_v38 = vrot.slane %v1853_v5, %v3877_v30 }
0x1e0b   :  { %v3705_v58 = vpop.eup %3704 }
0x1e0c   :  { %2458 = vrot.lane.b32.xlu1 %v3705_v58, %s3785_s10  ;;  %v1877_v58 = vrot.slane %v1853_v5, %v3868_v25 }
0x1e0d   :  { %v3707_v2 = vpop.eup %3706 }
0x1e0e   :  { %v2453_v8 = vmul.f32 0.5, %v3707_v2  ;;  %v2118_v2 = vsub.s32 4, %v3865_v24 }
0x1e10   :  { %v2454_v6 = vadd.f32 0.5, %v2453_v8  ;;  %v2119_v8 = vrot.slane %v1853_v5, %v2118_v2 }
0x1e12   :  { %v2456_v12 = vmul.f32 %v2454_v6, %v2347_v13 }
0x1e7e   :  { %v2459_v9 = vpop.permute.xlu1 %2458 }
0x1e7f   :  { %v2461_v11 = vmul.f32 %v2459_v9, %v2454_v6  ;;  %v1854_v9 = vld [vmem:[#allocation4 + $0x2a0] sm:$0xff] }
0x1e81   :  { %2463 = vrot.lane.b32.xlu0 %v2461_v11, %s3788_s11  ;;  %v2357_v11 = vrot.slane %v1854_v9, %v3868_v25 }
0x1ef3   :  { %v2464_v15 = vpop.permute.xlu0 %2463 }
0x1ef4   :  { %v2466_v54 = vadd.f32 %v2464_v15, %v2456_v12  ;;  %v2476_v12 = vrot.slane %v1854_v9, %v3877_v30  ;;  %v2595_v15 = vrot.slane %v1854_v9, %v2118_v2  ;;  %v1887_v30 = vrot.slane %v1853_v5, %v3874_v28 }
0x1ef6   :  { %3708 = vtanh.f32 %v2466_v54 }
0x1f00   :  { %v3709_v55 = vpop.eup %3708 }
0x1f01   :  { %2469 = vrot.lane.b32.xlu1 %v3709_v55, %s3785_s10 }
0x1f73   :  { %v2470_v29 = vpop.permute.xlu1 %2469 }
0x1f74   :  { %v4454_v14 = vmul.f32 %v2470_v29, %v2454_v6  ;;  %v2237_v6 = vsub.s32 6, %v3865_v24 }
0x1f76   :  { %2495 = vrot.lane.b32.xlu0 %v4454_v14, %s3788_s11 }
0x1fe8   :  { %v2496_v16 = vpop.permute.xlu0 %2495 }
0x1fe9   :  { %3243 = vmatmul.mubr.msk.f32.vlgmr.msra.gmra.mrb[14].mxu1 %vm281_vm0, %v2496_v16 }
0x1fea   :  { %3453 = vmatpush3.bf16.msra.mxu1 %v4369_v40  ;;  %3253 = vmatprep.mubr.msk.f32.mxu1 %vm3787_vm2, %v3784_v20 }
0x1feb   :  { %3454 = vmatprep.subr.bf16.mxu1 %v3786_v18 }
0x1fee   :  { %3456 = vmatpush3.bf16.msra.mxu1 %v4372_v47 }
0x1fef   :  { %3457 = vmatprep.subr.bf16.mxu1 %v3786_v18 }
0x20bc   :  { %v2565_v17 = vpop.f32.mrb[14].mxu1 }
0x20bd   :  { %v3490_v19 = vadd.f32 %v4362_v60, %v2565_v17  ;;  %v3244_v23 = vpop.f32.mrb[15].mxu1 }
0x20bf   :  { %3710 = vtanh.f32 %v3490_v19  ;;  %v2570_v52 = vmul.f32 0.5, %v3490_v19 }
0x20c1   :  { %3712 = vtanh.f32 %v2570_v52  ;;  %v2128_v52 = vsub.s32 5, %v3865_v24 }
0x20c9   :  { %v3711_v31 = vpop.eup %3710 }
0x20ca   :  { %2577 = vrot.lane.b32.xlu1 %v3711_v31, %s3785_s10  ;;  %v2010_v31 = vrot.slane %v1853_v5, %v3880_v32 }
0x20cb   :  { %v3713_v0 = vpop.eup %3712 }
0x20cc   :  { %v2572_v63 = vmul.f32 0.5, %v3713_v0  ;;  %v2129_v0 = vrot.slane %v1853_v5, %v2128_v52 }
0x20ce   :  { %v2573_v44 = vadd.f32 0.5, %v2572_v63  ;;  %v2247_v63 = vsub.s32 7, %v3865_v24 }
0x20d0   :  { %v2575_v48 = vmul.f32 %v2573_v44, %v2466_v54  ;;  %v2714_v54 = vrot.slane %v1854_v9, %v2237_v6 }
0x213c   :  { %v2578_v10 = vpop.permute.xlu1 %2577 }
0x213d   :  { %v2580_v42 = vmul.f32 %v2578_v10, %v2573_v44  ;;  %v2367_v10 = vrot.slane %v1854_v9, %v3874_v28 }
0x213f   :  { %2582 = vrot.lane.b32.xlu0 %v2580_v42, %s3788_s11  ;;  %v2486_v42 = vrot.slane %v1854_v9, %v3880_v32 }
0x21b1   :  { %v2583_v26 = vpop.permute.xlu0 %2582 }
0x21b2   :  { %v2585_v56 = vadd.f32 %v2583_v26, %v2575_v48  ;;  %v2605_v48 = vrot.slane %v1854_v9, %v2128_v52  ;;  %v2724_v26 = vrot.slane %v1854_v9, %v2247_v63 }
0x21b4   :  { %3714 = vtanh.f32 %v2585_v56 }
0x21be   :  { %v3715_v51 = vpop.eup %3714 }
0x21bf   :  { %2588 = vrot.lane.b32.xlu1 %v3715_v51, %s3785_s10 }
0x2231   :  { %v2589_v60 = vpop.permute.xlu1 %2588 }
0x2232   :  { %v4469_v46 = vmul.f32 %v2589_v60, %v2573_v44  ;;  %v2248_v44 = vrot.slane %v1853_v5, %v2247_v63 }
0x2234   :  { %2614 = vrot.lane.b32.xlu0 %v4469_v46, %s3788_s11 }
0x22a6   :  { %v2615_v7 = vpop.permute.xlu0 %2614 }
0x22a7   :  { %3254 = vmatmul.mubr.msk.f32.vlgmr.msra.gmra.mrb[16].mxu1 %vm281_vm0, %v2615_v7 }
0x22a8   :  { %3459 = vmatpush3.bf16.msra.mxu1 %v4369_v40  ;;  %3264 = vmatprep.mubr.msk.f32.mxu1 %vm3787_vm2, %v3784_v20 }
0x22a9   :  { %3460 = vmatprep.subr.bf16.mxu1 %v3786_v18 }
0x22ac   :  { %3462 = vmatpush3.bf16.msra.mxu1 %v4372_v47 }
0x237a   :  { %v2684_v43 = vpop.f32.mrb[16].mxu1 }
0x237b   :  { %v3492_v33 = vadd.f32 %v4364_v35, %v2684_v43  ;;  %v3255_v53 = vpop.f32.mrb[17].mxu1 }
0x237d   :  { %3716 = vtanh.f32 %v3492_v33  ;;  %v2689_v36 = vmul.f32 0.5, %v3492_v33 }
0x237f   :  { %3718 = vtanh.f32 %v2689_v36 }
0x2387   :  { %v3717_v39 = vpop.eup %3716 }
0x2388   :  { %2696 = vrot.lane.b32.xlu1 %v3717_v39, %s3785_s10 }
0x2389   :  { %v3719_v59 = vpop.eup %3718 }
0x238a   :  { %v2691_v41 = vmul.f32 0.5, %v3719_v59 }
0x238c   :  { %v2692_v40 = vadd.f32 0.5, %v2691_v41 }
0x238e   :  { %v2694_v20 = vmul.f32 %v2692_v40, %v2585_v56  ;;  %v1855_v56 = vld [vmem:[#allocation4 + $0x2b0] sm:$0x3] }
0x238f   :  { %v2833_v24 = vrot.slane %v1855_v56, %v3868_v25  ;;  %v2843_v43 = vrot.slane %v1855_v56, %v3874_v28 }
0x23fa   :  { %v2697_v61 = vpop.permute.xlu1 %2696 }
0x23fb   :  { %v2699_v34 = vmul.f32 %v2697_v61, %v2692_v40 }
0x23fd   :  { %2701 = vrot.lane.b32.xlu0 %v2699_v34, %s3788_s11 }
0x246f   :  { %v2702_v18 = vpop.permute.xlu0 %2701 }
0x2470   :  { %v4482_v47 = vadd.f32 %v2702_v18, %v2694_v20 }
0x2472   :  { %3720 = vtanh.f32 %v4482_v47 }
0x247c   :  { %v3721_v35 = vpop.eup %3720 }
0x247d   :  { %2707 = vrot.lane.b32.xlu1 %v3721_v35, %s3785_s10 }
0x24ef   :  { %v2708_v45 = vpop.permute.xlu1 %2707 }
0x24f0   :  { %v4486_v13 = vmul.f32 %v2708_v45, %v2692_v40 }
0x24f2   :  { %2733 = vrot.lane.b32.xlu0 %v4486_v13, %s3788_s11 }
0x2564   :  { %v2734_v4 = vpop.permute.xlu0 %2733 }
0x2565   :  { %3265 = vmatmul.mubr.msk.f32.vlgmr.msra.gmra.mrb[18].mxu1 %vm281_vm0, %v2734_v4 }
0x2638   :  { %v2803_v27 = vpop.f32.mrb[18].mxu1 }
0x2639   :  { %v3494_v57 = vadd.f32 %v4366_v50, %v2803_v27  ;;  %v3266_v62 = vpop.f32.mrb[19].mxu1  ;;  %v2238_v50 = vrot.slane %v1853_v5, %v2237_v6 }
0x263b   :  { %3722 = vtanh.f32 %v3494_v57  ;;  %v2808_v55 = vmul.f32 0.5, %v3494_v57 }
0x263d   :  { %3724 = vtanh.f32 %v2808_v55 }
0x2645   :  { %v3723_v49 = vpop.eup %3722 }
0x2646   :  { %2815 = vrot.lane.b32.xlu1 %v3723_v49, %s3785_s10 }
0x2647   :  { %v3725_v29 = vpop.eup %3724 }
0x2648   :  { %v2810_v16 = vmul.f32 0.5, %v3725_v29 }
0x264a   :  { %1879 = vrot.lane.b32.xlu1 %v1877_v58, %s3789_s12  ;;  %v4507_v17 = vadd.f32 0.5, %v2810_v16 }
0x264c   :  { %v2813_v51 = vmul.f32 %v4507_v17, %v4482_v47 }
0x264e   :  { %2002 = vrot.lane.b32.xlu1 %v2000_v38, %s3789_s12 }
0x2652   :  { %2121 = vrot.lane.b32.xlu1 %v2119_v8, %s3789_s12 }
0x2656   :  { %2240 = vrot.lane.b32.xlu1 %v2238_v50, %s3789_s12 }
0x265a   :  { %2359 = vrot.lane.b32.xlu1 %v2357_v11, %s3789_s12 }
0x265e   :  { %2478 = vrot.lane.b32.xlu1 %v2476_v12, %s3789_s12 }
0x2662   :  { %2597 = vrot.lane.b32.xlu1 %v2595_v15, %s3789_s12 }
0x2666   :  { %2716 = vrot.lane.b32.xlu1 %v2714_v54, %s3789_s12 }
0x26b8   :  { %v2816_v19 = vpop.permute.xlu1 %2815 }
0x26b9   :  { %v2818_v23 = vmul.f32 %v2816_v19, %v4507_v17 }
0x26bb   :  { %2820 = vrot.lane.b32.xlu0 %v2818_v23, %s3788_s11 }
0x26bc   :  { %v1880_v33 = vpop.permute.xlu1 %1879 }
0x26bd   :  { %v1882_v35 = vmul.f32 %v1880_v33, %v4378_v21  ;;  %v3728_v33 = vld [vmem:[%s4568_s0 + $0x38] sm:$0xff] }
0x26bf   :  { %1889 = vrot.lane.b32.xlu0 %v1887_v30, %s3789_s12 }
0x26c0   :  { %v2003_v39 = vpop.permute.xlu1 %2002 }
0x26c1   :  { %v2005_v47 = vmul.f32 %v2003_v39, %v4394_v3 }
0x26c3   :  { %2012 = vrot.lane.b32.xlu0 %v2010_v31, %s3789_s12  ;;  %v2006_v57 = vadd.f32 %v2005_v47, %v1882_v35 }
0x26c4   :  { %v2122_v25 = vpop.permute.xlu1 %2121 }
0x26c5   :  { %v2124_v28 = vmul.f32 %v2122_v25, %v4409_v37 }
0x26c7   :  { %2131 = vrot.lane.b32.xlu0 %v2129_v0, %s3789_s12  ;;  %v2125_v58 = vadd.f32 %v2124_v28, %v2006_v57 }
0x26c8   :  { %v2241_v41 = vpop.permute.xlu1 %2240 }
0x26c9   :  { %v2243_v62 = vmul.f32 %v2241_v41, %v4424_v1 }
0x26cb   :  { %2250 = vrot.lane.b32.xlu0 %v2248_v44, %s3789_s12  ;;  %v2244_v6 = vadd.f32 %v2243_v62, %v2125_v58 }
0x26cc   :  { %v2360_v61 = vpop.permute.xlu1 %2359 }
0x26cd   :  { %v2362_v38 = vmul.f32 %v2360_v61, %v4439_v22 }
0x26cf   :  { %2369 = vrot.lane.b32.xlu0 %v2367_v10, %s3789_s12  ;;  %v2363_v15 = vadd.f32 %v2362_v38, %v2244_v6 }
0x26d0   :  { %v2479_v20 = vpop.permute.xlu1 %2478 }
0x26d1   :  { %v2481_v50 = vmul.f32 %v2479_v20, %v4454_v14 }
0x26d3   :  { %2488 = vrot.lane.b32.xlu0 %v2486_v42, %s3789_s12  ;;  %v2482_v55 = vadd.f32 %v2481_v50, %v2363_v15 }
0x26d4   :  { %v2598_v4 = vpop.permute.xlu1 %2597 }
0x26d5   :  { %v2600_v54 = vmul.f32 %v2598_v4, %v4469_v46 }
0x26d7   :  { %2607 = vrot.lane.b32.xlu0 %v2605_v48, %s3789_s12  ;;  %v2601_v30 = vadd.f32 %v2600_v54, %v2482_v55 }
0x26d8   :  { %v2717_v11 = vpop.permute.xlu1 %2716 }
0x26d9   :  { %v2719_v29 = vmul.f32 %v2717_v11, %v4486_v13 }
0x26db   :  { %2726 = vrot.lane.b32.xlu0 %v2724_v26, %s3789_s12  ;;  %v2720_v0 = vadd.f32 %v2719_v29, %v2601_v30 }
0x26df   :  { %2835 = vrot.lane.b32.xlu0 %v2833_v24, %s3789_s12 }
0x272d   :  { %v2821_v60 = vpop.permute.xlu0 %2820 }
0x272e   :  { %v2823_v7 = vadd.f32 %v2821_v60, %v2813_v51 }
0x2730   :  { %3726 = vtanh.f32 %v2823_v7 }
0x2731   :  { %v1890_v53 = vpop.permute.xlu0 %1889 }
0x2732   :  { %v1892_v5 = vmul.f32 %v1890_v53, %v4378_v21 }
0x2735   :  { %v2013_v36 = vpop.permute.xlu0 %2012 }
0x2736   :  { %v2015_v45 = vmul.f32 %v2013_v36, %v4394_v3 }
0x2738   :  { %v2016_v2 = vadd.f32 %v2015_v45, %v1892_v5 }
0x2739   :  { %v2132_v59 = vpop.permute.xlu0 %2131 }
0x273a   :  { %v3727_v32 = vpop.eup %3726  ;;  %v2134_v49 = vmul.f32 %v2132_v59, %v4409_v37 }
0x273b   :  { %2826 = vrot.lane.b32.xlu1 %v3727_v32, %s3785_s10 }
0x273c   :  { %v2135_v9 = vadd.f32 %v2134_v49, %v2016_v2 }
0x273d   :  { %v2251_v40 = vpop.permute.xlu0 %2250 }
0x273e   :  { %v2253_v8 = vmul.f32 %v2251_v40, %v4424_v1 }
0x273f   :  { %2845 = vrot.lane.b32.xlu1 %v2843_v43, %s3789_s12 }
0x2740   :  { %v2254_v21 = vadd.f32 %v2253_v8, %v2135_v9 }
0x2741   :  { %v2370_v34 = vpop.permute.xlu0 %2369 }
0x2742   :  { %v2372_v3 = vmul.f32 %v2370_v34, %v4439_v22 }
0x2744   :  { %v2373_v16 = vadd.f32 %v2372_v3, %v2254_v21 }
0x2745   :  { %v2489_v18 = vpop.permute.xlu0 %2488 }
0x2746   :  { %v2491_v37 = vmul.f32 %v2489_v18, %v4454_v14 }
0x2748   :  { %v2492_v31 = vadd.f32 %v2491_v37, %v2373_v16 }
0x2749   :  { %v2608_v27 = vpop.permute.xlu0 %2607 }
0x274a   :  { %v2610_v1 = vmul.f32 %v2608_v27, %v4469_v46 }
0x274c   :  { %v2611_v63 = vadd.f32 %v2610_v1, %v2492_v31 }
0x274d   :  { %v2727_v12 = vpop.permute.xlu0 %2726 }
0x274e   :  { %v2729_v22 = vmul.f32 %v2727_v12, %v4486_v13 }
0x2750   :  { %v2730_v42 = vadd.f32 %v2729_v22, %v2611_v63 }
0x2751   :  { %v2836_v23 = vpop.permute.xlu0 %2835 }
0x27ad   :  { %v2827_v19 = vpop.permute.xlu1 %2826 }
0x27ae   :  { %v2829_v52 = vmul.f32 %v2827_v19, %v4507_v17  ;;  %v1856_v17 = vld [vmem:[#allocation4 + $0x2c0] ss:$0 sm:$0xff] }
0x27b0   :  { %v2838_v44 = vmul.f32 %v2836_v23, %v2829_v52 }
0x27b1   :  { %v2846_v10 = vpop.permute.xlu1 %2845 }
0x27b2   :  { %v2839_v14 = vadd.f32 %v2838_v44, %v2720_v0  ;;  %v2848_v48 = vmul.f32 %v2846_v10, %v2829_v52 }
0x27b4   :  { %v2849_v26 = vadd.f32 %v2848_v48, %v2730_v42  ;;  %2851 = vrot.lane.b32.xlu0 %v2839_v14, %s3788_s11 }
0x27b6   :  { %2859 = vrot.lane.b32.xlu1 %v2849_v26, %s3788_s11 }
0x2826   :  { %v2852_v46 = vpop.permute.xlu0 %2851 }
0x2827   :  { %v2854_v56 = vsel %vm281_vm0, %v2852_v46, 0.0 }
0x2828   :  { %2855 = vadd.xlane.f32.xlu0 %v2854_v56  ;;  %v2860_v24 = vpop.permute.xlu1 %2859 }
0x2829   :  { %v2862_v13 = vsel %vm281_vm0, %v2860_v24, 0.0 }
0x282a   :  { %2863 = vadd.xlane.f32.xlu1 %v2862_v13 }
0x28b5   :  { %v2856_v51 = vpop.xlane.xlu0 %2855 }
0x28b6   :  { %v2857_v7 = vadd.f32 %v2856_v51, %v1856_v17 }
0x28b7   :  { %v2864_v60 = vpop.xlane.xlu1 %2863 }
0x28b8   :  { %v2865_v32 = vadd.f32 %v2864_v60, %v1856_v17 }
0x28ba   :  { %v2867_v43 = vsel %vm2866_vm4, %v2857_v7, %v2865_v32 }
0x28bb   :  { %v2868_v53 = vadd.f32 %v3728_v33, %v2867_v43 }
0x28bd   :  { %v2870_v39 = vsel %vm2869_vm5, %v2868_v53, 0.0 }
0x28be   :  { %2871 = vst [vmem:[#allocation7] sm:$0xff] %v2870_v39 }
0x28bf   :  { %3762 = shalt.err (!%p3759_p12)
}
0x28c0   :  { %s3763_s20 = scalar_lea.hbm %s4570_s2, 128 }
0x28c1   :  { %p3764_p13 = scmp.ne.s32.totalorder %s4570_s2, %s3763_s20  ;;  %p3767_p0 = scmp.lt.u32.totalorder %s3763_s20, %s4570_s2 }
0x28c3   :  { %p3769_p1 = pnand %p3767_p0, %p3764_p13 }
0x28c5   :  { %3772 = shalt.err (!%p3769_p1)
}
0x28c6   :  { %2881 = dma.vmem_to_hbm [thread:$0]  %s2879_s14, 128, %s4570_s2, [#allocation6]  }
0x28c7   :  { %3775 = dma.done.wait [#allocation6], 128  }
0x28c8   :  { %3776 = vsyncadd [#allocation6], 4294967168 }
0x28c9   :  { %2885 = vsyncpa [#allocation5], 1 }
0x28ca   :  { %2886 = vsyncpa [#allocation6], 1 }

</bundles_post_ra>
